<compile_context>
chip_gen: v7x
topology: tpu7x:2x2x1
jax: 0.10.0
libtpu: 0.0.40
codegen_flags: <defaults>
</compile_context>

<pallas_src>
import math
import functools

import jax
import jax.numpy as jnp
from jax.scipy.linalg import expm
from jax.experimental import pallas as pl
from jax.experimental.pallas import tpu as pltpu


# 56 MiB scoped VMEM: well above the 16/32 MiB defaults, below v7x's 64 MiB physical.
_VMEM_LIMIT = 56 * 1024 * 1024


# ----------------------------------------------------------------------------
# Small helpers
# ----------------------------------------------------------------------------

def _probe_buffered():
    """Feature-probe: does this JAX/Mosaic build accept pipeline_mode=pl.Buffered(1)?"""
    try:
        def k(a_ref, o_ref):
            o_ref[...] = a_ref[...]
        x = jnp.zeros((8, 128), jnp.float32)
        out = pl.pallas_call(
            k,
            out_shape=jax.ShapeDtypeStruct((16, 128), jnp.float32),
            grid=(2,),
            in_specs=[pl.BlockSpec((8, 128), lambda i: (0, 0),
                                   pipeline_mode=pl.Buffered(1))],
            out_specs=pl.BlockSpec((8, 128), lambda i: (i, 0)),
        )(x)
        jax.block_until_ready(out)
        return True
    except Exception:
        return False


_BUFFERED_OK = _probe_buffered()


def _const_spec(arr):
    """BlockSpec for a weight that is identical for every grid step.
    Single-buffered when supported: the index_map is constant across the batch
    grid, so double-buffering would only double resident weight VMEM (matters
    on v7x's 64 MiB)."""
    n = arr.ndim
    idx = lambda b, n=n: (0,) * n
    if _BUFFERED_OK:
        return pl.BlockSpec(arr.shape, idx, pipeline_mode=pl.Buffered(1))
    return pl.BlockSpec(arr.shape, idx)


def _ceil_to(x, m):
    return ((x + m - 1) // m) * m


# ----------------------------------------------------------------------------
# Generic matmul / layernorm kernels (bf16 operands, f32 accumulation)
# ----------------------------------------------------------------------------

def _mm_kernel(a_ref, b_ref, o_ref):
    o_ref[...] = jnp.dot(a_ref[...], b_ref[...], preferred_element_type=jnp.float32)


def _mm_bias_kernel(a_ref, b_ref, bias_ref, o_ref):
    o_ref[...] = (jnp.dot(a_ref[...], b_ref[...], preferred_element_type=jnp.float32)
                  + bias_ref[...])


def _mm_tiled_kernel(a_ref, b_ref, o_ref, acc_ref):
    @pl.when(pl.program_id(2) == 0)
    def _():
        acc_ref[...] = jnp.zeros_like(acc_ref)
    acc_ref[...] += jnp.dot(a_ref[...], b_ref[...], preferred_element_type=jnp.float32)

    @pl.when(pl.program_id(2) == pl.num_programs(2) - 1)
    def _():
        o_ref[...] = acc_ref[...]


def _mm_tiled_bias_kernel(a_ref, b_ref, bias_ref, o_ref, acc_ref):
    @pl.when(pl.program_id(2) == 0)
    def _():
        acc_ref[...] = jnp.zeros_like(acc_ref)
    acc_ref[...] += jnp.dot(a_ref[...], b_ref[...], preferred_element_type=jnp.float32)

    @pl.when(pl.program_id(2) == pl.num_programs(2) - 1)
    def _():
        o_ref[...] = acc_ref[...] + bias_ref[...]


def linear(x, w, b=None):
    """y = x @ w (+ b).
      * tiny operands  -> plain XLA op (a pallas_call here is pure launch overhead;
                          the conv / upsample chain issues dozens of these).
      * medium         -> one VMEM-resident pallas_call (bf16 operands, f32 acc).
      * large          -> tiled (M,N,K) grid with an f32 accumulator."""
    shape = x.shape
    K = shape[-1]
    M = math.prod(shape[:-1]) if len(shape) > 1 else 1
    N = w.shape[1]
    nbytes = (M * K + K * N + M * N) * 4

    if nbytes <= (512 << 10):                       # tiny: let XLA fuse it
        y = jnp.dot(x.astype(jnp.float32), w.astype(jnp.float32),
                    preferred_element_type=jnp.float32)
        if b is not None:
            y = y + b.astype(jnp.float32)
        return y

    x2 = x.reshape(M, K).astype(jnp.bfloat16)
    w2 = w.astype(jnp.bfloat16)

    if nbytes <= (8 << 20):                         # medium: single call
        if b is None:
            out = pl.pallas_call(
                _mm_kernel,
                out_shape=jax.ShapeDtypeStruct((M, N), jnp.float32),
                compiler_params=pltpu.CompilerParams(vmem_limit_bytes=_VMEM_LIMIT),
            )(x2, w2)
        else:
            out = pl.pallas_call(
                _mm_bias_kernel,
                out_shape=jax.ShapeDtypeStruct((M, N), jnp.float32),
                compiler_params=pltpu.CompilerParams(vmem_limit_bytes=_VMEM_LIMIT),
            )(x2, w2, b.reshape(1, N).astype(jnp.float32))
        return out.reshape(shape[:-1] + (N,))

    # large: tiled path (not exercised at toy shapes; keeps the op scalable)
    tm, tn, tk = 512, 512, 512
    Mp, Np, Kp = _ceil_to(M, tm), _ceil_to(N, tn), _ceil_to(K, tk)
    xp = jnp.pad(x2, ((0, Mp - M), (0, Kp - K)))
    wp = jnp.pad(w2, ((0, Kp - K), (0, Np - N)))
    in_specs = [pl.BlockSpec((tm, tk), lambda i, j, k: (i, k)),
                pl.BlockSpec((tk, tn), lambda i, j, k: (k, j))]
    args = [xp, wp]
    kernel = _mm_tiled_kernel
    if b is not None:
        bp = jnp.pad(b.astype(jnp.float32), (0, Np - N)).reshape(1, Np)
        in_specs.append(pl.BlockSpec((1, tn), lambda i, j, k: (0, j)))
        args.append(bp)
        kernel = _mm_tiled_bias_kernel
    out = pl.pallas_call(
        kernel,
        out_shape=jax.ShapeDtypeStruct((Mp, Np), jnp.float32),
        grid=(Mp // tm, Np // tn, Kp // tk),
        in_specs=in_specs,
        out_specs=pl.BlockSpec((tm, tn), lambda i, j, k: (i, j)),
        scratch_shapes=[pltpu.VMEM((tm, tn), jnp.float32)],
        compiler_params=pltpu.CompilerParams(
            dimension_semantics=("parallel", "parallel", "arbitrary"),
            vmem_limit_bytes=_VMEM_LIMIT),
    )(*args)
    return out[:M, :N].reshape(shape[:-1] + (N,))


def _ln_kernel(x_ref, g_ref, b_ref, o_ref):
    x = x_ref[...].astype(jnp.float32)
    mu = jnp.mean(x, axis=-1, keepdims=True)
    var = jnp.mean(jnp.square(x - mu), axis=-1, keepdims=True)
    o_ref[...] = (x - mu) * jax.lax.rsqrt(var + 1e-5) * g_ref[...] + b_ref[...]


def layernorm(x, g, b, eps=1e-5):
    if x.size * 4 <= (256 << 10):                   # tiny: plain XLA
        x = x.astype(jnp.float32)
        mu = jnp.mean(x, axis=-1, keepdims=True)
        var = jnp.mean(jnp.square(x - mu), axis=-1, keepdims=True)
        return (x - mu) * jax.lax.rsqrt(var + eps) * g.astype(jnp.float32) + b.astype(jnp.float32)
    shape = x.shape
    D = shape[-1]
    M = math.prod(shape[:-1])
    out = pl.pallas_call(
        _ln_kernel,
        out_shape=jax.ShapeDtypeStruct((M, D), jnp.float32),
        compiler_params=pltpu.CompilerParams(vmem_limit_bytes=_VMEM_LIMIT),
    )(x.reshape(M, D).astype(jnp.float32),
      g.reshape(1, D).astype(jnp.float32),
      b.reshape(1, D).astype(jnp.float32))
    return out.reshape(shape)


def _mm_bias_ln_kernel(x_ref, w_ref, b_ref, g_ref, bb_ref, o_ref):
    y = jnp.dot(x_ref[...], w_ref[...], preferred_element_type=jnp.float32) + b_ref[...]
    mu = jnp.mean(y, axis=-1, keepdims=True)
    var = jnp.mean(jnp.square(y - mu), axis=-1, keepdims=True)
    o_ref[...] = (y - mu) * jax.lax.rsqrt(var + 1e-5) * g_ref[...] + bb_ref[...]


def pallas_linear_ln(x, w, b, g, bb):
    """Fused (x @ w + b) -> LayerNorm, one pallas_call (bf16 matmul, f32 LN)."""
    shape = x.shape
    K = shape[-1]
    M = math.prod(shape[:-1])
    N = w.shape[1]
    out = pl.pallas_call(
        _mm_bias_ln_kernel,
        out_shape=jax.ShapeDtypeStruct((M, N), jnp.float32),
        compiler_params=pltpu.CompilerParams(vmem_limit_bytes=_VMEM_LIMIT),
    )(x.reshape(M, K).astype(jnp.bfloat16), w.astype(jnp.bfloat16),
      b.reshape(1, N).astype(jnp.float32), g.reshape(1, N).astype(jnp.float32),
      bb.reshape(1, N).astype(jnp.float32))
    return out.reshape(shape[:-1] + (N,))


# ----------------------------------------------------------------------------
# Fused iTransformer layer (pre-LN MHA + post-LN, FF + post-LN) — one pallas_call
# ----------------------------------------------------------------------------

def _itrans_layer_kernel(h_ref, ln1g, ln1b, wq_ref, wk_ref, wv_ref, wout_ref,
                         ln2g, ln2b, wff1, bff1, wff2, bff2, ln3g, ln3b,
                         o_ref, *, heads, dim_head, scale):
    f32 = jnp.float32
    bf16 = jnp.bfloat16
    h = h_ref[0].astype(f32)                                    # (V, D)

    def ln(x, g_r, b_r):
        mu = jnp.mean(x, axis=-1, keepdims=True)
        var = jnp.mean(jnp.square(x - mu), axis=-1, keepdims=True)
        return (x - mu) * jax.lax.rsqrt(var + 1e-5) * g_r[...] + b_r[...]

    hn = ln(h, ln1g, ln1b)
    hn_b = hn.astype(bf16)
    # bf16 operands, f32 accumulation (MXU-native on v5e/v6e/v7x)
    q = jnp.dot(hn_b, wq_ref[...], preferred_element_type=f32)  # (V, inner)
    k = jnp.dot(hn_b, wk_ref[...], preferred_element_type=f32)
    v = jnp.dot(hn_b, wv_ref[...], preferred_element_type=f32)

    # Per-head attention with plain 2-D MXU dots (statically unrolled over the
    # small head count).  Working set per head is (V, V), not (V, V, inner).
    # TODO(synk): for large V add an inner key-block loop with an online-softmax
    # accumulator so the working set fits v7x's 64 MiB VMEM.
    dn = (((1,), (1,)), ((), ()))                               # q @ k^T
    head_outs = []
    for hh in range(heads):
        sl = slice(hh * dim_head, (hh + 1) * dim_head)
        qh = q[:, sl].astype(bf16)
        kh = k[:, sl].astype(bf16)
        vh = v[:, sl].astype(bf16)
        s = jax.lax.dot_general(qh, kh, dn, preferred_element_type=f32) * scale
        s = s - jnp.max(s, axis=1, keepdims=True)               # softmax over keys (f32)
        p = jnp.exp(s)
        p = p * pl.reciprocal(jnp.sum(p, axis=1, keepdims=True), approx=True)
        head_outs.append(jnp.dot(p.astype(bf16), vh, preferred_element_type=f32))
    o = jnp.concatenate(head_outs, axis=1)                      # (V, inner)

    h = h + jnp.dot(o.astype(bf16), wout_ref[...], preferred_element_type=f32)
    h = ln(h, ln2g, ln2b)
    f = jnp.dot(h.astype(bf16), wff1[...], preferred_element_type=f32) + bff1[...]
    f = jax.nn.gelu(f)   # tanh approximation; PyTorch nn.GELU default is exact erf
    f = jnp.dot(f.astype(bf16), wff2[...], preferred_element_type=f32) + bff2[...]
    h = ln(h + f, ln3g, ln3b)
    o_ref[0] = h


def fused_itransformer_layer(h, lp, heads, dim_head):
    B, V, D = h.shape
    inner = heads * dim_head
    hidden = lp['ff1']['w'].shape[1]
    bf16, f32 = jnp.bfloat16, jnp.float32
    wqkv = lp['qkv']['w']
    wq = wqkv[:, :inner].astype(bf16)
    wk = wqkv[:, inner:2 * inner].astype(bf16)
    wv = wqkv[:, 2 * inner:].astype(bf16)
    weights = [
        lp['attn_ln']['g'].reshape(1, D).astype(f32), lp['attn_ln']['b'].reshape(1, D).astype(f32),
        wq, wk, wv, lp['attn_out']['w'].astype(bf16),
        lp['post_attn_ln']['g'].reshape(1, D).astype(f32), lp['post_attn_ln']['b'].reshape(1, D).astype(f32),
        lp['ff1']['w'].astype(bf16), lp['ff1']['b'].reshape(1, hidden).astype(f32),
        lp['ff2']['w'].astype(bf16), lp['ff2']['b'].reshape(1, D).astype(f32),
        lp['post_ff_ln']['g'].reshape(1, D).astype(f32), lp['post_ff_ln']['b'].reshape(1, D).astype(f32),
    ]
    flops = int(B * (6 * V * D * inner + 4 * V * V * inner
                     + 2 * V * inner * D + 4 * V * D * hidden))
    trans = int(B * (heads * V * V + V * hidden + heads * V))
    # weights are DMA'd once (constant index_map), not once per batch step
    w_bytes = sum(int(w.size) * w.dtype.itemsize for w in weights)
    bytes_acc = int(4 * 2 * B * V * D + w_bytes)
    return pl.pallas_call(
        functools.partial(_itrans_layer_kernel, heads=heads, dim_head=dim_head,
                          scale=1.0 / math.sqrt(dim_head)),
        out_shape=jax.ShapeDtypeStruct((B, V, D), jnp.float32),
        grid=(B,),
        in_specs=[pl.BlockSpec((1, V, D), lambda b: (b, 0, 0))]
                 + [_const_spec(w) for w in weights],
        out_specs=pl.BlockSpec((1, V, D), lambda b: (b, 0, 0)),
        compiler_params=pltpu.CompilerParams(dimension_semantics=("parallel",),
                                             vmem_limit_bytes=_VMEM_LIMIT),
        cost_estimate=pl.CostEstimate(flops=flops, transcendentals=trans,
                                      bytes_accessed=bytes_acc),
    )(h.astype(f32), *weights)


def itransformer_forward(p, x, heads, dim_head, pred_len):
    """x: (B, lookback, V) -> {pred_len: (B, pred_len, V)}."""
    B, L, V = x.shape
    h = jnp.transpose(x, (0, 2, 1))                                 # (B, V, L)
    h = pallas_linear_ln(h, p['in']['w'], p['in']['b'],
                         p['in_ln']['g'], p['in_ln']['b'])          # (B, V, dim)
    for lp in p['layers']:
        h = fused_itransformer_layer(h, lp, heads, dim_head)
    pred = linear(h, p['pred']['w'], p['pred']['b'])                # (B, V, pred_len)
    return {pred_len: jnp.transpose(pred, (0, 2, 1))}


# ----------------------------------------------------------------------------
# Fused GraphTransformer layer — one pallas_call per layer
# ----------------------------------------------------------------------------

def _gt_layer_kernel(h_ref, e_ref, kr_ref, maskb_ref,
                     wq_ref, bq_ref, wk_ref, bk_ref, wv_ref, bv_ref,
                     we_ref, be_ref, wkr_ref, bkr_ref,
                     woh_ref, boh_ref, woe_ref, boe_ref,
                     ln1hg, ln1hb, ln1eg, ln1eb,
                     wfh1, bfh1, wfh2, bfh2, wfe1, bfe1, wfe2, bfe2,
                     ln2hg, ln2hb, ln2eg, ln2eb,
                     h_out_ref, e_out_ref, *, heads, scale):
    f32 = jnp.float32
    bf16 = jnp.bfloat16
    N = h_ref.shape[1]
    G = h_ref.shape[2]
    dh = G // heads
    h_in = h_ref[0].astype(f32)                               # (N, G)
    e_in = e_ref[0].astype(f32).reshape(N * N, G)             # (N*N, G)
    kr_in = kr_ref[0].astype(f32).reshape(N * N, G)
    mask_b = maskb_ref[...]                                   # (N, N) additive bias: 0 / -1e9

    def lin(x, w_r, b_r):
        return jnp.dot(x.astype(bf16), w_r[...], preferred_element_type=f32) + b_r[...]

    Q = lin(h_in, wq_ref, bq_ref)                             # (N, G)
    K = lin(h_in, wk_ref, bk_ref)
    Vv = lin(h_in, wv_ref, bv_ref)
    E = lin(e_in, we_ref, be_ref)                             # (N*N, G)
    KR = lin(kr_in, wkr_ref, bkr_ref)

    # Edge-gated scores; the full (N, N, G) tensor is required anyway for Oe / e-out.
    score3 = (Q[:, None, :] * K[None, :, :]) * scale * E.reshape(N, N, G)   # (N, N, G)
    kr3 = KR.reshape(N, N, G)

    # Per-head masked attention: (N, N) logits and one (N, N)@(N, dh) MXU dot per
    # head; the graph mask is folded into the logits as an additive bias.
    # TODO(synk): exact use of the diffusion-kernel edge feature (Kr) in the original
    # (unavailable) GraphTransformerLayer is unknown; treated as an additive logit bias.
    # TODO(synk): for large N, tile the key/edge axis (flash-style) to fit v7x's 64 MiB.
    cols = []
    for hh in range(heads):
        sl = slice(hh * dh, (hh + 1) * dh)
        logit = jnp.clip(jnp.sum(score3[:, :, sl], axis=2), -5.0, 5.0)       # (N, N)
        krb = jnp.clip(jnp.sum(kr3[:, :, sl], axis=2) * scale, -5.0, 5.0)
        w_h = jnp.exp(logit + krb + mask_b)                                  # masked edges -> 0
        den = jnp.sum(w_h, axis=1, keepdims=True) + 1e-6                     # (N, 1)
        num = jnp.dot(w_h.astype(bf16), Vv[:, sl].astype(bf16),
                      preferred_element_type=f32)                            # (N, dh)
        cols.append(num * pl.reciprocal(den, approx=True))
    h_att = jnp.concatenate(cols, axis=1)                                    # (N, G)

    h = lin(h_att, woh_ref, boh_ref)                          # (N, G)
    e = lin(score3.reshape(N * N, G), woe_ref, boe_ref)       # (N*N, G)

    def lnorm(x, g_r, b_r):
        mu = jnp.mean(x, axis=-1, keepdims=True)
        var = jnp.mean(jnp.square(x - mu), axis=-1, keepdims=True)
        return (x - mu) * jax.lax.rsqrt(var + 1e-5) * g_r[...] + b_r[...]

    h = lnorm(h_in + h, ln1hg, ln1hb)
    e = lnorm(e_in + e, ln1eg, ln1eb)
    h_mid, e_mid = h, e
    hf = jnp.maximum(lin(h, wfh1, bfh1), 0.0)
    hf = lin(hf, wfh2, bfh2)
    ef = jnp.maximum(lin(e, wfe1, bfe1), 0.0)
    ef = lin(ef, wfe2, bfe2)
    h = lnorm(h_mid + hf, ln2hg, ln2hb)
    e = lnorm(e_mid + ef, ln2eg, ln2eb)
    h_out_ref[0] = h
    e_out_ref[0] = e.reshape(N, N, G)


def fused_gt_layer(h, e, kr, mask_bias, p, g_heads):
    """h: (B,N,G); e, kr: (B,N,N,G); mask_bias: (N,N) additive 0/-1e9."""
    B, N, G = h.shape
    hidden = p['ffn_h1']['w'].shape[1]
    bf16, f32 = jnp.bfloat16, jnp.float32

    def wc(d):
        return d['w'].astype(bf16)

    def bc(d, n):
        return d['b'].reshape(1, n).astype(f32)

    weights = [
        wc(p['Q']), bc(p['Q'], G), wc(p['K']), bc(p['K'], G), wc(p['V']), bc(p['V'], G),
        wc(p['E']), bc(p['E'], G), wc(p['KR']), bc(p['KR'], G),
        wc(p['Oh']), bc(p['Oh'], G), wc(p['Oe']), bc(p['Oe'], G),
        p['ln1_h']['g'].reshape(1, G).astype(f32), p['ln1_h']['b'].reshape(1, G).astype(f32),
        p['ln1_e']['g'].reshape(1, G).astype(f32), p['ln1_e']['b'].reshape(1, G).astype(f32),
        wc(p['ffn_h1']), bc(p['ffn_h1'], hidden), wc(p['ffn_h2']), bc(p['ffn_h2'], G),
        wc(p['ffn_e1']), bc(p['ffn_e1'], hidden), wc(p['ffn_e2']), bc(p['ffn_e2'], G),
        p['ln2_h']['g'].reshape(1, G).astype(f32), p['ln2_h']['b'].reshape(1, G).astype(f32),
        p['ln2_e']['g'].reshape(1, G).astype(f32), p['ln2_e']['b'].reshape(1, G).astype(f32),
    ]
    NE = N * N
    flops = int(B * (6 * N * G * G + 4 * NE * G * G + 6 * NE * G + 2 * NE * G
                     + 2 * N * G * G + 2 * NE * G * G
                     + 4 * N * G * hidden + 4 * NE * G * hidden))
    trans = int(B * (g_heads * NE + g_heads * N))
    w_bytes = sum(int(w.size) * w.dtype.itemsize for w in weights)
    bytes_acc = int(4 * B * (2 * N * G + 3 * NE * G) + 4 * int(mask_bias.size) + w_bytes)
    h_out, e_out = pl.pallas_call(
        functools.partial(_gt_layer_kernel, heads=g_heads,
                          scale=1.0 / math.sqrt(G // g_heads)),
        out_shape=(jax.ShapeDtypeStruct((B, N, G), jnp.float32),
                   jax.ShapeDtypeStruct((B, N, N, G), jnp.float32)),
        grid=(B,),
        in_specs=[pl.BlockSpec((1, N, G), lambda b: (b, 0, 0)),
                  pl.BlockSpec((1, N, N, G), lambda b: (b, 0, 0, 0)),
                  pl.BlockSpec((1, N, N, G), lambda b: (b, 0, 0, 0)),
                  _const_spec(mask_bias)]
                 + [_const_spec(w) for w in weights],
        out_specs=(pl.BlockSpec((1, N, G), lambda b: (b, 0, 0)),
                   pl.BlockSpec((1, N, N, G), lambda b: (b, 0, 0, 0))),
        compiler_params=pltpu.CompilerParams(dimension_semantics=("parallel",),
                                             vmem_limit_bytes=_VMEM_LIMIT),
        cost_estimate=pl.CostEstimate(flops=flops, transcendentals=trans,
                                      bytes_accessed=bytes_acc),
    )(h.astype(f32), e.astype(f32), kr.astype(f32), mask_bias, *weights)
    return h_out, e_out


# ----------------------------------------------------------------------------
# Conv1d / ConvTranspose1d — static-slice im2col, BN folded (eval mode)
# ----------------------------------------------------------------------------

def conv1d(x, w, b, stride=1, padding=1):
    """x: (B, Cin, L); w: (Cout, Cin, k) (PyTorch layout); returns (B, Cout, Lout)."""
    B, Cin, L = x.shape
    Cout, _, k = w.shape
    xp = jnp.pad(x, ((0, 0), (0, 0), (padding, padding)))
    Lout = (L + 2 * padding - k) // stride + 1
    span = (Lout - 1) * stride + 1
    cols = jnp.stack([xp[:, :, t:t + span:stride] for t in range(k)], axis=-1)  # (B,Cin,Lout,k)
    cols = jnp.transpose(cols, (0, 2, 1, 3)).reshape(B * Lout, Cin * k)
    wmat = jnp.transpose(w.reshape(Cout, Cin * k))                              # (Cin*k, Cout)
    y = linear(cols, wmat, b)                                                   # (B*Lout, Cout)
    return jnp.transpose(y.reshape(B, Lout, Cout), (0, 2, 1))


def conv_transpose1d(x, w, b, stride=1, padding=1, output_padding=0):
    """x: (B, Cin, L); w: (Cin, Cout, k) (PyTorch ConvTranspose1d layout)."""
    B, Cin, L = x.shape
    _, Cout, k = w.shape
    if stride == 1:
        xup = x
    else:
        Lup = (L - 1) * stride + 1
        z = jnp.zeros((B, Cin, L, stride - 1), x.dtype)
        xup = jnp.concatenate([x[..., None], z], axis=-1).reshape(B, Cin, L * stride)
        xup = xup[:, :, :Lup]
    pad_l = k - 1 - padding
    pad_r = k - 1 - padding + output_padding
    xp = jnp.pad(xup, ((0, 0), (0, 0), (pad_l, pad_r)))
    w_eq = jnp.transpose(w[:, :, ::-1], (1, 0, 2))                              # (Cout, Cin, k)
    return conv1d(xp, w_eq, b, stride=1, padding=0)


def fold_bn_conv(w, b, bn, eps=1e-5):
    gamma, beta, mean, var = bn
    scale = gamma * jax.lax.rsqrt(var + eps)
    return w * scale[:, None, None], (b - mean) * scale + beta


def fold_bn_convT(w, b, bn, eps=1e-5):
    gamma, beta, mean, var = bn
    scale = gamma * jax.lax.rsqrt(var + eps)
    return w * scale[None, :, None], (b - mean) * scale + beta


# ----------------------------------------------------------------------------
# Parameter initialization (deterministic, synthetic)
# ----------------------------------------------------------------------------

class KeyGen:
    def __init__(self, seed):
        self.key = jax.random.PRNGKey(seed)

    def __call__(self):
        self.key, sub = jax.random.split(self.key)
        return sub


def glorot(key, shape, fan_in, fan_out):
    lim = math.sqrt(6.0 / (fan_in + fan_out))
    return jax.random.uniform(key, shape, jnp.float32, -lim, lim)


def init_linear(kg, fan_in, fan_out, bias=True):
    return {'w': glorot(kg(), (fan_in, fan_out), fan_in, fan_out),
            'b': jnp.zeros((fan_out,), jnp.float32) if bias else None}


def init_ln(dim):
    return {'g': jnp.ones((dim,), jnp.float32), 'b': jnp.zeros((dim,), jnp.float32)}


def init_bn(dim):
    return (jnp.ones((dim,), jnp.float32), jnp.zeros((dim,), jnp.float32),
            jnp.zeros((dim,), jnp.float32), jnp.ones((dim,), jnp.float32))


def init_conv(kg, cout, cin, k):
    return {'w': glorot(kg(), (cout, cin, k), cin * k, cout * k),
            'b': jnp.zeros((cout,), jnp.float32)}


def init_convT(kg, cin, cout, k):
    return {'w': glorot(kg(), (cin, cout, k), cin * k, cout * k),
            'b': jnp.zeros((cout,), jnp.float32)}


def init_itransformer(kg, num_variates, lookback, dim, heads, dim_head, depth, pred_len):
    inner = heads * dim_head
    layers = []
    for _ in range(depth):
        layers.append({
            'attn_ln': init_ln(dim),
            'qkv': init_linear(kg, dim, 3 * inner, bias=False),
            'attn_out': init_linear(kg, inner, dim, bias=False),
            'post_attn_ln': init_ln(dim),
            'ff1': init_linear(kg, dim, 4 * dim),
            'ff2': init_linear(kg, 4 * dim, dim),
            'post_ff_ln': init_ln(dim),
        })
    return {'in': init_linear(kg, lookback, dim),
            'in_ln': init_ln(dim),
            'layers': layers,
            'pred': init_linear(kg, dim, pred_len)}


def init_gt_layer(kg, g_dim):
    return {
        'Q': init_linear(kg, g_dim, g_dim), 'K': init_linear(kg, g_dim, g_dim),
        'V': init_linear(kg, g_dim, g_dim), 'E': init_linear(kg, g_dim, g_dim),
        'KR': init_linear(kg, g_dim, g_dim),
        'Oh': init_linear(kg, g_dim, g_dim), 'Oe': init_linear(kg, g_dim, g_dim),
        'ln1_h': init_ln(g_dim), 'ln1_e': init_ln(g_dim),
        'ffn_h1': init_linear(kg, g_dim, 2 * g_dim), 'ffn_h2': init_linear(kg, 2 * g_dim, g_dim),
        'ffn_e1': init_linear(kg, g_dim, 2 * g_dim), 'ffn_e2': init_linear(kg, 2 * g_dim, g_dim),
        'ln2_h': init_ln(g_dim), 'ln2_e': init_ln(g_dim),
    }


def init_params(seed, cfg):
    kg = KeyGen(seed)
    T, N = cfg['seq_len'], cfg['num_node']
    D, dec_dim, g_dim = cfg['model_dim'], cfg['dec_dim'], cfg['g_dim']
    rate_g = int(math.log(dec_dim / 8, 2))
    p = {}
    p['encoder'] = init_itransformer(kg, N, T, D, cfg['num_heads'], D // 2,
                                     cfg['num_encoder_layers'], T)
    p['decoder'] = init_itransformer(kg, N, T, dec_dim, cfg['num_heads'], dec_dim // 2,
                                     cfg['num_decoder_layers'], cfg['horizon'])
    p['GT'] = [init_gt_layer(kg, g_dim) for _ in range(cfg['num_g_layers'])]
    p['g_conv'] = init_conv(kg, g_dim, T, 3); p['g_conv_bn'] = init_bn(g_dim)
    p['gs_conv'] = init_conv(kg, N, N, 3);    p['gs_conv_bn'] = init_bn(N)
    p['gs_lin'] = init_linear(kg, g_dim // 2, T)
    p['e_lin'] = init_linear(kg, N * T, g_dim)
    p['kr_lin'] = init_linear(kg, N * T, g_dim)
    p['up1_ct'] = init_convT(kg, 3, 8, 3); p['up1_bn1'] = init_bn(8)
    p['up1_c'] = init_conv(kg, 8, 8, 3);   p['up1_bn2'] = init_bn(8)
    p['up2_c'] = init_conv(kg, T, g_dim, 3); p['up2_bn'] = init_bn(T)
    p['up_list'] = [{'ct': init_convT(kg, T, T, 3), 'bn1': init_bn(T),
                     'c': init_conv(kg, T, T, 3), 'bn2': init_bn(T)}
                    for _ in range(rate_g)]
    p['up_lin'] = init_linear(kg, D, N)
    p['hg_bn'] = init_ln(g_dim)
    return p


# ----------------------------------------------------------------------------
# Graph construction (dense replacement of the scipy/dgl path in init_for_max)
# ----------------------------------------------------------------------------

def calculate_supports(adj, threshold, sigma=0.5, beta=1.0):
    adj = jnp.where(adj < threshold, 0.0, adj)
    N = adj.shape[0]
    d = adj.sum(1)
    d_is = jnp.where(d > 0, 1.0 / jnp.sqrt(d), 0.0)
    L = jnp.eye(N, dtype=jnp.float32) - d_is[:, None] * adj * d_is[None, :]
    dk = expm(-beta * L)                                   # diffusion kernel
    # random-walk kernel (I - 0.5 L)^2 is computed in the original but never used for Kr
    mask = ((adj > 0) & (~jnp.eye(N, dtype=bool))).astype(jnp.float32)
    e_dense = (L * mask).astype(jnp.float32)               # off-diagonal Laplacian edge weights
    kr_dense = (jnp.exp(-(dk ** 2) / (2.0 * sigma ** 2)) * mask).astype(jnp.float32)
    return e_dense, kr_dense, mask


# ----------------------------------------------------------------------------
# Full iTPGTN forward
# ----------------------------------------------------------------------------

def itpgtn_forward(params, consts, src, cfg):
    B = src.shape[0]
    T, N, g_dim = cfg['seq_len'], cfg['num_node'], cfg['g_dim']
    e_dense, kr_dense, mask = consts['e'], consts['kr'], consts['mask']

    src_g_in = src                                                    # (B, T, N)

    # ----- encoder -----
    enc_out = itransformer_forward(params['encoder'], src,
                                   cfg['num_heads'], cfg['model_dim'] // 2, T)
    src_enc = enc_out[T]                                              # (B, T, N)

    # ----- edge embeddings: e_lin(e_ij * flatten(src_enc[b])) done densely -----
    flat = src_enc.reshape(B, T * N)
    xWe = linear(flat, params['e_lin']['w'], None)                    # (B, g_dim)
    xWkr = linear(flat, params['kr_lin']['w'], None)
    batch_e = e_dense[None, :, :, None] * xWe[:, None, None, :] + params['e_lin']['b']
    batch_kr = kr_dense[None, :, :, None] * xWkr[:, None, None, :] + params['kr_lin']['b']

    # ----- node embeddings via g_conv (eval BN folded into the conv) -----
    wg, bg = fold_bn_conv(params['g_conv']['w'], params['g_conv']['b'], params['g_conv_bn'])
    sg = conv1d(src_g_in, wg, bg, 1, 1)                               # (B, g_dim, N)
    src_g = sg.reshape(B, N, g_dim)      # replicates PyTorch .view(-1, g_dim) raw reshape

    # ----- graph transformer layers (one fused pallas_call per layer) -----
    mask_bias = jnp.where(mask > 0, 0.0, -1e9).astype(jnp.float32)    # additive logit mask (N, N)
    h, e = src_g, batch_e
    for gtl in params['GT']:
        h, e = fused_gt_layer(h, e, batch_kr, mask_bias, gtl, cfg['g_heads'])

    # ----- gs_conv / gs_lin -----
    wgs, bgs = fold_bn_conv(params['gs_conv']['w'], params['gs_conv']['b'], params['gs_conv_bn'])
    sg = conv1d(h, wgs, bgs, 2, 1)                                    # (B, N, g_dim//2)
    sg = linear(sg, params['gs_lin']['w'], params['gs_lin']['b'])     # (B, N, T)
    src_g_out = sg.reshape(B, T, N)      # replicates PyTorch .view(-1, T, N)

    # ----- graph readout (dgl mean/max/sum over nodes of each batched graph) -----
    hg = jnp.stack([jnp.mean(h, axis=1), jnp.max(h, axis=1), jnp.sum(h, axis=1)], axis=1)
    hg = layernorm(hg, params['hg_bn']['g'], params['hg_bn']['b'])    # (B, 3, g_dim)

    # ----- g_upemb_1 -----
    w1, b1 = fold_bn_convT(params['up1_ct']['w'], params['up1_ct']['b'], params['up1_bn1'])
    hg = conv_transpose1d(hg, w1, b1, 1, 1, 0)                        # (B, 8, g_dim)
    w2, b2 = fold_bn_conv(params['up1_c']['w'], params['up1_c']['b'], params['up1_bn2'])
    hg = conv1d(hg, w2, b2, 1, 1)
    # ----- g_upemb_2 -----
    hg = jnp.transpose(hg, (0, 2, 1))                                 # (B, g_dim, 8)
    w3, b3 = fold_bn_conv(params['up2_c']['w'], params['up2_c']['b'], params['up2_bn'])
    hg = conv1d(hg, w3, b3, 1, 1)                                     # (B, T, 8)
    # ----- g_upemb_list (each block doubles the length) -----
    for blk in params['up_list']:
        wct, bct = fold_bn_convT(blk['ct']['w'], blk['ct']['b'], blk['bn1'])
        hg = conv_transpose1d(hg, wct, bct, 2, 1, 1)
        wc, bc = fold_bn_conv(blk['c']['w'], blk['c']['b'], blk['bn2'])
        hg = conv1d(hg, wc, bc, 1, 1)
    hg = linear(hg, params['up_lin']['w'], params['up_lin']['b'])     # (B, T, N)

    # ----- fuse + decode -----
    memory = src_enc + hg + src_g_out
    dec_out = itransformer_forward(params['decoder'], memory,
                                   cfg['num_heads'], cfg['dec_dim'] // 2, cfg['horizon'])
    return dec_out[cfg['horizon']]                                    # (B, horizon, N)


# ----------------------------------------------------------------------------
# Main
# ----------------------------------------------------------------------------

if __name__ == "__main__":
    cfg = dict(input_dim=1, output_dim=1, num_node=8, model_dim=32, dec_dim=32,
               num_heads=2, num_encoder_layers=1, num_decoder_layers=1, batch_size=2,
               seq_len=8, horizon=4, g_heads=2, g_dim=16, num_g_layers=1,
               g_threshold=0.1)

    B, T, N = cfg['batch_size'], cfg['seq_len'], cfg['num_node']

    key = jax.random.PRNGKey(0)
    k_src, k_adj = jax.random.split(key)
    src = jax.random.normal(k_src, (B, T, N), jnp.float32)

    # deterministic synthetic symmetric adjacency (ring + a few random links)
    rand = jax.random.uniform(k_adj, (N, N), jnp.float32)
    ring = jnp.zeros((N, N), jnp.float32).at[jnp.arange(N), (jnp.arange(N) + 1) % N].set(1.0)
    sym = rand + rand.T
    adj = 0.5 * (ring + ring.T) + 0.3 * sym * (sym > 0.8)
    adj = adj.at[jnp.diag_indices(N)].set(0.0)

    e_dense, kr_dense, mask = calculate_supports(adj, cfg['g_threshold'])
    consts = {'e': e_dense, 'kr': kr_dense, 'mask': mask}
    params = init_params(42, cfg)

    fwd = jax.jit(lambda p, c, s: itpgtn_forward(p, c, s, cfg))
    out = fwd(params, consts, src)
    out = jax.block_until_ready(out)

    assert out.shape == (B, cfg['horizon'], N), out.shape
    assert bool(jnp.all(jnp.isfinite(out)))
    print("KERNEL_OK")
</pallas_src>

<mosaic_0001>
module attributes {stable_mosaic.version = 11 : i64} {
  func.func @k(%arg0: i32, %arg1: memref<8x128xf32, #tpu.memory_space<vmem>>, %arg2: memref<8x128xf32, #tpu.memory_space<vmem>>) attributes {dimension_semantics = [#tpu.dimension_semantics<arbitrary>], iteration_bounds = array<i64: 2>, scalar_prefetch = 0 : i64, scratch_operands = 0 : i64, tpu.core_type = #tpu.core_type<tc>, window_params = [{pipeline_mode = #tpu.pipeline_mode<synchronous>, transform_indices = @transform_0, window_bounds = array<i64: 8, 128>}, {transform_indices = @transform_1, window_bounds = array<i64: 8, 128>}]} {
    %c0 = arith.constant 0 : index
    %c0_0 = arith.constant 0 : index
    %0 = vector.load %arg1[%c0, %c0_0] : memref<8x128xf32, #tpu.memory_space<vmem>>, vector<8x128xf32>
    %c0_1 = arith.constant 0 : index
    %c0_2 = arith.constant 0 : index
    %1 = vector.load %arg2[%c0_1, %c0_2] : memref<8x128xf32, #tpu.memory_space<vmem>>, vector<8x128xf32>
    tpu.vector_store %arg2[%c0_1, %c0_2], %0 {strides = array<i32>} : memref<8x128xf32, #tpu.memory_space<vmem>>, vector<8x128xf32>,
    return
  }
  func.func @transform_0(%arg0: i32) -> (i32, i32) {
    %c0_i32 = arith.constant 0 : i32
    %c0_i32_0 = arith.constant 0 : i32
    %c0_i32_1 = arith.constant 0 : i32
    return %c0_i32, %c0_i32_0 : i32, i32
  }
  func.func @transform_1(%arg0: i32) -> (i32, i32) {
    %c0_i32 = arith.constant 0 : i32
    %c0_i32_0 = arith.constant 0 : i32
    return %arg0, %c0_i32 : i32, i32
  }
}

module attributes {stable_mosaic.version = 11 : i64} {
  func.func @_itrans_layer_kernel(%arg0: i32, %arg1: memref<1x8x32xf32, #tpu.memory_space<vmem>>, %arg2: memref<1x32xf32, #tpu.memory_space<vmem>>, %arg3: memref<1x32xf32, #tpu.memory_space<vmem>>, %arg4: memref<32x32xbf16, #tpu.memory_space<vmem>>, %arg5: memref<32x32xbf16, #tpu.memory_space<vmem>>, %arg6: memref<32x32xbf16, #tpu.memory_space<vmem>>, %arg7: memref<32x32xbf16, #tpu.memory_space<vmem>>, %arg8: memref<1x32xf32, #tpu.memory_space<vmem>>, %arg9: memref<1x32xf32, #tpu.memory_space<vmem>>, %arg10: memref<32x128xbf16, #tpu.memory_space<vmem>>, %arg11: memref<1x128xf32, #tpu.memory_space<vmem>>, %arg12: memref<128x32xbf16, #tpu.memory_space<vmem>>, %arg13: memref<1x32xf32, #tpu.memory_space<vmem>>, %arg14: memref<1x32xf32, #tpu.memory_space<vmem>>, %arg15: memref<1x32xf32, #tpu.memory_space<vmem>>, %arg16: memref<1x8x32xf32, #tpu.memory_space<vmem>>) attributes {dimension_semantics = [#tpu.dimension_semantics<parallel>], iteration_bounds = array<i64: 2>, scalar_prefetch = 0 : i64, scratch_operands = 0 : i64, tpu.core_type = #tpu.core_type<tc>, window_params = [{transform_indices = @transform_0, window_bounds = array<i64: 1, 8, 32>}, {pipeline_mode = #tpu.pipeline_mode<synchronous>, transform_indices = @transform_1, window_bounds = array<i64: 1, 32>}, {pipeline_mode = #tpu.pipeline_mode<synchronous>, transform_indices = @transform_2, window_bounds = array<i64: 1, 32>}, {pipeline_mode = #tpu.pipeline_mode<synchronous>, transform_indices = @transform_3, window_bounds = array<i64: 32, 32>}, {pipeline_mode = #tpu.pipeline_mode<synchronous>, transform_indices = @transform_4, window_bounds = array<i64: 32, 32>}, {pipeline_mode = #tpu.pipeline_mode<synchronous>, transform_indices = @transform_5, window_bounds = array<i64: 32, 32>}, {pipeline_mode = #tpu.pipeline_mode<synchronous>, transform_indices = @transform_6, window_bounds = array<i64: 32, 32>}, {pipeline_mode = #tpu.pipeline_mode<synchronous>, transform_indices = @transform_7, window_bounds = array<i64: 1, 32>}, {pipeline_mode = #tpu.pipeline_mode<synchronous>, transform_indices = @transform_8, window_bounds = array<i64: 1, 32>}, {pipeline_mode = #tpu.pipeline_mode<synchronous>, transform_indices = @transform_9, window_bounds = array<i64: 32, 128>}, {pipeline_mode = #tpu.pipeline_mode<synchronous>, transform_indices = @transform_10, window_bounds = array<i64: 1, 128>}, {pipeline_mode = #tpu.pipeline_mode<synchronous>, transform_indices = @transform_11, window_bounds = array<i64: 128, 32>}, {pipeline_mode = #tpu.pipeline_mode<synchronous>, transform_indices = @transform_12, window_bounds = array<i64: 1, 32>}, {pipeline_mode = #tpu.pipeline_mode<synchronous>, transform_indices = @transform_13, window_bounds = array<i64: 1, 32>}, {pipeline_mode = #tpu.pipeline_mode<synchronous>, transform_indices = @transform_14, window_bounds = array<i64: 1, 32>}, {transform_indices = @transform_15, window_bounds = array<i64: 1, 8, 32>}]} {
    %c0 = arith.constant 0 : index
    %c0_0 = arith.constant 0 : index
    %c0_1 = arith.constant 0 : index
    %0 = vector.load %arg1[%c0, %c0_0, %c0_1] : memref<1x8x32xf32, #tpu.memory_space<vmem>>, vector<1x8x32xf32>
    %1 = vector.shape_cast %0 : vector<1x8x32xf32> to vector<8x32xf32>
    %cst = arith.constant dense<0.000000e+00> : vector<8xf32>
    %2 = vector.multi_reduction <add>, %1, %cst [1] : vector<8x32xf32> to vector<8xf32>
    %3 = vector.shape_cast %2 : vector<8xf32> to vector<8x1xf32>
    %cst_2 = arith.constant 3.200000e+01 : f32
    %4 = vector.broadcast %cst_2 : f32 to vector<8x1xf32>
    %5 = arith.divf %3, %4 : vector<8x1xf32>
    %6 = vector.broadcast %5 : vector<8x1xf32> to vector<8x32xf32>
    %7 = arith.subf %1, %6 : vector<8x32xf32>
    %8 = arith.mulf %7, %7 : vector<8x32xf32>
    %cst_3 = arith.constant dense<0.000000e+00> : vector<8xf32>
    %9 = vector.multi_reduction <add>, %8, %cst_3 [1] : vector<8x32xf32> to vector<8xf32>
    %10 = vector.shape_cast %9 : vector<8xf32> to vector<8x1xf32>
    %cst_4 = arith.constant 3.200000e+01 : f32
    %11 = vector.broadcast %cst_4 : f32 to vector<8x1xf32>
    %12 = arith.divf %10, %11 : vector<8x1xf32>
    %13 = vector.broadcast %5 : vector<8x1xf32> to vector<8x32xf32>
    %14 = arith.subf %1, %13 : vector<8x32xf32>
    %cst_5 = arith.constant 9.99999974E-6 : f32
    %15 = vector.broadcast %cst_5 : f32 to vector<8x1xf32>
    %16 = arith.addf %12, %15 : vector<8x1xf32>
    %17 = math.rsqrt %16 : vector<8x1xf32>
    %18 = vector.broadcast %17 : vector<8x1xf32> to vector<8x32xf32>
    %19 = arith.mulf %14, %18 : vector<8x32xf32>
    %c0_6 = arith.constant 0 : index
    %c0_7 = arith.constant 0 : index
    %20 = vector.load %arg2[%c0_6, %c0_7] : memref<1x32xf32, #tpu.memory_space<vmem>>, vector<1x32xf32>
    %21 = vector.broadcast %20 : vector<1x32xf32> to vector<8x32xf32>
    %22 = arith.mulf %19, %21 : vector<8x32xf32>
    %c0_8 = arith.constant 0 : index
    %c0_9 = arith.constant 0 : index
    %23 = vector.load %arg3[%c0_8, %c0_9] : memref<1x32xf32, #tpu.memory_space<vmem>>, vector<1x32xf32>
    %24 = vector.broadcast %23 : vector<1x32xf32> to vector<8x32xf32>
    %25 = arith.addf %22, %24 : vector<8x32xf32>
    %26 = arith.truncf %25 : vector<8x32xf32> to vector<8x32xbf16>
    %c0_10 = arith.constant 0 : index
    %c0_11 = arith.constant 0 : index
    %27 = vector.load %arg4[%c0_10, %c0_11] : memref<32x32xbf16, #tpu.memory_space<vmem>>, vector<32x32xbf16>
    %cst_12 = arith.constant dense<0.000000e+00> : vector<8x32xf32>
    %28 = tpu.matmul %26, %27, %cst_12 {dimension_numbers = #tpu.dot_dimension_numbers<[1], [0], [0], [1], [0, 0, 1, 1], [], []>} : vector<8x32xbf16>, vector<32x32xbf16>, vector<8x32xf32> -> vector<8x32xf32>
    %c0_13 = arith.constant 0 : index
    %c0_14 = arith.constant 0 : index
    %29 = vector.load %arg5[%c0_13, %c0_14] : memref<32x32xbf16, #tpu.memory_space<vmem>>, vector<32x32xbf16>
    %cst_15 = arith.constant dense<0.000000e+00> : vector<8x32xf32>
    %30 = tpu.matmul %26, %29, %cst_15 {dimension_numbers = #tpu.dot_dimension_numbers<[1], [0], [0], [1], [0, 0, 1, 1], [], []>} : vector<8x32xbf16>, vector<32x32xbf16>, vector<8x32xf32> -> vector<8x32xf32>
    %c0_16 = arith.constant 0 : index
    %c0_17 = arith.constant 0 : index
    %31 = vector.load %arg6[%c0_16, %c0_17] : memref<32x32xbf16, #tpu.memory_space<vmem>>, vector<32x32xbf16>
    %cst_18 = arith.constant dense<0.000000e+00> : vector<8x32xf32>
    %32 = tpu.matmul %26, %31, %cst_18 {dimension_numbers = #tpu.dot_dimension_numbers<[1], [0], [0], [1], [0, 0, 1, 1], [], []>} : vector<8x32xbf16>, vector<32x32xbf16>, vector<8x32xf32> -> vector<8x32xf32>
    %33 = vector.extract_strided_slice %28 {offsets = [0, 0], sizes = [8, 16], strides = [1, 1]} : vector<8x32xf32> to vector<8x16xf32>
    %34 = arith.truncf %33 : vector<8x16xf32> to vector<8x16xbf16>
    %35 = vector.extract_strided_slice %30 {offsets = [0, 0], sizes = [8, 16], strides = [1, 1]} : vector<8x32xf32> to vector<8x16xf32>
    %36 = arith.truncf %35 : vector<8x16xf32> to vector<8x16xbf16>
    %37 = vector.extract_strided_slice %32 {offsets = [0, 0], sizes = [8, 16], strides = [1, 1]} : vector<8x32xf32> to vector<8x16xf32>
    %38 = arith.truncf %37 : vector<8x16xf32> to vector<8x16xbf16>
    %cst_19 = arith.constant dense<0.000000e+00> : vector<8x8xf32>
    %39 = tpu.matmul %34, %36, %cst_19 {dimension_numbers = #tpu.dot_dimension_numbers<[1], [1], [0], [0], [0, 0, 1, 0], [], []>} : vector<8x16xbf16>, vector<8x16xbf16>, vector<8x8xf32> -> vector<8x8xf32>
    %cst_20 = arith.constant 2.500000e-01 : f32
    %40 = vector.broadcast %cst_20 : f32 to vector<8x8xf32>
    %41 = arith.mulf %39, %40 : vector<8x8xf32>
    %cst_21 = arith.constant dense<0xFF800000> : vector<8xf32>
    %42 = vector.multi_reduction <maximumf>, %41, %cst_21 [1] : vector<8x8xf32> to vector<8xf32>
    %43 = vector.shape_cast %42 : vector<8xf32> to vector<8x1xf32>
    %44 = vector.broadcast %43 : vector<8x1xf32> to vector<8x8xf32>
    %45 = arith.subf %41, %44 : vector<8x8xf32>
    %46 = math.exp %45 : vector<8x8xf32>
    %cst_22 = arith.constant dense<0.000000e+00> : vector<8xf32>
    %47 = vector.multi_reduction <add>, %46, %cst_22 [1] : vector<8x8xf32> to vector<8xf32>
    %48 = vector.shape_cast %47 : vector<8xf32> to vector<8x1xf32>
    %49 = tpu.reciprocal %48 {approx = true} : vector<8x1xf32> -> vector<8x1xf32>
    %50 = vector.broadcast %49 : vector<8x1xf32> to vector<8x8xf32>
    %51 = arith.mulf %46, %50 : vector<8x8xf32>
    %52 = arith.truncf %51 : vector<8x8xf32> to vector<8x8xbf16>
    %cst_23 = arith.constant dense<0.000000e+00> : vector<8x16xf32>
    %53 = tpu.matmul %52, %38, %cst_23 {dimension_numbers = #tpu.dot_dimension_numbers<[1], [0], [0], [1], [0, 0, 1, 1], [], []>} : vector<8x8xbf16>, vector<8x16xbf16>, vector<8x16xf32> -> vector<8x16xf32>
    %54 = vector.extract_strided_slice %28 {offsets = [0, 16], sizes = [8, 16], strides = [1, 1]} : vector<8x32xf32> to vector<8x16xf32>
    %55 = arith.truncf %54 : vector<8x16xf32> to vector<8x16xbf16>
    %56 = vector.extract_strided_slice %30 {offsets = [0, 16], sizes = [8, 16], strides = [1, 1]} : vector<8x32xf32> to vector<8x16xf32>
    %57 = arith.truncf %56 : vector<8x16xf32> to vector<8x16xbf16>
    %58 = vector.extract_strided_slice %32 {offsets = [0, 16], sizes = [8, 16], strides = [1, 1]} : vector<8x32xf32> to vector<8x16xf32>
    %59 = arith.truncf %58 : vector<8x16xf32> to vector<8x16xbf16>
    %cst_24 = arith.constant dense<0.000000e+00> : vector<8x8xf32>
    %60 = tpu.matmul %55, %57, %cst_24 {dimension_numbers = #tpu.dot_dimension_numbers<[1], [1], [0], [0], [0, 0, 1, 0], [], []>} : vector<8x16xbf16>, vector<8x16xbf16>, vector<8x8xf32> -> vector<8x8xf32>
    %cst_25 = arith.constant 2.500000e-01 : f32
    %61 = vector.broadcast %cst_25 : f32 to vector<8x8xf32>
    %62 = arith.mulf %60, %61 : vector<8x8xf32>
    %cst_26 = arith.constant dense<0xFF800000> : vector<8xf32>
    %63 = vector.multi_reduction <maximumf>, %62, %cst_26 [1] : vector<8x8xf32> to vector<8xf32>
    %64 = vector.shape_cast %63 : vector<8xf32> to vector<8x1xf32>
    %65 = vector.broadcast %64 : vector<8x1xf32> to vector<8x8xf32>
    %66 = arith.subf %62, %65 : vector<8x8xf32>
    %67 = math.exp %66 : vector<8x8xf32>
    %cst_27 = arith.constant dense<0.000000e+00> : vector<8xf32>
    %68 = vector.multi_reduction <add>, %67, %cst_27 [1] : vector<8x8xf32> to vector<8xf32>
    %69 = vector.shape_cast %68 : vector<8xf32> to vector<8x1xf32>
    %70 = tpu.reciprocal %69 {approx = true} : vector<8x1xf32> -> vector<8x1xf32>
    %71 = vector.broadcast %70 : vector<8x1xf32> to vector<8x8xf32>
    %72 = arith.mulf %67, %71 : vector<8x8xf32>
    %73 = arith.truncf %72 : vector<8x8xf32> to vector<8x8xbf16>
    %cst_28 = arith.constant dense<0.000000e+00> : vector<8x16xf32>
    %74 = tpu.matmul %73, %59, %cst_28 {dimension_numbers = #tpu.dot_dimension_numbers<[1], [0], [0], [1], [0, 0, 1, 1], [], []>} : vector<8x8xbf16>, vector<8x16xbf16>, vector<8x16xf32> -> vector<8x16xf32>
    %75 = tpu.concatenate %53, %74 in 1 : vector<8x16xf32>, vector<8x16xf32> -> vector<8x32xf32>
    %76 = arith.truncf %75 : vector<8x32xf32> to vector<8x32xbf16>
    %c0_29 = arith.constant 0 : index
    %c0_30 = arith.constant 0 : index
    %77 = vector.load %arg7[%c0_29, %c0_30] : memref<32x32xbf16, #tpu.memory_space<vmem>>, vector<32x32xbf16>
    %cst_31 = arith.constant dense<0.000000e+00> : vector<8x32xf32>
    %78 = tpu.matmul %76, %77, %cst_31 {dimension_numbers = #tpu.dot_dimension_numbers<[1], [0], [0], [1], [0, 0, 1, 1], [], []>} : vector<8x32xbf16>, vector<32x32xbf16>, vector<8x32xf32> -> vector<8x32xf32>
    %79 = arith.addf %1, %78 : vector<8x32xf32>
    %cst_32 = arith.constant dense<0.000000e+00> : vector<8xf32>
    %80 = vector.multi_reduction <add>, %79, %cst_32 [1] : vector<8x32xf32> to vector<8xf32>
    %81 = vector.shape_cast %80 : vector<8xf32> to vector<8x1xf32>
    %cst_33 = arith.constant 3.200000e+01 : f32
    %82 = vector.broadcast %cst_33 : f32 to vector<8x1xf32>
    %83 = arith.divf %81, %82 : vector<8x1xf32>
    %84 = vector.broadcast %83 : vector<8x1xf32> to vector<8x32xf32>
    %85 = arith.subf %79, %84 : vector<8x32xf32>
    %86 = arith.mulf %85, %85 : vector<8x32xf32>
    %cst_34 = arith.constant dense<0.000000e+00> : vector<8xf32>
    %87 = vector.multi_reduction <add>, %86, %cst_34 [1] : vector<8x32xf32> to vector<8xf32>
    %88 = vector.shape_cast %87 : vector<8xf32> to vector<8x1xf32>
    %cst_35 = arith.constant 3.200000e+01 : f32
    %89 = vector.broadcast %cst_35 : f32 to vector<8x1xf32>
    %90 = arith.divf %88, %89 : vector<8x1xf32>
    %91 = vector.broadcast %83 : vector<8x1xf32> to vector<8x32xf32>
    %92 = arith.subf %79, %91 : vector<8x32xf32>
    %cst_36 = arith.constant 9.99999974E-6 : f32
    %93 = vector.broadcast %cst_36 : f32 to vector<8x1xf32>
    %94 = arith.addf %90, %93 : vector<8x1xf32>
    %95 = math.rsqrt %94 : vector<8x1xf32>
    %96 = vector.broadcast %95 : vector<8x1xf32> to vector<8x32xf32>
    %97 = arith.mulf %92, %96 : vector<8x32xf32>
    %c0_37 = arith.constant 0 : index
    %c0_38 = arith.constant 0 : index
    %98 = vector.load %arg8[%c0_37, %c0_38] : memref<1x32xf32, #tpu.memory_space<vmem>>, vector<1x32xf32>
    %99 = vector.broadcast %98 : vector<1x32xf32> to vector<8x32xf32>
    %100 = arith.mulf %97, %99 : vector<8x32xf32>
    %c0_39 = arith.constant 0 : index
    %c0_40 = arith.constant 0 : index
    %101 = vector.load %arg9[%c0_39, %c0_40] : memref<1x32xf32, #tpu.memory_space<vmem>>, vector<1x32xf32>
    %102 = vector.broadcast %101 : vector<1x32xf32> to vector<8x32xf32>
    %103 = arith.addf %100, %102 : vector<8x32xf32>
    %104 = arith.truncf %103 : vector<8x32xf32> to vector<8x32xbf16>
    %c0_41 = arith.constant 0 : index
    %c0_42 = arith.constant 0 : index
    %105 = vector.load %arg10[%c0_41, %c0_42] : memref<32x128xbf16, #tpu.memory_space<vmem>>, vector<32x128xbf16>
    %cst_43 = arith.constant dense<0.000000e+00> : vector<8x128xf32>
    %106 = tpu.matmul %104, %105, %cst_43 {dimension_numbers = #tpu.dot_dimension_numbers<[1], [0], [0], [1], [0, 0, 1, 1], [], []>} : vector<8x32xbf16>, vector<32x128xbf16>, vector<8x128xf32> -> vector<8x128xf32>
    %c0_44 = arith.constant 0 : index
    %c0_45 = arith.constant 0 : index
    %107 = vector.load %arg11[%c0_44, %c0_45] : memref<1x128xf32, #tpu.memory_space<vmem>>, vector<1x128xf32>
    %108 = vector.broadcast %107 : vector<1x128xf32> to vector<8x128xf32>
    %109 = arith.addf %106, %108 : vector<8x128xf32>
    %110 = arith.mulf %109, %109 : vector<8x128xf32>
    %111 = arith.mulf %109, %110 : vector<8x128xf32>
    %cst_46 = arith.constant 4.471500e-02 : f32
    %112 = vector.broadcast %cst_46 : f32 to vector<8x128xf32>
    %113 = arith.mulf %112, %111 : vector<8x128xf32>
    %114 = arith.addf %109, %113 : vector<8x128xf32>
    %cst_47 = arith.constant 0.797884583 : f32
    %115 = vector.broadcast %cst_47 : f32 to vector<8x128xf32>
    %116 = arith.mulf %115, %114 : vector<8x128xf32>
    %117 = math.tanh %116 : vector<8x128xf32>
    %cst_48 = arith.constant 1.000000e+00 : f32
    %118 = vector.broadcast %cst_48 : f32 to vector<8x128xf32>
    %119 = arith.addf %118, %117 : vector<8x128xf32>
    %cst_49 = arith.constant 5.000000e-01 : f32
    %120 = vector.broadcast %cst_49 : f32 to vector<8x128xf32>
    %121 = arith.mulf %120, %119 : vector<8x128xf32>
    %122 = arith.mulf %109, %121 : vector<8x128xf32>
    %123 = arith.truncf %122 : vector<8x128xf32> to vector<8x128xbf16>
    %c0_50 = arith.constant 0 : index
    %c0_51 = arith.constant 0 : index
    %124 = vector.load %arg12[%c0_50, %c0_51] : memref<128x32xbf16, #tpu.memory_space<vmem>>, vector<128x32xbf16>
    %cst_52 = arith.constant dense<0.000000e+00> : vector<8x32xf32>
    %125 = tpu.matmul %123, %124, %cst_52 {dimension_numbers = #tpu.dot_dimension_numbers<[1], [0], [0], [1], [0, 0, 1, 1], [], []>} : vector<8x128xbf16>, vector<128x32xbf16>, vector<8x32xf32> -> vector<8x32xf32>
    %c0_53 = arith.constant 0 : index
    %c0_54 = arith.constant 0 : index
    %126 = vector.load %arg13[%c0_53, %c0_54] : memref<1x32xf32, #tpu.memory_space<vmem>>, vector<1x32xf32>
    %127 = vector.broadcast %126 : vector<1x32xf32> to vector<8x32xf32>
    %128 = arith.addf %125, %127 : vector<8x32xf32>
    %129 = arith.addf %103, %128 : vector<8x32xf32>
    %cst_55 = arith.constant dense<0.000000e+00> : vector<8xf32>
    %130 = vector.multi_reduction <add>, %129, %cst_55 [1] : vector<8x32xf32> to vector<8xf32>
    %131 = vector.shape_cast %130 : vector<8xf32> to vector<8x1xf32>
    %cst_56 = arith.constant 3.200000e+01 : f32
    %132 = vector.broadcast %cst_56 : f32 to vector<8x1xf32>
    %133 = arith.divf %131, %132 : vector<8x1xf32>
    %134 = vector.broadcast %133 : vector<8x1xf32> to vector<8x32xf32>
    %135 = arith.subf %129, %134 : vector<8x32xf32>
    %136 = arith.mulf %135, %135 : vector<8x32xf32>
    %cst_57 = arith.constant dense<0.000000e+00> : vector<8xf32>
    %137 = vector.multi_reduction <add>, %136, %cst_57 [1] : vector<8x32xf32> to vector<8xf32>
    %138 = vector.shape_cast %137 : vector<8xf32> to vector<8x1xf32>
    %cst_58 = arith.constant 3.200000e+01 : f32
    %139 = vector.broadcast %cst_58 : f32 to vector<8x1xf32>
    %140 = arith.divf %138, %139 : vector<8x1xf32>
    %141 = vector.broadcast %133 : vector<8x1xf32> to vector<8x32xf32>
    %142 = arith.subf %129, %141 : vector<8x32xf32>
    %cst_59 = arith.constant 9.99999974E-6 : f32
    %143 = vector.broadcast %cst_59 : f32 to vector<8x1xf32>
    %144 = arith.addf %140, %143 : vector<8x1xf32>
    %145 = math.rsqrt %144 : vector<8x1xf32>
    %146 = vector.broadcast %145 : vector<8x1xf32> to vector<8x32xf32>
    %147 = arith.mulf %142, %146 : vector<8x32xf32>
    %c0_60 = arith.constant 0 : index
    %c0_61 = arith.constant 0 : index
    %148 = vector.load %arg14[%c0_60, %c0_61] : memref<1x32xf32, #tpu.memory_space<vmem>>, vector<1x32xf32>
    %149 = vector.broadcast %148 : vector<1x32xf32> to vector<8x32xf32>
    %150 = arith.mulf %147, %149 : vector<8x32xf32>
    %c0_62 = arith.constant 0 : index
    %c0_63 = arith.constant 0 : index
    %151 = vector.load %arg15[%c0_62, %c0_63] : memref<1x32xf32, #tpu.memory_space<vmem>>, vector<1x32xf32>
    %152 = vector.broadcast %151 : vector<1x32xf32> to vector<8x32xf32>
    %153 = arith.addf %150, %152 : vector<8x32xf32>
    %c0_64 = arith.constant 0 : index
    %c0_65 = arith.constant 0 : index
    %c0_66 = arith.constant 0 : index
    %154 = vector.load %arg16[%c0_64, %c0_65, %c0_66] : memref<1x8x32xf32, #tpu.memory_space<vmem>>, vector<1x8x32xf32>
    %155 = vector.shape_cast %154 : vector<1x8x32xf32> to vector<8x32xf32>
    %156 = vector.shape_cast %153 : vector<8x32xf32> to vector<1x8x32xf32>
    tpu.vector_store %arg16[%c0_64, %c0_65, %c0_66], %156 {strides = array<i32>} : memref<1x8x32xf32, #tpu.memory_space<vmem>>, vector<1x8x32xf32>,
    return
  }
  func.func @transform_0(%arg0: i32) -> (i32, i32, i32) {
    %c0_i32 = arith.constant 0 : i32
    %c0_i32_0 = arith.constant 0 : i32
    %c0_i32_1 = arith.constant 0 : i32
    return %arg0, %c0_i32, %c0_i32_0 : i32, i32, i32
  }
  func.func @transform_1(%arg0: i32) -> (i32, i32) {
    %c0_i32 = arith.constant 0 : i32
    %c0_i32_0 = arith.constant 0 : i32
    %c0_i32_1 = arith.constant 0 : i32
    return %c0_i32, %c0_i32_0 : i32, i32
  }
  func.func @transform_2(%arg0: i32) -> (i32, i32) {
    %c0_i32 = arith.constant 0 : i32
    %c0_i32_0 = arith.constant 0 : i32
    %c0_i32_1 = arith.constant 0 : i32
    return %c0_i32, %c0_i32_0 : i32, i32
  }
  func.func @transform_3(%arg0: i32) -> (i32, i32) {
    %c0_i32 = arith.constant 0 : i32
    %c0_i32_0 = arith.constant 0 : i32
    %c0_i32_1 = arith.constant 0 : i32
    return %c0_i32, %c0_i32_0 : i32, i32
  }
  func.func @transform_4(%arg0: i32) -> (i32, i32) {
    %c0_i32 = arith.constant 0 : i32
    %c0_i32_0 = arith.constant 0 : i32
    %c0_i32_1 = arith.constant 0 : i32
    return %c0_i32, %c0_i32_0 : i32, i32
  }
  func.func @transform_5(%arg0: i32) -> (i32, i32) {
    %c0_i32 = arith.constant 0 : i32
    %c0_i32_0 = arith.constant 0 : i32
    %c0_i32_1 = arith.constant 0 : i32
    return %c0_i32, %c0_i32_0 : i32, i32
  }
  func.func @transform_6(%arg0: i32) -> (i32, i32) {
    %c0_i32 = arith.constant 0 : i32
    %c0_i32_0 = arith.constant 0 : i32
    %c0_i32_1 = arith.constant 0 : i32
    return %c0_i32, %c0_i32_0 : i32, i32
  }
  func.func @transform_7(%arg0: i32) -> (i32, i32) {
    %c0_i32 = arith.constant 0 : i32
    %c0_i32_0 = arith.constant 0 : i32
    %c0_i32_1 = arith.constant 0 : i32
    return %c0_i32, %c0_i32_0 : i32, i32
  }
  func.func @transform_8(%arg0: i32) -> (i32, i32) {
    %c0_i32 = arith.constant 0 : i32
    %c0_i32_0 = arith.constant 0 : i32
    %c0_i32_1 = arith.constant 0 : i32
    return %c0_i32, %c0_i32_0 : i32, i32
  }
  func.func @transform_9(%arg0: i32) -> (i32, i32) {
    %c0_i32 = arith.constant 0 : i32
    %c0_i32_0 = arith.constant 0 : i32
    %c0_i32_1 = arith.constant 0 : i32
    return %c0_i32, %c0_i32_0 : i32, i32
  }
  func.func @transform_10(%arg0: i32) -> (i32, i32) {
    %c0_i32 = arith.constant 0 : i32
    %c0_i32_0 = arith.constant 0 : i32
    %c0_i32_1 = arith.constant 0 : i32
    return %c0_i32, %c0_i32_0 : i32, i32
  }
  func.func @transform_11(%arg0: i32) -> (i32, i32) {
    %c0_i32 = arith.constant 0 : i32
    %c0_i32_0 = arith.constant 0 : i32
    %c0_i32_1 = arith.constant 0 : i32
    return %c0_i32, %c0_i32_0 : i32, i32
  }
  func.func @transform_12(%arg0: i32) -> (i32, i32) {
    %c0_i32 = arith.constant 0 : i32
    %c0_i32_0 = arith.constant 0 : i32
    %c0_i32_1 = arith.constant 0 : i32
    return %c0_i32, %c0_i32_0 : i32, i32
  }
  func.func @transform_13(%arg0: i32) -> (i32, i32) {
    %c0_i32 = arith.constant 0 : i32
    %c0_i32_0 = arith.constant 0 : i32
    %c0_i32_1 = arith.constant 0 : i32
    return %c0_i32, %c0_i32_0 : i32, i32
  }
  func.func @transform_14(%arg0: i32) -> (i32, i32) {
    %c0_i32 = arith.constant 0 : i32
    %c0_i32_0 = arith.constant 0 : i32
    %c0_i32_1 = arith.constant 0 : i32
    return %c0_i32, %c0_i32_0 : i32, i32
  }
  func.func @transform_15(%arg0: i32) -> (i32, i32, i32) {
    %c0_i32 = arith.constant 0 : i32
    %c0_i32_0 = arith.constant 0 : i32
    %c0_i32_1 = arith.constant 0 : i32
    return %arg0, %c0_i32, %c0_i32_0 : i32, i32, i32
  }
}

module attributes {stable_mosaic.version = 11 : i64} {
  func.func @_mm_bias_ln_kernel(%arg0: memref<16x8xbf16, #tpu.memory_space<vmem>>, %arg1: memref<8x32xbf16, #tpu.memory_space<vmem>>, %arg2: memref<1x32xf32, #tpu.memory_space<vmem>>, %arg3: memref<1x32xf32, #tpu.memory_space<vmem>>, %arg4: memref<1x32xf32, #tpu.memory_space<vmem>>, %arg5: memref<16x32xf32, #tpu.memory_space<vmem>>) attributes {dimension_semantics = [], scalar_prefetch = 0 : i64, scratch_operands = 0 : i64, tpu.core_type = #tpu.core_type<tc>} {
    %c0 = arith.constant 0 : index
    %c0_0 = arith.constant 0 : index
    %0 = vector.load %arg0[%c0, %c0_0] : memref<16x8xbf16, #tpu.memory_space<vmem>>, vector<16x8xbf16>
    %c0_1 = arith.constant 0 : index
    %c0_2 = arith.constant 0 : index
    %1 = vector.load %arg1[%c0_1, %c0_2] : memref<8x32xbf16, #tpu.memory_space<vmem>>, vector<8x32xbf16>
    %cst = arith.constant dense<0.000000e+00> : vector<16x32xf32>
    %2 = tpu.matmul %0, %1, %cst {dimension_numbers = #tpu.dot_dimension_numbers<[1], [0], [0], [1], [0, 0, 1, 1], [], []>} : vector<16x8xbf16>, vector<8x32xbf16>, vector<16x32xf32> -> vector<16x32xf32>
    %c0_3 = arith.constant 0 : index
    %c0_4 = arith.constant 0 : index
    %3 = vector.load %arg2[%c0_3, %c0_4] : memref<1x32xf32, #tpu.memory_space<vmem>>, vector<1x32xf32>
    %4 = vector.broadcast %3 : vector<1x32xf32> to vector<16x32xf32>
    %5 = arith.addf %2, %4 : vector<16x32xf32>
    %cst_5 = arith.constant dense<0.000000e+00> : vector<16xf32>
    %6 = vector.multi_reduction <add>, %5, %cst_5 [1] : vector<16x32xf32> to vector<16xf32>
    %7 = vector.shape_cast %6 : vector<16xf32> to vector<16x1xf32>
    %cst_6 = arith.constant 3.200000e+01 : f32
    %8 = vector.broadcast %cst_6 : f32 to vector<16x1xf32>
    %9 = arith.divf %7, %8 : vector<16x1xf32>
    %10 = vector.broadcast %9 : vector<16x1xf32> to vector<16x32xf32>
    %11 = arith.subf %5, %10 : vector<16x32xf32>
    %12 = arith.mulf %11, %11 : vector<16x32xf32>
    %cst_7 = arith.constant dense<0.000000e+00> : vector<16xf32>
    %13 = vector.multi_reduction <add>, %12, %cst_7 [1] : vector<16x32xf32> to vector<16xf32>
    %14 = vector.shape_cast %13 : vector<16xf32> to vector<16x1xf32>
    %cst_8 = arith.constant 3.200000e+01 : f32
    %15 = vector.broadcast %cst_8 : f32 to vector<16x1xf32>
    %16 = arith.divf %14, %15 : vector<16x1xf32>
    %17 = vector.broadcast %9 : vector<16x1xf32> to vector<16x32xf32>
    %18 = arith.subf %5, %17 : vector<16x32xf32>
    %cst_9 = arith.constant 9.99999974E-6 : f32
    %19 = vector.broadcast %cst_9 : f32 to vector<16x1xf32>
    %20 = arith.addf %16, %19 : vector<16x1xf32>
    %21 = math.rsqrt %20 : vector<16x1xf32>
    %22 = vector.broadcast %21 : vector<16x1xf32> to vector<16x32xf32>
    %23 = arith.mulf %18, %22 : vector<16x32xf32>
    %c0_10 = arith.constant 0 : index
    %c0_11 = arith.constant 0 : index
    %24 = vector.load %arg3[%c0_10, %c0_11] : memref<1x32xf32, #tpu.memory_space<vmem>>, vector<1x32xf32>
    %25 = vector.broadcast %24 : vector<1x32xf32> to vector<16x32xf32>
    %26 = arith.mulf %23, %25 : vector<16x32xf32>
    %c0_12 = arith.constant 0 : index
    %c0_13 = arith.constant 0 : index
    %27 = vector.load %arg4[%c0_12, %c0_13] : memref<1x32xf32, #tpu.memory_space<vmem>>, vector<1x32xf32>
    %28 = vector.broadcast %27 : vector<1x32xf32> to vector<16x32xf32>
    %29 = arith.addf %26, %28 : vector<16x32xf32>
    %c0_14 = arith.constant 0 : index
    %c0_15 = arith.constant 0 : index
    %30 = vector.load %arg5[%c0_14, %c0_15] : memref<16x32xf32, #tpu.memory_space<vmem>>, vector<16x32xf32>
    tpu.vector_store %arg5[%c0_14, %c0_15], %29 {strides = array<i32>} : memref<16x32xf32, #tpu.memory_space<vmem>>, vector<16x32xf32>,
    return
  }
}

module attributes {stable_mosaic.version = 11 : i64} {
  func.func @_gt_layer_kernel(%arg0: i32, %arg1: memref<1x8x16xf32, #tpu.memory_space<vmem>>, %arg2: memref<1x8x8x16xf32, #tpu.memory_space<vmem>>, %arg3: memref<1x8x8x16xf32, #tpu.memory_space<vmem>>, %arg4: memref<8x8xf32, #tpu.memory_space<vmem>>, %arg5: memref<16x16xbf16, #tpu.memory_space<vmem>>, %arg6: memref<1x16xf32, #tpu.memory_space<vmem>>, %arg7: memref<16x16xbf16, #tpu.memory_space<vmem>>, %arg8: memref<1x16xf32, #tpu.memory_space<vmem>>, %arg9: memref<16x16xbf16, #tpu.memory_space<vmem>>, %arg10: memref<1x16xf32, #tpu.memory_space<vmem>>, %arg11: memref<16x16xbf16, #tpu.memory_space<vmem>>, %arg12: memref<1x16xf32, #tpu.memory_space<vmem>>, %arg13: memref<16x16xbf16, #tpu.memory_space<vmem>>, %arg14: memref<1x16xf32, #tpu.memory_space<vmem>>, %arg15: memref<16x16xbf16, #tpu.memory_space<vmem>>, %arg16: memref<1x16xf32, #tpu.memory_space<vmem>>, %arg17: memref<16x16xbf16, #tpu.memory_space<vmem>>, %arg18: memref<1x16xf32, #tpu.memory_space<vmem>>, %arg19: memref<1x16xf32, #tpu.memory_space<vmem>>, %arg20: memref<1x16xf32, #tpu.memory_space<vmem>>, %arg21: memref<1x16xf32, #tpu.memory_space<vmem>>, %arg22: memref<1x16xf32, #tpu.memory_space<vmem>>, %arg23: memref<16x32xbf16, #tpu.memory_space<vmem>>, %arg24: memref<1x32xf32, #tpu.memory_space<vmem>>, %arg25: memref<32x16xbf16, #tpu.memory_space<vmem>>, %arg26: memref<1x16xf32, #tpu.memory_space<vmem>>, %arg27: memref<16x32xbf16, #tpu.memory_space<vmem>>, %arg28: memref<1x32xf32, #tpu.memory_space<vmem>>, %arg29: memref<32x16xbf16, #tpu.memory_space<vmem>>, %arg30: memref<1x16xf32, #tpu.memory_space<vmem>>, %arg31: memref<1x16xf32, #tpu.memory_space<vmem>>, %arg32: memref<1x16xf32, #tpu.memory_space<vmem>>, %arg33: memref<1x16xf32, #tpu.memory_space<vmem>>, %arg34: memref<1x16xf32, #tpu.memory_space<vmem>>, %arg35: memref<1x8x16xf32, #tpu.memory_space<vmem>>, %arg36: memref<1x8x8x16xf32, #tpu.memory_space<vmem>>) attributes {dimension_semantics = [#tpu.dimension_semantics<parallel>], iteration_bounds = array<i64: 2>, scalar_prefetch = 0 : i64, scratch_operands = 0 : i64, tpu.core_type = #tpu.core_type<tc>, window_params = [{transform_indices = @transform_0, window_bounds = array<i64: 1, 8, 16>}, {transform_indices = @transform_1, window_bounds = array<i64: 1, 8, 8, 16>}, {transform_indices = @transform_2, window_bounds = array<i64: 1, 8, 8, 16>}, {pipeline_mode = #tpu.pipeline_mode<synchronous>, transform_indices = @transform_3, window_bounds = array<i64: 8, 8>}, {pipeline_mode = #tpu.pipeline_mode<synchronous>, transform_indices = @transform_4, window_bounds = array<i64: 16, 16>}, {pipeline_mode = #tpu.pipeline_mode<synchronous>, transform_indices = @transform_5, window_bounds = array<i64: 1, 16>}, {pipeline_mode = #tpu.pipeline_mode<synchronous>, transform_indices = @transform_6, window_bounds = array<i64: 16, 16>}, {pipeline_mode = #tpu.pipeline_mode<synchronous>, transform_indices = @transform_7, window_bounds = array<i64: 1, 16>}, {pipeline_mode = #tpu.pipeline_mode<synchronous>, transform_indices = @transform_8, window_bounds = array<i64: 16, 16>}, {pipeline_mode = #tpu.pipeline_mode<synchronous>, transform_indices = @transform_9, window_bounds = array<i64: 1, 16>}, {pipeline_mode = #tpu.pipeline_mode<synchronous>, transform_indices = @transform_10, window_bounds = array<i64: 16, 16>}, {pipeline_mode = #tpu.pipeline_mode<synchronous>, transform_indices = @transform_11, window_bounds = array<i64: 1, 16>}, {pipeline_mode = #tpu.pipeline_mode<synchronous>, transform_indices = @transform_12, window_bounds = array<i64: 16, 16>}, {pipeline_mode = #tpu.pipeline_mode<synchronous>, transform_indices = @transform_13, window_bounds = array<i64: 1, 16>}, {pipeline_mode = #tpu.pipeline_mode<synchronous>, transform_indices = @transform_14, window_bounds = array<i64: 16, 16>}, {pipeline_mode = #tpu.pipeline_mode<synchronous>, transform_indices = @transform_15, window_bounds = array<i64: 1, 16>}, {pipeline_mode = #tpu.pipeline_mode<synchronous>, transform_indices = @transform_16, window_bounds = array<i64: 16, 16>}, {pipeline_mode = #tpu.pipeline_mode<synchronous>, transform_indices = @transform_17, window_bounds = array<i64: 1, 16>}, {pipeline_mode = #tpu.pipeline_mode<synchronous>, transform_indices = @transform_18, window_bounds = array<i64: 1, 16>}, {pipeline_mode = #tpu.pipeline_mode<synchronous>, transform_indices = @transform_19, window_bounds = array<i64: 1, 16>}, {pipeline_mode = #tpu.pipeline_mode<synchronous>, transform_indices = @transform_20, window_bounds = array<i64: 1, 16>}, {pipeline_mode = #tpu.pipeline_mode<synchronous>, transform_indices = @transform_21, window_bounds = array<i64: 1, 16>}, {pipeline_mode = #tpu.pipeline_mode<synchronous>, transform_indices = @transform_22, window_bounds = array<i64: 16, 32>}, {pipeline_mode = #tpu.pipeline_mode<synchronous>, transform_indices = @transform_23, window_bounds = array<i64: 1, 32>}, {pipeline_mode = #tpu.pipeline_mode<synchronous>, transform_indices = @transform_24, window_bounds = array<i64: 32, 16>}, {pipeline_mode = #tpu.pipeline_mode<synchronous>, transform_indices = @transform_25, window_bounds = array<i64: 1, 16>}, {pipeline_mode = #tpu.pipeline_mode<synchronous>, transform_indices = @transform_26, window_bounds = array<i64: 16, 32>}, {pipeline_mode = #tpu.pipeline_mode<synchronous>, transform_indices = @transform_27, window_bounds = array<i64: 1, 32>}, {pipeline_mode = #tpu.pipeline_mode<synchronous>, transform_indices = @transform_28, window_bounds = array<i64: 32, 16>}, {pipeline_mode = #tpu.pipeline_mode<synchronous>, transform_indices = @transform_29, window_bounds = array<i64: 1, 16>}, {pipeline_mode = #tpu.pipeline_mode<synchronous>, transform_indices = @transform_30, window_bounds = array<i64: 1, 16>}, {pipeline_mode = #tpu.pipeline_mode<synchronous>, transform_indices = @transform_31, window_bounds = array<i64: 1, 16>}, {pipeline_mode = #tpu.pipeline_mode<synchronous>, transform_indices = @transform_32, window_bounds = array<i64: 1, 16>}, {pipeline_mode = #tpu.pipeline_mode<synchronous>, transform_indices = @transform_33, window_bounds = array<i64: 1, 16>}, {transform_indices = @transform_34, window_bounds = array<i64: 1, 8, 16>}, {transform_indices = @transform_35, window_bounds = array<i64: 1, 8, 8, 16>}]} {
    %c0 = arith.constant 0 : index
    %c0_0 = arith.constant 0 : index
    %c0_1 = arith.constant 0 : index
    %0 = vector.load %arg1[%c0, %c0_0, %c0_1] : memref<1x8x16xf32, #tpu.memory_space<vmem>>, vector<1x8x16xf32>
    %1 = vector.shape_cast %0 : vector<1x8x16xf32> to vector<8x16xf32>
    %c0_2 = arith.constant 0 : index
    %c0_3 = arith.constant 0 : index
    %c0_4 = arith.constant 0 : index
    %c0_5 = arith.constant 0 : index
    %2 = vector.load %arg2[%c0_2, %c0_3, %c0_4, %c0_5] : memref<1x8x8x16xf32, #tpu.memory_space<vmem>>, vector<1x8x8x16xf32>
    %3 = vector.shape_cast %2 : vector<1x8x8x16xf32> to vector<8x8x16xf32>
    %4 = vector.shape_cast %3 : vector<8x8x16xf32> to vector<64x16xf32>
    %c0_6 = arith.constant 0 : index
    %c0_7 = arith.constant 0 : index
    %c0_8 = arith.constant 0 : index
    %c0_9 = arith.constant 0 : index
    %5 = vector.load %arg3[%c0_6, %c0_7, %c0_8, %c0_9] : memref<1x8x8x16xf32, #tpu.memory_space<vmem>>, vector<1x8x8x16xf32>
    %6 = vector.shape_cast %5 : vector<1x8x8x16xf32> to vector<8x8x16xf32>
    %7 = vector.shape_cast %6 : vector<8x8x16xf32> to vector<64x16xf32>
    %c0_10 = arith.constant 0 : index
    %c0_11 = arith.constant 0 : index
    %8 = vector.load %arg4[%c0_10, %c0_11] : memref<8x8xf32, #tpu.memory_space<vmem>>, vector<8x8xf32>
    %9 = arith.truncf %1 : vector<8x16xf32> to vector<8x16xbf16>
    %c0_12 = arith.constant 0 : index
    %c0_13 = arith.constant 0 : index
    %10 = vector.load %arg5[%c0_12, %c0_13] : memref<16x16xbf16, #tpu.memory_space<vmem>>, vector<16x16xbf16>
    %cst = arith.constant dense<0.000000e+00> : vector<8x16xf32>
    %11 = tpu.matmul %9, %10, %cst {dimension_numbers = #tpu.dot_dimension_numbers<[1], [0], [0], [1], [0, 0, 1, 1], [], []>} : vector<8x16xbf16>, vector<16x16xbf16>, vector<8x16xf32> -> vector<8x16xf32>
    %c0_14 = arith.constant 0 : index
    %c0_15 = arith.constant 0 : index
    %12 = vector.load %arg6[%c0_14, %c0_15] : memref<1x16xf32, #tpu.memory_space<vmem>>, vector<1x16xf32>
    %13 = vector.broadcast %12 : vector<1x16xf32> to vector<8x16xf32>
    %14 = arith.addf %11, %13 : vector<8x16xf32>
    %15 = arith.truncf %1 : vector<8x16xf32> to vector<8x16xbf16>
    %c0_16 = arith.constant 0 : index
    %c0_17 = arith.constant 0 : index
    %16 = vector.load %arg7[%c0_16, %c0_17] : memref<16x16xbf16, #tpu.memory_space<vmem>>, vector<16x16xbf16>
    %cst_18 = arith.constant dense<0.000000e+00> : vector<8x16xf32>
    %17 = tpu.matmul %15, %16, %cst_18 {dimension_numbers = #tpu.dot_dimension_numbers<[1], [0], [0], [1], [0, 0, 1, 1], [], []>} : vector<8x16xbf16>, vector<16x16xbf16>, vector<8x16xf32> -> vector<8x16xf32>
    %c0_19 = arith.constant 0 : index
    %c0_20 = arith.constant 0 : index
    %18 = vector.load %arg8[%c0_19, %c0_20] : memref<1x16xf32, #tpu.memory_space<vmem>>, vector<1x16xf32>
    %19 = vector.broadcast %18 : vector<1x16xf32> to vector<8x16xf32>
    %20 = arith.addf %17, %19 : vector<8x16xf32>
    %21 = arith.truncf %1 : vector<8x16xf32> to vector<8x16xbf16>
    %c0_21 = arith.constant 0 : index
    %c0_22 = arith.constant 0 : index
    %22 = vector.load %arg9[%c0_21, %c0_22] : memref<16x16xbf16, #tpu.memory_space<vmem>>, vector<16x16xbf16>
    %cst_23 = arith.constant dense<0.000000e+00> : vector<8x16xf32>
    %23 = tpu.matmul %21, %22, %cst_23 {dimension_numbers = #tpu.dot_dimension_numbers<[1], [0], [0], [1], [0, 0, 1, 1], [], []>} : vector<8x16xbf16>, vector<16x16xbf16>, vector<8x16xf32> -> vector<8x16xf32>
    %c0_24 = arith.constant 0 : index
    %c0_25 = arith.constant 0 : index
    %24 = vector.load %arg10[%c0_24, %c0_25] : memref<1x16xf32, #tpu.memory_space<vmem>>, vector<1x16xf32>
    %25 = vector.broadcast %24 : vector<1x16xf32> to vector<8x16xf32>
    %26 = arith.addf %23, %25 : vector<8x16xf32>
    %27 = arith.truncf %4 : vector<64x16xf32> to vector<64x16xbf16>
    %c0_26 = arith.constant 0 : index
    %c0_27 = arith.constant 0 : index
    %28 = vector.load %arg11[%c0_26, %c0_27] : memref<16x16xbf16, #tpu.memory_space<vmem>>, vector<16x16xbf16>
    %cst_28 = arith.constant dense<0.000000e+00> : vector<64x16xf32>
    %29 = tpu.matmul %27, %28, %cst_28 {dimension_numbers = #tpu.dot_dimension_numbers<[1], [0], [0], [1], [0, 0, 1, 1], [], []>} : vector<64x16xbf16>, vector<16x16xbf16>, vector<64x16xf32> -> vector<64x16xf32>
    %c0_29 = arith.constant 0 : index
    %c0_30 = arith.constant 0 : index
    %30 = vector.load %arg12[%c0_29, %c0_30] : memref<1x16xf32, #tpu.memory_space<vmem>>, vector<1x16xf32>
    %31 = vector.broadcast %30 : vector<1x16xf32> to vector<64x16xf32>
    %32 = arith.addf %29, %31 : vector<64x16xf32>
    %33 = arith.truncf %7 : vector<64x16xf32> to vector<64x16xbf16>
    %c0_31 = arith.constant 0 : index
    %c0_32 = arith.constant 0 : index
    %34 = vector.load %arg13[%c0_31, %c0_32] : memref<16x16xbf16, #tpu.memory_space<vmem>>, vector<16x16xbf16>
    %cst_33 = arith.constant dense<0.000000e+00> : vector<64x16xf32>
    %35 = tpu.matmul %33, %34, %cst_33 {dimension_numbers = #tpu.dot_dimension_numbers<[1], [0], [0], [1], [0, 0, 1, 1], [], []>} : vector<64x16xbf16>, vector<16x16xbf16>, vector<64x16xf32> -> vector<64x16xf32>
    %c0_34 = arith.constant 0 : index
    %c0_35 = arith.constant 0 : index
    %36 = vector.load %arg14[%c0_34, %c0_35] : memref<1x16xf32, #tpu.memory_space<vmem>>, vector<1x16xf32>
    %37 = vector.broadcast %36 : vector<1x16xf32> to vector<64x16xf32>
    %38 = arith.addf %35, %37 : vector<64x16xf32>
    %39 = vector.shape_cast %14 : vector<8x16xf32> to vector<8x1x16xf32>
    %40 = vector.shape_cast %20 : vector<8x16xf32> to vector<1x8x16xf32>
    %41 = vector.broadcast %39 : vector<8x1x16xf32> to vector<8x8x16xf32>
    %42 = vector.broadcast %40 : vector<1x8x16xf32> to vector<8x8x16xf32>
    %43 = arith.mulf %41, %42 : vector<8x8x16xf32>
    %cst_36 = arith.constant 0.353553385 : f32
    %44 = vector.broadcast %cst_36 : f32 to vector<8x8x16xf32>
    %45 = arith.mulf %43, %44 : vector<8x8x16xf32>
    %46 = vector.shape_cast %32 : vector<64x16xf32> to vector<8x8x16xf32>
    %47 = arith.mulf %45, %46 : vector<8x8x16xf32>
    %48 = vector.shape_cast %38 : vector<64x16xf32> to vector<8x8x16xf32>
    %49 = vector.extract_strided_slice %47 {offsets = [0, 0, 0], sizes = [8, 8, 8], strides = [1, 1, 1]} : vector<8x8x16xf32> to vector<8x8x8xf32>
    %cst_37 = arith.constant dense<0.000000e+00> : vector<8x8xf32>
    %50 = vector.multi_reduction <add>, %49, %cst_37 [2] : vector<8x8x8xf32> to vector<8x8xf32>
    %cst_38 = arith.constant -5.000000e+00 : f32
    %cst_39 = arith.constant 5.000000e+00 : f32
    %51 = vector.broadcast %cst_38 : f32 to vector<8x8xf32>
    %52 = arith.maximumf %51, %50 : vector<8x8xf32>
    %53 = vector.broadcast %cst_39 : f32 to vector<8x8xf32>
    %54 = arith.minimumf %53, %52 : vector<8x8xf32>
    %55 = vector.extract_strided_slice %48 {offsets = [0, 0, 0], sizes = [8, 8, 8], strides = [1, 1, 1]} : vector<8x8x16xf32> to vector<8x8x8xf32>
    %cst_40 = arith.constant dense<0.000000e+00> : vector<8x8xf32>
    %56 = vector.multi_reduction <add>, %55, %cst_40 [2] : vector<8x8x8xf32> to vector<8x8xf32>
    %cst_41 = arith.constant 0.353553385 : f32
    %57 = vector.broadcast %cst_41 : f32 to vector<8x8xf32>
    %58 = arith.mulf %56, %57 : vector<8x8xf32>
    %cst_42 = arith.constant -5.000000e+00 : f32
    %cst_43 = arith.constant 5.000000e+00 : f32
    %59 = vector.broadcast %cst_42 : f32 to vector<8x8xf32>
    %60 = arith.maximumf %59, %58 : vector<8x8xf32>
    %61 = vector.broadcast %cst_43 : f32 to vector<8x8xf32>
    %62 = arith.minimumf %61, %60 : vector<8x8xf32>
    %63 = arith.addf %54, %62 : vector<8x8xf32>
    %64 = arith.addf %63, %8 : vector<8x8xf32>
    %65 = math.exp %64 : vector<8x8xf32>
    %cst_44 = arith.constant dense<0.000000e+00> : vector<8xf32>
    %66 = vector.multi_reduction <add>, %65, %cst_44 [1] : vector<8x8xf32> to vector<8xf32>
    %67 = vector.shape_cast %66 : vector<8xf32> to vector<8x1xf32>
    %cst_45 = arith.constant 9.99999997E-7 : f32
    %68 = vector.broadcast %cst_45 : f32 to vector<8x1xf32>
    %69 = arith.addf %67, %68 : vector<8x1xf32>
    %70 = arith.truncf %65 : vector<8x8xf32> to vector<8x8xbf16>
    %71 = vector.extract_strided_slice %26 {offsets = [0, 0], sizes = [8, 8], strides = [1, 1]} : vector<8x16xf32> to vector<8x8xf32>
    %72 = arith.truncf %71 : vector<8x8xf32> to vector<8x8xbf16>
    %cst_46 = arith.constant dense<0.000000e+00> : vector<8x8xf32>
    %73 = tpu.matmul %70, %72, %cst_46 {dimension_numbers = #tpu.dot_dimension_numbers<[1], [0], [0], [1], [0, 0, 1, 1], [], []>} : vector<8x8xbf16>, vector<8x8xbf16>, vector<8x8xf32> -> vector<8x8xf32>
    %74 = tpu.reciprocal %69 {approx = true} : vector<8x1xf32> -> vector<8x1xf32>
    %75 = vector.broadcast %74 : vector<8x1xf32> to vector<8x8xf32>
    %76 = arith.mulf %73, %75 : vector<8x8xf32>
    %77 = vector.extract_strided_slice %47 {offsets = [0, 0, 8], sizes = [8, 8, 8], strides = [1, 1, 1]} : vector<8x8x16xf32> to vector<8x8x8xf32>
    %cst_47 = arith.constant dense<0.000000e+00> : vector<8x8xf32>
    %78 = vector.multi_reduction <add>, %77, %cst_47 [2] : vector<8x8x8xf32> to vector<8x8xf32>
    %cst_48 = arith.constant -5.000000e+00 : f32
    %cst_49 = arith.constant 5.000000e+00 : f32
    %79 = vector.broadcast %cst_48 : f32 to vector<8x8xf32>
    %80 = arith.maximumf %79, %78 : vector<8x8xf32>
    %81 = vector.broadcast %cst_49 : f32 to vector<8x8xf32>
    %82 = arith.minimumf %81, %80 : vector<8x8xf32>
    %83 = vector.extract_strided_slice %48 {offsets = [0, 0, 8], sizes = [8, 8, 8], strides = [1, 1, 1]} : vector<8x8x16xf32> to vector<8x8x8xf32>
    %cst_50 = arith.constant dense<0.000000e+00> : vector<8x8xf32>
    %84 = vector.multi_reduction <add>, %83, %cst_50 [2] : vector<8x8x8xf32> to vector<8x8xf32>
    %cst_51 = arith.constant 0.353553385 : f32
    %85 = vector.broadcast %cst_51 : f32 to vector<8x8xf32>
    %86 = arith.mulf %84, %85 : vector<8x8xf32>
    %cst_52 = arith.constant -5.000000e+00 : f32
    %cst_53 = arith.constant 5.000000e+00 : f32
    %87 = vector.broadcast %cst_52 : f32 to vector<8x8xf32>
    %88 = arith.maximumf %87, %86 : vector<8x8xf32>
    %89 = vector.broadcast %cst_53 : f32 to vector<8x8xf32>
    %90 = arith.minimumf %89, %88 : vector<8x8xf32>
    %91 = arith.addf %82, %90 : vector<8x8xf32>
    %92 = arith.addf %91, %8 : vector<8x8xf32>
    %93 = math.exp %92 : vector<8x8xf32>
    %cst_54 = arith.constant dense<0.000000e+00> : vector<8xf32>
    %94 = vector.multi_reduction <add>, %93, %cst_54 [1] : vector<8x8xf32> to vector<8xf32>
    %95 = vector.shape_cast %94 : vector<8xf32> to vector<8x1xf32>
    %cst_55 = arith.constant 9.99999997E-7 : f32
    %96 = vector.broadcast %cst_55 : f32 to vector<8x1xf32>
    %97 = arith.addf %95, %96 : vector<8x1xf32>
    %98 = arith.truncf %93 : vector<8x8xf32> to vector<8x8xbf16>
    %99 = vector.extract_strided_slice %26 {offsets = [0, 8], sizes = [8, 8], strides = [1, 1]} : vector<8x16xf32> to vector<8x8xf32>
    %100 = arith.truncf %99 : vector<8x8xf32> to vector<8x8xbf16>
    %cst_56 = arith.constant dense<0.000000e+00> : vector<8x8xf32>
    %101 = tpu.matmul %98, %100, %cst_56 {dimension_numbers = #tpu.dot_dimension_numbers<[1], [0], [0], [1], [0, 0, 1, 1], [], []>} : vector<8x8xbf16>, vector<8x8xbf16>, vector<8x8xf32> -> vector<8x8xf32>
    %102 = tpu.reciprocal %97 {approx = true} : vector<8x1xf32> -> vector<8x1xf32>
    %103 = vector.broadcast %102 : vector<8x1xf32> to vector<8x8xf32>
    %104 = arith.mulf %101, %103 : vector<8x8xf32>
    %105 = tpu.concatenate %76, %104 in 1 : vector<8x8xf32>, vector<8x8xf32> -> vector<8x16xf32>
    %106 = arith.truncf %105 : vector<8x16xf32> to vector<8x16xbf16>
    %c0_57 = arith.constant 0 : index
    %c0_58 = arith.constant 0 : index
    %107 = vector.load %arg15[%c0_57, %c0_58] : memref<16x16xbf16, #tpu.memory_space<vmem>>, vector<16x16xbf16>
    %cst_59 = arith.constant dense<0.000000e+00> : vector<8x16xf32>
    %108 = tpu.matmul %106, %107, %cst_59 {dimension_numbers = #tpu.dot_dimension_numbers<[1], [0], [0], [1], [0, 0, 1, 1], [], []>} : vector<8x16xbf16>, vector<16x16xbf16>, vector<8x16xf32> -> vector<8x16xf32>
    %c0_60 = arith.constant 0 : index
    %c0_61 = arith.constant 0 : index
    %109 = vector.load %arg16[%c0_60, %c0_61] : memref<1x16xf32, #tpu.memory_space<vmem>>, vector<1x16xf32>
    %110 = vector.broadcast %109 : vector<1x16xf32> to vector<8x16xf32>
    %111 = arith.addf %108, %110 : vector<8x16xf32>
    %112 = vector.shape_cast %47 : vector<8x8x16xf32> to vector<64x16xf32>
    %113 = arith.truncf %112 : vector<64x16xf32> to vector<64x16xbf16>
    %c0_62 = arith.constant 0 : index
    %c0_63 = arith.constant 0 : index
    %114 = vector.load %arg17[%c0_62, %c0_63] : memref<16x16xbf16, #tpu.memory_space<vmem>>, vector<16x16xbf16>
    %cst_64 = arith.constant dense<0.000000e+00> : vector<64x16xf32>
    %115 = tpu.matmul %113, %114, %cst_64 {dimension_numbers = #tpu.dot_dimension_numbers<[1], [0], [0], [1], [0, 0, 1, 1], [], []>} : vector<64x16xbf16>, vector<16x16xbf16>, vector<64x16xf32> -> vector<64x16xf32>
    %c0_65 = arith.constant 0 : index
    %c0_66 = arith.constant 0 : index
    %116 = vector.load %arg18[%c0_65, %c0_66] : memref<1x16xf32, #tpu.memory_space<vmem>>, vector<1x16xf32>
    %117 = vector.broadcast %116 : vector<1x16xf32> to vector<64x16xf32>
    %118 = arith.addf %115, %117 : vector<64x16xf32>
    %119 = arith.addf %1, %111 : vector<8x16xf32>
    %cst_67 = arith.constant dense<0.000000e+00> : vector<8xf32>
    %120 = vector.multi_reduction <add>, %119, %cst_67 [1] : vector<8x16xf32> to vector<8xf32>
    %121 = vector.shape_cast %120 : vector<8xf32> to vector<8x1xf32>
    %cst_68 = arith.constant 1.600000e+01 : f32
    %122 = vector.broadcast %cst_68 : f32 to vector<8x1xf32>
    %123 = arith.divf %121, %122 : vector<8x1xf32>
    %124 = vector.broadcast %123 : vector<8x1xf32> to vector<8x16xf32>
    %125 = arith.subf %119, %124 : vector<8x16xf32>
    %126 = arith.mulf %125, %125 : vector<8x16xf32>
    %cst_69 = arith.constant dense<0.000000e+00> : vector<8xf32>
    %127 = vector.multi_reduction <add>, %126, %cst_69 [1] : vector<8x16xf32> to vector<8xf32>
    %128 = vector.shape_cast %127 : vector<8xf32> to vector<8x1xf32>
    %cst_70 = arith.constant 1.600000e+01 : f32
    %129 = vector.broadcast %cst_70 : f32 to vector<8x1xf32>
    %130 = arith.divf %128, %129 : vector<8x1xf32>
    %131 = vector.broadcast %123 : vector<8x1xf32> to vector<8x16xf32>
    %132 = arith.subf %119, %131 : vector<8x16xf32>
    %cst_71 = arith.constant 9.99999974E-6 : f32
    %133 = vector.broadcast %cst_71 : f32 to vector<8x1xf32>
    %134 = arith.addf %130, %133 : vector<8x1xf32>
    %135 = math.rsqrt %134 : vector<8x1xf32>
    %136 = vector.broadcast %135 : vector<8x1xf32> to vector<8x16xf32>
    %137 = arith.mulf %132, %136 : vector<8x16xf32>
    %c0_72 = arith.constant 0 : index
    %c0_73 = arith.constant 0 : index
    %138 = vector.load %arg19[%c0_72, %c0_73] : memref<1x16xf32, #tpu.memory_space<vmem>>, vector<1x16xf32>
    %139 = vector.broadcast %138 : vector<1x16xf32> to vector<8x16xf32>
    %140 = arith.mulf %137, %139 : vector<8x16xf32>
    %c0_74 = arith.constant 0 : index
    %c0_75 = arith.constant 0 : index
    %141 = vector.load %arg20[%c0_74, %c0_75] : memref<1x16xf32, #tpu.memory_space<vmem>>, vector<1x16xf32>
    %142 = vector.broadcast %141 : vector<1x16xf32> to vector<8x16xf32>
    %143 = arith.addf %140, %142 : vector<8x16xf32>
    %144 = arith.addf %4, %118 : vector<64x16xf32>
    %cst_76 = arith.constant dense<0.000000e+00> : vector<64xf32>
    %145 = vector.multi_reduction <add>, %144, %cst_76 [1] : vector<64x16xf32> to vector<64xf32>
    %146 = vector.shape_cast %145 : vector<64xf32> to vector<64x1xf32>
    %cst_77 = arith.constant 1.600000e+01 : f32
    %147 = vector.broadcast %cst_77 : f32 to vector<64x1xf32>
    %148 = arith.divf %146, %147 : vector<64x1xf32>
    %149 = vector.broadcast %148 : vector<64x1xf32> to vector<64x16xf32>
    %150 = arith.subf %144, %149 : vector<64x16xf32>
    %151 = arith.mulf %150, %150 : vector<64x16xf32>
    %cst_78 = arith.constant dense<0.000000e+00> : vector<64xf32>
    %152 = vector.multi_reduction <add>, %151, %cst_78 [1] : vector<64x16xf32> to vector<64xf32>
    %153 = vector.shape_cast %152 : vector<64xf32> to vector<64x1xf32>
    %cst_79 = arith.constant 1.600000e+01 : f32
    %154 = vector.broadcast %cst_79 : f32 to vector<64x1xf32>
    %155 = arith.divf %153, %154 : vector<64x1xf32>
    %156 = vector.broadcast %148 : vector<64x1xf32> to vector<64x16xf32>
    %157 = arith.subf %144, %156 : vector<64x16xf32>
    %cst_80 = arith.constant 9.99999974E-6 : f32
    %158 = vector.broadcast %cst_80 : f32 to vector<64x1xf32>
    %159 = arith.addf %155, %158 : vector<64x1xf32>
    %160 = math.rsqrt %159 : vector<64x1xf32>
    %161 = vector.broadcast %160 : vector<64x1xf32> to vector<64x16xf32>
    %162 = arith.mulf %157, %161 : vector<64x16xf32>
    %c0_81 = arith.constant 0 : index
    %c0_82 = arith.constant 0 : index
    %163 = vector.load %arg21[%c0_81, %c0_82] : memref<1x16xf32, #tpu.memory_space<vmem>>, vector<1x16xf32>
    %164 = vector.broadcast %163 : vector<1x16xf32> to vector<64x16xf32>
    %165 = arith.mulf %162, %164 : vector<64x16xf32>
    %c0_83 = arith.constant 0 : index
    %c0_84 = arith.constant 0 : index
    %166 = vector.load %arg22[%c0_83, %c0_84] : memref<1x16xf32, #tpu.memory_space<vmem>>, vector<1x16xf32>
    %167 = vector.broadcast %166 : vector<1x16xf32> to vector<64x16xf32>
    %168 = arith.addf %165, %167 : vector<64x16xf32>
    %169 = arith.truncf %143 : vector<8x16xf32> to vector<8x16xbf16>
    %c0_85 = arith.constant 0 : index
    %c0_86 = arith.constant 0 : index
    %170 = vector.load %arg23[%c0_85, %c0_86] : memref<16x32xbf16, #tpu.memory_space<vmem>>, vector<16x32xbf16>
    %cst_87 = arith.constant dense<0.000000e+00> : vector<8x32xf32>
    %171 = tpu.matmul %169, %170, %cst_87 {dimension_numbers = #tpu.dot_dimension_numbers<[1], [0], [0], [1], [0, 0, 1, 1], [], []>} : vector<8x16xbf16>, vector<16x32xbf16>, vector<8x32xf32> -> vector<8x32xf32>
    %c0_88 = arith.constant 0 : index
    %c0_89 = arith.constant 0 : index
    %172 = vector.load %arg24[%c0_88, %c0_89] : memref<1x32xf32, #tpu.memory_space<vmem>>, vector<1x32xf32>
    %173 = vector.broadcast %172 : vector<1x32xf32> to vector<8x32xf32>
    %174 = arith.addf %171, %173 : vector<8x32xf32>
    %cst_90 = arith.constant 0.000000e+00 : f32
    %175 = vector.broadcast %cst_90 : f32 to vector<8x32xf32>
    %176 = arith.maximumf %174, %175 : vector<8x32xf32>
    %177 = arith.truncf %176 : vector<8x32xf32> to vector<8x32xbf16>
    %c0_91 = arith.constant 0 : index
    %c0_92 = arith.constant 0 : index
    %178 = vector.load %arg25[%c0_91, %c0_92] : memref<32x16xbf16, #tpu.memory_space<vmem>>, vector<32x16xbf16>
    %cst_93 = arith.constant dense<0.000000e+00> : vector<8x16xf32>
    %179 = tpu.matmul %177, %178, %cst_93 {dimension_numbers = #tpu.dot_dimension_numbers<[1], [0], [0], [1], [0, 0, 1, 1], [], []>} : vector<8x32xbf16>, vector<32x16xbf16>, vector<8x16xf32> -> vector<8x16xf32>
    %c0_94 = arith.constant 0 : index
    %c0_95 = arith.constant 0 : index
    %180 = vector.load %arg26[%c0_94, %c0_95] : memref<1x16xf32, #tpu.memory_space<vmem>>, vector<1x16xf32>
    %181 = vector.broadcast %180 : vector<1x16xf32> to vector<8x16xf32>
    %182 = arith.addf %179, %181 : vector<8x16xf32>
    %183 = arith.truncf %168 : vector<64x16xf32> to vector<64x16xbf16>
    %c0_96 = arith.constant 0 : index
    %c0_97 = arith.constant 0 : index
    %184 = vector.load %arg27[%c0_96, %c0_97] : memref<16x32xbf16, #tpu.memory_space<vmem>>, vector<16x32xbf16>
    %cst_98 = arith.constant dense<0.000000e+00> : vector<64x32xf32>
    %185 = tpu.matmul %183, %184, %cst_98 {dimension_numbers = #tpu.dot_dimension_numbers<[1], [0], [0], [1], [0, 0, 1, 1], [], []>} : vector<64x16xbf16>, vector<16x32xbf16>, vector<64x32xf32> -> vector<64x32xf32>
    %c0_99 = arith.constant 0 : index
    %c0_100 = arith.constant 0 : index
    %186 = vector.load %arg28[%c0_99, %c0_100] : memref<1x32xf32, #tpu.memory_space<vmem>>, vector<1x32xf32>
    %187 = vector.broadcast %186 : vector<1x32xf32> to vector<64x32xf32>
    %188 = arith.addf %185, %187 : vector<64x32xf32>
    %cst_101 = arith.constant 0.000000e+00 : f32
    %189 = vector.broadcast %cst_101 : f32 to vector<64x32xf32>
    %190 = arith.maximumf %188, %189 : vector<64x32xf32>
    %191 = arith.truncf %190 : vector<64x32xf32> to vector<64x32xbf16>
    %c0_102 = arith.constant 0 : index
    %c0_103 = arith.constant 0 : index
    %192 = vector.load %arg29[%c0_102, %c0_103] : memref<32x16xbf16, #tpu.memory_space<vmem>>, vector<32x16xbf16>
    %cst_104 = arith.constant dense<0.000000e+00> : vector<64x16xf32>
    %193 = tpu.matmul %191, %192, %cst_104 {dimension_numbers = #tpu.dot_dimension_numbers<[1], [0], [0], [1], [0, 0, 1, 1], [], []>} : vector<64x32xbf16>, vector<32x16xbf16>, vector<64x16xf32> -> vector<64x16xf32>
    %c0_105 = arith.constant 0 : index
    %c0_106 = arith.constant 0 : index
    %194 = vector.load %arg30[%c0_105, %c0_106] : memref<1x16xf32, #tpu.memory_space<vmem>>, vector<1x16xf32>
    %195 = vector.broadcast %194 : vector<1x16xf32> to vector<64x16xf32>
    %196 = arith.addf %193, %195 : vector<64x16xf32>
    %197 = arith.addf %143, %182 : vector<8x16xf32>
    %cst_107 = arith.constant dense<0.000000e+00> : vector<8xf32>
    %198 = vector.multi_reduction <add>, %197, %cst_107 [1] : vector<8x16xf32> to vector<8xf32>
    %199 = vector.shape_cast %198 : vector<8xf32> to vector<8x1xf32>
    %cst_108 = arith.constant 1.600000e+01 : f32
    %200 = vector.broadcast %cst_108 : f32 to vector<8x1xf32>
    %201 = arith.divf %199, %200 : vector<8x1xf32>
    %202 = vector.broadcast %201 : vector<8x1xf32> to vector<8x16xf32>
    %203 = arith.subf %197, %202 : vector<8x16xf32>
    %204 = arith.mulf %203, %203 : vector<8x16xf32>
    %cst_109 = arith.constant dense<0.000000e+00> : vector<8xf32>
    %205 = vector.multi_reduction <add>, %204, %cst_109 [1] : vector<8x16xf32> to vector<8xf32>
    %206 = vector.shape_cast %205 : vector<8xf32> to vector<8x1xf32>
    %cst_110 = arith.constant 1.600000e+01 : f32
    %207 = vector.broadcast %cst_110 : f32 to vector<8x1xf32>
    %208 = arith.divf %206, %207 : vector<8x1xf32>
    %209 = vector.broadcast %201 : vector<8x1xf32> to vector<8x16xf32>
    %210 = arith.subf %197, %209 : vector<8x16xf32>
    %cst_111 = arith.constant 9.99999974E-6 : f32
    %211 = vector.broadcast %cst_111 : f32 to vector<8x1xf32>
    %212 = arith.addf %208, %211 : vector<8x1xf32>
    %213 = math.rsqrt %212 : vector<8x1xf32>
    %214 = vector.broadcast %213 : vector<8x1xf32> to vector<8x16xf32>
    %215 = arith.mulf %210, %214 : vector<8x16xf32>
    %c0_112 = arith.constant 0 : index
    %c0_113 = arith.constant 0 : index
    %216 = vector.load %arg31[%c0_112, %c0_113] : memref<1x16xf32, #tpu.memory_space<vmem>>, vector<1x16xf32>
    %217 = vector.broadcast %216 : vector<1x16xf32> to vector<8x16xf32>
    %218 = arith.mulf %215, %217 : vector<8x16xf32>
    %c0_114 = arith.constant 0 : index
    %c0_115 = arith.constant 0 : index
    %219 = vector.load %arg32[%c0_114, %c0_115] : memref<1x16xf32, #tpu.memory_space<vmem>>, vector<1x16xf32>
    %220 = vector.broadcast %219 : vector<1x16xf32> to vector<8x16xf32>
    %221 = arith.addf %218, %220 : vector<8x16xf32>
    %222 = arith.addf %168, %196 : vector<64x16xf32>
    %cst_116 = arith.constant dense<0.000000e+00> : vector<64xf32>
    %223 = vector.multi_reduction <add>, %222, %cst_116 [1] : vector<64x16xf32> to vector<64xf32>
    %224 = vector.shape_cast %223 : vector<64xf32> to vector<64x1xf32>
    %cst_117 = arith.constant 1.600000e+01 : f32
    %225 = vector.broadcast %cst_117 : f32 to vector<64x1xf32>
    %226 = arith.divf %224, %225 : vector<64x1xf32>
    %227 = vector.broadcast %226 : vector<64x1xf32> to vector<64x16xf32>
    %228 = arith.subf %222, %227 : vector<64x16xf32>
    %229 = arith.mulf %228, %228 : vector<64x16xf32>
    %cst_118 = arith.constant dense<0.000000e+00> : vector<64xf32>
    %230 = vector.multi_reduction <add>, %229, %cst_118 [1] : vector<64x16xf32> to vector<64xf32>
    %231 = vector.shape_cast %230 : vector<64xf32> to vector<64x1xf32>
    %cst_119 = arith.constant 1.600000e+01 : f32
    %232 = vector.broadcast %cst_119 : f32 to vector<64x1xf32>
    %233 = arith.divf %231, %232 : vector<64x1xf32>
    %234 = vector.broadcast %226 : vector<64x1xf32> to vector<64x16xf32>
    %235 = arith.subf %222, %234 : vector<64x16xf32>
    %cst_120 = arith.constant 9.99999974E-6 : f32
    %236 = vector.broadcast %cst_120 : f32 to vector<64x1xf32>
    %237 = arith.addf %233, %236 : vector<64x1xf32>
    %238 = math.rsqrt %237 : vector<64x1xf32>
    %239 = vector.broadcast %238 : vector<64x1xf32> to vector<64x16xf32>
    %240 = arith.mulf %235, %239 : vector<64x16xf32>
    %c0_121 = arith.constant 0 : index
    %c0_122 = arith.constant 0 : index
    %241 = vector.load %arg33[%c0_121, %c0_122] : memref<1x16xf32, #tpu.memory_space<vmem>>, vector<1x16xf32>
    %242 = vector.broadcast %241 : vector<1x16xf32> to vector<64x16xf32>
    %243 = arith.mulf %240, %242 : vector<64x16xf32>
    %c0_123 = arith.constant 0 : index
    %c0_124 = arith.constant 0 : index
    %244 = vector.load %arg34[%c0_123, %c0_124] : memref<1x16xf32, #tpu.memory_space<vmem>>, vector<1x16xf32>
    %245 = vector.broadcast %244 : vector<1x16xf32> to vector<64x16xf32>
    %246 = arith.addf %243, %245 : vector<64x16xf32>
    %c0_125 = arith.constant 0 : index
    %c0_126 = arith.constant 0 : index
    %c0_127 = arith.constant 0 : index
    %247 = vector.load %arg35[%c0_125, %c0_126, %c0_127] : memref<1x8x16xf32, #tpu.memory_space<vmem>>, vector<1x8x16xf32>
    %248 = vector.shape_cast %247 : vector<1x8x16xf32> to vector<8x16xf32>
    %249 = vector.shape_cast %221 : vector<8x16xf32> to vector<1x8x16xf32>
    tpu.vector_store %arg35[%c0_125, %c0_126, %c0_127], %249 {strides = array<i32>} : memref<1x8x16xf32, #tpu.memory_space<vmem>>, vector<1x8x16xf32>,
    %250 = vector.shape_cast %246 : vector<64x16xf32> to vector<8x8x16xf32>
    %c0_128 = arith.constant 0 : index
    %c0_129 = arith.constant 0 : index
    %c0_130 = arith.constant 0 : index
    %c0_131 = arith.constant 0 : index
    %251 = vector.load %arg36[%c0_128, %c0_129, %c0_130, %c0_131] : memref<1x8x8x16xf32, #tpu.memory_space<vmem>>, vector<1x8x8x16xf32>
    %252 = vector.shape_cast %251 : vector<1x8x8x16xf32> to vector<8x8x16xf32>
    %253 = vector.shape_cast %250 : vector<8x8x16xf32> to vector<1x8x8x16xf32>
    tpu.vector_store %arg36[%c0_128, %c0_129, %c0_130, %c0_131], %253 {strides = array<i32>} : memref<1x8x8x16xf32, #tpu.memory_space<vmem>>, vector<1x8x8x16xf32>,
    return
  }
  func.func @transform_0(%arg0: i32) -> (i32, i32, i32) {
    %c0_i32 = arith.constant 0 : i32
    %c0_i32_0 = arith.constant 0 : i32
    %c0_i32_1 = arith.constant 0 : i32
    return %arg0, %c0_i32, %c0_i32_0 : i32, i32, i32
  }
  func.func @transform_1(%arg0: i32) -> (i32, i32, i32, i32) {
    %c0_i32 = arith.constant 0 : i32
    %c0_i32_0 = arith.constant 0 : i32
    %c0_i32_1 = arith.constant 0 : i32
    %c0_i32_2 = arith.constant 0 : i32
    return %arg0, %c0_i32, %c0_i32_0, %c0_i32_1 : i32, i32, i32, i32
  }
  func.func @transform_2(%arg0: i32) -> (i32, i32, i32, i32) {
    %c0_i32 = arith.constant 0 : i32
    %c0_i32_0 = arith.constant 0 : i32
    %c0_i32_1 = arith.constant 0 : i32
    %c0_i32_2 = arith.constant 0 : i32
    return %arg0, %c0_i32, %c0_i32_0, %c0_i32_1 : i32, i32, i32, i32
  }
  func.func @transform_3(%arg0: i32) -> (i32, i32) {
    %c0_i32 = arith.constant 0 : i32
    %c0_i32_0 = arith.constant 0 : i32
    %c0_i32_1 = arith.constant 0 : i32
    return %c0_i32, %c0_i32_0 : i32, i32
  }
  func.func @transform_4(%arg0: i32) -> (i32, i32) {
    %c0_i32 = arith.constant 0 : i32
    %c0_i32_0 = arith.constant 0 : i32
    %c0_i32_1 = arith.constant 0 : i32
    return %c0_i32, %c0_i32_0 : i32, i32
  }
  func.func @transform_5(%arg0: i32) -> (i32, i32) {
    %c0_i32 = arith.constant 0 : i32
    %c0_i32_0 = arith.constant 0 : i32
    %c0_i32_1 = arith.constant 0 : i32
    return %c0_i32, %c0_i32_0 : i32, i32
  }
  func.func @transform_6(%arg0: i32) -> (i32, i32) {
    %c0_i32 = arith.constant 0 : i32
    %c0_i32_0 = arith.constant 0 : i32
    %c0_i32_1 = arith.constant 0 : i32
    return %c0_i32, %c0_i32_0 : i32, i32
  }
  func.func @transform_7(%arg0: i32) -> (i32, i32) {
    %c0_i32 = arith.constant 0 : i32
    %c0_i32_0 = arith.constant 0 : i32
    %c0_i32_1 = arith.constant 0 : i32
    return %c0_i32, %c0_i32_0 : i32, i32
  }
  func.func @transform_8(%arg0: i32) -> (i32, i32) {
    %c0_i32 = arith.constant 0 : i32
    %c0_i32_0 = arith.constant 0 : i32
    %c0_i32_1 = arith.constant 0 : i32
    return %c0_i32, %c0_i32_0 : i32, i32
  }
  func.func @transform_9(%arg0: i32) -> (i32, i32) {
    %c0_i32 = arith.constant 0 : i32
    %c0_i32_0 = arith.constant 0 : i32
    %c0_i32_1 = arith.constant 0 : i32
    return %c0_i32, %c0_i32_0 : i32, i32
  }
  func.func @transform_10(%arg0: i32) -> (i32, i32) {
    %c0_i32 = arith.constant 0 : i32
    %c0_i32_0 = arith.constant 0 : i32
    %c0_i32_1 = arith.constant 0 : i32
    return %c0_i32, %c0_i32_0 : i32, i32
  }
  func.func @transform_11(%arg0: i32) -> (i32, i32) {
    %c0_i32 = arith.constant 0 : i32
    %c0_i32_0 = arith.constant 0 : i32
    %c0_i32_1 = arith.constant 0 : i32
    return %c0_i32, %c0_i32_0 : i32, i32
  }
  func.func @transform_12(%arg0: i32) -> (i32, i32) {
    %c0_i32 = arith.constant 0 : i32
    %c0_i32_0 = arith.constant 0 : i32
    %c0_i32_1 = arith.constant 0 : i32
    return %c0_i32, %c0_i32_0 : i32, i32
  }
  func.func @transform_13(%arg0: i32) -> (i32, i32) {
    %c0_i32 = arith.constant 0 : i32
    %c0_i32_0 = arith.constant 0 : i32
    %c0_i32_1 = arith.constant 0 : i32
    return %c0_i32, %c0_i32_0 : i32, i32
  }
  func.func @transform_14(%arg0: i32) -> (i32, i32) {
    %c0_i32 = arith.constant 0 : i32
    %c0_i32_0 = arith.constant 0 : i32
    %c0_i32_1 = arith.constant 0 : i32
    return %c0_i32, %c0_i32_0 : i32, i32
  }
  func.func @transform_15(%arg0: i32) -> (i32, i32) {
    %c0_i32 = arith.constant 0 : i32
    %c0_i32_0 = arith.constant 0 : i32
    %c0_i32_1 = arith.constant 0 : i32
    return %c0_i32, %c0_i32_0 : i32, i32
  }
  func.func @transform_16(%arg0: i32) -> (i32, i32) {
    %c0_i32 = arith.constant 0 : i32
    %c0_i32_0 = arith.constant 0 : i32
    %c0_i32_1 = arith.constant 0 : i32
    return %c0_i32, %c0_i32_0 : i32, i32
  }
  func.func @transform_17(%arg0: i32) -> (i32, i32) {
    %c0_i32 = arith.constant 0 : i32
    %c0_i32_0 = arith.constant 0 : i32
    %c0_i32_1 = arith.constant 0 : i32
    return %c0_i32, %c0_i32_0 : i32, i32
  }
  func.func @transform_18(%arg0: i32) -> (i32, i32) {
    %c0_i32 = arith.constant 0 : i32
    %c0_i32_0 = arith.constant 0 : i32
    %c0_i32_1 = arith.constant 0 : i32
    return %c0_i32, %c0_i32_0 : i32, i32
  }
  func.func @transform_19(%arg0: i32) -> (i32, i32) {
    %c0_i32 = arith.constant 0 : i32
    %c0_i32_0 = arith.constant 0 : i32
    %c0_i32_1 = arith.constant 0 : i32
    return %c0_i32, %c0_i32_0 : i32, i32
  }
  func.func @transform_20(%arg0: i32) -> (i32, i32) {
    %c0_i32 = arith.constant 0 : i32
    %c0_i32_0 = arith.constant 0 : i32
    %c0_i32_1 = arith.constant 0 : i32
    return %c0_i32, %c0_i32_0 : i32, i32
  }
  func.func @transform_21(%arg0: i32) -> (i32, i32) {
    %c0_i32 = arith.constant 0 : i32
    %c0_i32_0 = arith.constant 0 : i32
    %c0_i32_1 = arith.constant 0 : i32
    return %c0_i32, %c0_i32_0 : i32, i32
  }
  func.func @transform_22(%arg0: i32) -> (i32, i32) {
    %c0_i32 = arith.constant 0 : i32
    %c0_i32_0 = arith.constant 0 : i32
    %c0_i32_1 = arith.constant 0 : i32
    return %c0_i32, %c0_i32_0 : i32, i32
  }
  func.func @transform_23(%arg0: i32) -> (i32, i32) {
    %c0_i32 = arith.constant 0 : i32
    %c0_i32_0 = arith.constant 0 : i32
    %c0_i32_1 = arith.constant 0 : i32
    return %c0_i32, %c0_i32_0 : i32, i32
  }
  func.func @transform_24(%arg0: i32) -> (i32, i32) {
    %c0_i32 = arith.constant 0 : i32
    %c0_i32_0 = arith.constant 0 : i32
    %c0_i32_1 = arith.constant 0 : i32
    return %c0_i32, %c0_i32_0 : i32, i32
  }
  func.func @transform_25(%arg0: i32) -> (i32, i32) {
    %c0_i32 = arith.constant 0 : i32
    %c0_i32_0 = arith.constant 0 : i32
    %c0_i32_1 = arith.constant 0 : i32
    return %c0_i32, %c0_i32_0 : i32, i32
  }
  func.func @transform_26(%arg0: i32) -> (i32, i32) {
    %c0_i32 = arith.constant 0 : i32
    %c0_i32_0 = arith.constant 0 : i32
    %c0_i32_1 = arith.constant 0 : i32
    return %c0_i32, %c0_i32_0 : i32, i32
  }
  func.func @transform_27(%arg0: i32) -> (i32, i32) {
    %c0_i32 = arith.constant 0 : i32
    %c0_i32_0 = arith.constant 0 : i32
    %c0_i32_1 = arith.constant 0 : i32
    return %c0_i32, %c0_i32_0 : i32, i32
  }
  func.func @transform_28(%arg0: i32) -> (i32, i32) {
    %c0_i32 = arith.constant 0 : i32
    %c0_i32_0 = arith.constant 0 : i32
    %c0_i32_1 = arith.constant 0 : i32
    return %c0_i32, %c0_i32_0 : i32, i32
  }
  func.func @transform_29(%arg0: i32) -> (i32, i32) {
    %c0_i32 = arith.constant 0 : i32
    %c0_i32_0 = arith.constant 0 : i32
    %c0_i32_1 = arith.constant 0 : i32
    return %c0_i32, %c0_i32_0 : i32, i32
  }
  func.func @transform_30(%arg0: i32) -> (i32, i32) {
    %c0_i32 = arith.constant 0 : i32
    %c0_i32_0 = arith.constant 0 : i32
    %c0_i32_1 = arith.constant 0 : i32
    return %c0_i32, %c0_i32_0 : i32, i32
  }
  func.func @transform_31(%arg0: i32) -> (i32, i32) {
    %c0_i32 = arith.constant 0 : i32
    %c0_i32_0 = arith.constant 0 : i32
    %c0_i32_1 = arith.constant 0 : i32
    return %c0_i32, %c0_i32_0 : i32, i32
  }
  func.func @transform_32(%arg0: i32) -> (i32, i32) {
    %c0_i32 = arith.constant 0 : i32
    %c0_i32_0 = arith.constant 0 : i32
    %c0_i32_1 = arith.constant 0 : i32
    return %c0_i32, %c0_i32_0 : i32, i32
  }
  func.func @transform_33(%arg0: i32) -> (i32, i32) {
    %c0_i32 = arith.constant 0 : i32
    %c0_i32_0 = arith.constant 0 : i32
    %c0_i32_1 = arith.constant 0 : i32
    return %c0_i32, %c0_i32_0 : i32, i32
  }
  func.func @transform_34(%arg0: i32) -> (i32, i32, i32) {
    %c0_i32 = arith.constant 0 : i32
    %c0_i32_0 = arith.constant 0 : i32
    %c0_i32_1 = arith.constant 0 : i32
    return %arg0, %c0_i32, %c0_i32_0 : i32, i32, i32
  }
  func.func @transform_35(%arg0: i32) -> (i32, i32, i32, i32) {
    %c0_i32 = arith.constant 0 : i32
    %c0_i32_0 = arith.constant 0 : i32
    %c0_i32_1 = arith.constant 0 : i32
    %c0_i32_2 = arith.constant 0 : i32
    return %arg0, %c0_i32, %c0_i32_0, %c0_i32_1 : i32, i32, i32, i32
  }
}

</mosaic_0001>

<bundles_post_ra>
// kernel: tpu_custom_call.1
= control target key start
LH: loop header
LB: loop body
LE: loop exit
PB: predicated region body
PF: predicated region fallthrough
CT: control target
= control target key end

     0   :  { %6 = vsyncpa [#allocation3], 0  ;;  %s481_s0 = inlined_call_operand.hbm [shape: f32[8,128], index: 0, kind: input, shape index: {}]   ;;  %s482_s1 = inlined_call_operand.hbm [shape: f32[16,128], index: 1, kind: output, shape index: {}]  }
   0x1   :  { %7 = vsyncpa [#allocation4], 0 }
   0x2   :  { %9 = vsyncpa [#allocation4 + $0x1], 0  ;;  %s351_s6 = smov 0   ;;  %s353_s7 = smov 0  }
   0x3   :  { %s355_s8 = smov 0   ;;  %s357_s9 = smov 0  }
   0x4 LB: > { %s372_s10 = sadd.s32 4294967295, %s337_s9   ;;  %s183_s11 = sadd.s32 4294967294, %s337_s9   ;;  %s337_s9 = sphi %s357_s9, %s498_s9   ;;  %s333_s8 = sphi %s355_s8, %s497_s8   ;;  %s329_s7 = sphi %s353_s7, %s496_s7   ;;  %s325_s6 = sphi %s351_s6, %s495_s6  }
   0x5   : > { %s376_s12 = sadd.s32 1, %s337_s9   ;;  %s43_s13 = sadd.s32 1, %s333_s8 }
   0x6   : > { %s40_s14 = ssub.s32 %s337_s9, %s376_s12  ;;  %p53_p0 = scmp.ne.s32.totalorder %s333_s8, %s329_s7 }
   0x7   : > { %p41_p1 = scmp.eq.s32.totalorder %s40_s14, 0  ;;  %p54_p2 = scmp.eq.s32.totalorder %s372_s10, 1 }
   0x8   : > { %p59_p3 = scmp.ne.s32.totalorder %s329_s7, %s325_s6  ;;  %p60_p4 = scmp.eq.s32.totalorder %s183_s11, 1 }
   0x9   : > { %s387_s15 = scalar_select %p41_p1, %s333_s8, %s43_s13  }
   0xa   : > { %p389_p5 = por %p54_p2, %p53_p0  ;;  %p393_p6 = por %p60_p4, %p59_p3 }
   0xb   : > { %p184_p7 = scmp.ge.s32.totalorder %s337_s9, 1  ;;  %p67_p8 = scmp.lt.s32.totalorder %s337_s9, 3 }
   0xc   : > { %s486_s16 = scalar_select %p389_p5, 1, 0 }
   0xd   : > { %s487_s17 = scalar_select %p393_p6, 1, 0 }
   0xe   : > { %p483_p9 = scmp.eq.s32.totalorder %s372_s10, 0  ;;  %p400_p10 = pnand %p184_p7, %p67_p8 }
   0xf   : > { %s339_s19 = smov [#allocation2]   ;;  %s243_s24 = scalar_lea.hbm %s481_s0, 128 }
  0x10   : > { %s488_s18 = scalar_select %p400_p10, 1, 0 }
  0x11   : > { %s80_s20 = sshll.u32 %s339_s19, 4  ;;  %p199_p11 = pneg %p400_p10  ;;  %s81_s20 = int_to_ptr.vmem [resolvable:$true] %s80_s20 }
  0x12   : > { %p244_p13 = scmp.ne.s32.totalorder %s481_s0, %s243_s24  ;;  %p250_p3 = scmp.lt.u32.totalorder %s243_s24, %s481_s0 }
  0x13   : > { %p408_p12 = pnand %p483_p9, %p199_p11 }
  0x15   : > { %p245_p0 = pneg %p408_p12 }
  0x17   : > { %p246_p1 = pnand %p245_p0, %p244_p13 }
  0x19   : > { %p247_p2 = pneg %p246_p1 }
  0x1b   : > { %p252_p4 = pnand %p250_p3, %p247_p2 }
  0x1d   : > { %255 = shalt.err (!%p252_p4)
}
  0x1e   : > { %s256_s29 = scalar_lea.vmem %s81_s20, 128  ;;  %p264_p9 = scmp.lt.s32.totalorder %s81_s20, %s81_s20 }
  0x1f   : > { %p257_p7 = scmp.ne.s32.totalorder %s81_s20, %s256_s29  ;;  %p265_p6 = scmp.lt.s32.totalorder %s256_s29, %s256_s29 }
  0x21   : > { %p259_p8 = pnand %p257_p7, %p245_p0  ;;  %p266_p5 = por %p265_p6, %p264_p9 }
  0x23   : > { %p260_p11 = pneg %p259_p8 }
  0x25   : > { %p267_p10 = pnand %p266_p5, %p260_p11 }
  0x27   : > { %270 = shalt.err (!%p267_p10)
}
  0x28   : > { %202 = dma.hbm_to_vmem [thread:$0]  (!%p408_p12), %s481_s0, 128, %s81_s20, [#allocation3]  }
  0x29   : > { %p490_p13 = scmp.ne.s32.totalorder %s488_s18, 0 }
  0x2a   : > { %p491_p1 = scmp.eq.s32.totalorder (!%p490_p13), %s372_s10, 0 }
  0x2b   : > { %93 = sbr.rel (%p490_p13) target bundleno = 77 (0x4d), region = 24 }
  0x32   : > { %316 = dma.done.wait (%p491_p1), [#allocation3], 128   ;;  %p492_p0 = pmov %p491_p1 }
  0x33   : > { %s105_s3 = sand.u32 1, %s329_s7   ;;  %s190_s13 = sshll.u32 %s372_s10, 7  ;;  %v108_v0 = vld [vmem:[#allocation2] sm:$0xff] }
  0x34   : > { %318 = vsyncadd (%p492_p0), [#allocation3], 4294967168  ;;  %s188_s4 = sshll.u32 %s105_s3, 3  ;;  %s441_s18 = scalar_lea.hbm %s482_s1, %s190_s13 }
  0x35   : > { %s107_s5 = scalar_lea.vmem [#allocation5], %s188_s4  ;;  %s111_s20 = scalar_lea.sflag [#allocation4], %s105_s3 }
  0x36   : > { %s124_s11 = sshll.u32 %s107_s5, 4  ;;  %109 = vst [vmem:[%s107_s5] sm:$0xff] %v108_v0  ;;  %p493_p6 = scmp.ne.s32.totalorder %s486_s16, 0  ;;  %s436_s11 = int_to_ptr.vmem [resolvable:$true] %s124_s11 }
  0x37   : > { %s271_s21 = scalar_lea.vmem %s436_s11, 128  ;;  %s340_s22 = smov [#allocation5]  }
  0x38   : > { %p272_p5 = scmp.ne.s32.totalorder %s436_s11, %s271_s21  ;;  %s275_s10 = sshll.u32 %s340_s22, 4  ;;  %s276_s10 = int_to_ptr.vmem [resolvable:$false] %s275_s10 }
  0x39   : > { %s277_s23 = scalar_lea.vmem %s276_s10, 256  ;;  %p278_p12 = scmp.lt.s32.totalorder %s436_s11, %s276_s10 }
  0x3a   : > { %p273_p9 = pnand %p272_p5, %p493_p6  ;;  %p279_p2 = scmp.lt.s32.totalorder %s277_s23, %s271_s21 }
  0x3c   : > { %p274_p10 = pneg %p273_p9  ;;  %p280_p3 = por %p279_p2, %p278_p12 }
  0x3e   : > { %p281_p4 = pnand %p280_p3, %p274_p10 }
  0x40   : > { %284 = shalt.err (!%p281_p4)
}
  0x41   : > { %s285_s24 = scalar_lea.hbm %s441_s18, 128  ;;  %s289_s27 = scalar_lea.hbm %s482_s1, 256 }
  0x42   : > { %p286_p7 = scmp.ne.s32.totalorder %s441_s18, %s285_s24  ;;  %p290_p13 = scmp.lt.u32.totalorder %s441_s18, %s482_s1 }
  0x43   : > { %p291_p1 = scmp.lt.u32.totalorder %s289_s27, %s285_s24  ;;  %p293_p5 = scmp.lt.u32.totalorder %s285_s24, %s441_s18 }
  0x44   : > { %p287_p8 = pnand %p286_p7, %p493_p6 }
  0x45   : > { %p292_p0 = por %p291_p1, %p290_p13 }
  0x46   : > { %p288_p11 = pneg %p287_p8 }
  0x47   : > { %p294_p9 = por %p293_p5, %p292_p0 }
  0x49   : > { %p295_p10 = pnand %p294_p9, %p288_p11 }
  0x4b   : > { %298 = shalt.err (!%p295_p10)
}
  0x4c   : > { %197 = dma.vmem_to_hbm [thread:$0]  (%p493_p6), %s436_s11, 128, %s441_s18, %s111_s20  }
  0x4d PF: > { %p209_p12 = scmp.ge.s32.totalorder %s337_s9, 2  ;;  %s136_s30 = sand.u32 1, %s325_s6  }
  0x4e   : > { %p494_p2 = scmp.ne.s32.totalorder %s487_s17, 0  ;;  %s137_s2 = scalar_lea.sflag [#allocation4], %s136_s30 }
  0x50   : > { %p204_p3 = pnand %p209_p12, %p494_p2 }
  0x52   : > { %320 = dma.done.wait (!%p204_p3), %s137_s2, 128  }
  0x53   : > { %322 = vsyncadd (!%p204_p3), %s137_s2, 4294967168  ;;  %p12_p4 = scmp.ge.s32.totalorder %s376_s12, 4   ;;  %s495_s6 = smov %s329_s7 }
  0x54   : > { %s496_s7 = smov %s333_s8  ;;  %s497_s8 = smov %s387_s15 }
  0x55   : > { %s498_s9 = smov %s376_s12  ;;  %14 = sbr.rel (!%p12_p4) target bundleno = 4 (0x4), region = 61 }
  0x5c   :  { %142 = vsyncpa [#allocation3], 1 }
  0x5d   :  { %144 = vsyncpa [#allocation3 + $0x1], 1 }
  0x5e   :  { %145 = vsyncpa [#allocation4], 1 }
  0x5f   :  { %147 = vsyncpa [#allocation4 + $0x1], 1 }

// kernel: _lambda_.5
= control target key start
LH: loop header
LB: loop body
LE: loop exit
PB: predicated region body
PF: predicated region fallthrough
CT: control target
= control target key end

     0   :  { %vm40_vm0 = vcmask 1043456   ;;  %v157_v0 = vmov 0.0   ;;  %vm158_vm1 = vmmov 0   ;;  %vm36_vm2 = vcmask 64512   ;;  %s216_s1 = inlined_call_operand.vmem [shape: bf16[8,32], index: 1, kind: input, shape index: {}]   ;;  %s217_s0 = inlined_call_operand.vmem [shape: bf16[16,8], index: 0, kind: input, shape index: {}]   ;;  %s218_s2 = inlined_call_operand.vmem [shape: f32[1,32], index: 2, kind: input, shape index: {}]   ;;  %s219_s3 = inlined_call_operand.vmem [shape: f32[1,32], index: 3, kind: input, shape index: {}]   ;;  %s220_s4 = inlined_call_operand.vmem [shape: f32[1,32], index: 4, kind: input, shape index: {}]   ;;  %s221_s5 = inlined_call_operand.vmem [shape: f32[16,32], index: 5, kind: output, shape index: {}]  }
   0x1   :  { %144 = vmatprep.subr.bf16.mxu0 %v157_v0  ;;  %v23_v1 = vld [vmem:[%s216_s1] sm:$0xf]  ;;  %146 = vmatprep.mubr.msk.bf16.mxu0 %vm158_vm1, %v157_v0  ;;  %vm85_vm3 = vcmask 261120  }
   0x2   :  { %v42_v2 = vsel %vm40_vm0, %v23_v1, 0  ;;  %v152_v3 = vld [vmem:[%s217_s0] sm:$0xff]  }
   0x3   :  { %145 = vmatpush3.bf16.msra.mxu0 %v42_v2  ;;  %v137_v4 = vld [vmem:[%s218_s2] ss:$0 sm:$0xff] }
   0x4   :  { %v140_v30 = vld [vmem:[%s219_s3] ss:$0 sm:$0xff] }
   0x5   :  { %v141_v32 = vld [vmem:[%s220_s4] ss:$0 sm:$0xff] }
   0x6   :  { %147 = vmatmul.mubr.msk.bf16.vlgmr.msra.gmra.mrb[0].mxu0 %vm36_vm2, %v152_v3 }
  0xd9   :  { %v78_v5 = vpop.f32.mrb[0].mxu0 }
  0xda   :  { %v79_v6 = vadd.f32 %v137_v4, %v78_v5  ;;  %v148_v7 = vpop.f32.mrb[1].mxu0 }
  0xdb   :  { %v81_v8 = vpop.f32.mrb[2].mxu0 }
  0xdc   :  { %v82_v9 = vadd.f32 %v137_v4, %v81_v8  ;;  %v149_v10 = vpop.f32.mrb[3].mxu0  ;;  %v86_v11 = vsel %vm85_vm3, %v79_v6, 0.0 }
  0xdd   :  { %87 = vadd.xlane.f32.xlu0 %v86_v11 }
  0xde   :  { %v89_v12 = vsel %vm85_vm3, %v82_v9, 0.0 }
  0xe1   :  { %90 = vadd.xlane.f32.xlu0 %v89_v12 }
 0x16a   :  { %v88_v13 = vpop.xlane.xlu0 %87 }
 0x16b   :  { %v93_v14 = vmul.f32 0.03125, %v88_v13 }
 0x16d   :  { %v95_v15 = vsub.f32 %v79_v6, %v93_v14 }
 0x16e   :  { %v91_v16 = vpop.xlane.xlu0 %90 }
 0x16f   :  { %v94_v17 = vmul.f32 0.03125, %v91_v16  ;;  %v97_v18 = vmul.f32 %v95_v15, %v95_v15 }
 0x171   :  { %v96_v19 = vsub.f32 %v82_v9, %v94_v17  ;;  %v99_v20 = vsel %vm85_vm3, %v97_v18, 0.0 }
 0x172   :  { %100 = vadd.xlane.f32.xlu1 %v99_v20 }
 0x173   :  { %v98_v21 = vmul.f32 %v96_v19, %v96_v19 }
 0x175   :  { %v102_v22 = vsel %vm85_vm3, %v98_v21, 0.0 }
 0x176   :  { %103 = vadd.xlane.f32.xlu1 %v102_v22 }
 0x1ff   :  { %v101_v23 = vpop.xlane.xlu1 %100 }
 0x200   :  { %v105_v24 = vmul.f32 0.03125, %v101_v23 }
 0x202   :  { %v107_v25 = vadd.f32 1e-05, %v105_v24 }
 0x203   :  { %v104_v26 = vpop.xlane.xlu1 %103 }
 0x204   :  { %153 = vrsqrt.f32 %v107_v25  ;;  %v106_v27 = vmul.f32 0.03125, %v104_v26 }
 0x206   :  { %v108_v28 = vadd.f32 1e-05, %v106_v27 }
 0x208   :  { %155 = vrsqrt.f32 %v108_v28 }
 0x20e   :  { %v154_v29 = vpop.eup %153 }
 0x20f   :  { %v111_v31 = vmul.f32 %v154_v29, %v95_v15 }
 0x211   :  { %v120_v33 = vmul.f32 %v140_v30, %v111_v31 }
 0x212   :  { %v156_v34 = vpop.eup %155 }
 0x213   :  { %v129_v35 = vadd.f32 %v141_v32, %v120_v33  ;;  %v112_v36 = vmul.f32 %v156_v34, %v96_v19 }
 0x215   :  { %131 = vst.msk [vmem:[%s221_s5] sm:$0xff] %vm85_vm3, %v129_v35  ;;  %v121_v37 = vmul.f32 %v140_v30, %v112_v36 }
 0x217   :  { %v130_v38 = vadd.f32 %v141_v32, %v121_v37 }
 0x219   :  { %132 = vst.msk [vmem:[%s221_s5 + $0x8] sm:$0xff] %vm85_vm3, %v130_v38 }

// kernel: _lambda_.6
= control target key start
LH: loop header
LB: loop body
LE: loop exit
PB: predicated region body
PF: predicated region fallthrough
CT: control target
= control target key end

     0   :  { %s1585_s18 = smov 0   ;;  %s1762_s0 = inlined_call_operand.vmem [shape: f32[2,8,32], index: 0, kind: input, shape index: {}]   ;;  %s1763_s1 = inlined_call_operand.vmem [shape: f32[1,32], index: 1, kind: input, shape index: {}]   ;;  %s1764_s2 = inlined_call_operand.vmem [shape: f32[1,32], index: 2, kind: input, shape index: {}]   ;;  %s1765_s3 = inlined_call_operand.vmem [shape: bf16[32,32], index: 3, kind: input, shape index: {}]   ;;  %s1766_s4 = inlined_call_operand.vmem [shape: bf16[32,32], index: 4, kind: input, shape index: {}]   ;;  %s1767_s5 = inlined_call_operand.vmem [shape: bf16[32,32], index: 5, kind: input, shape index: {}]   ;;  %s1768_s6 = inlined_call_operand.vmem [shape: bf16[32,32], index: 6, kind: input, shape index: {}]   ;;  %s1769_s7 = inlined_call_operand.vmem [shape: f32[1,32], index: 7, kind: input, shape index: {}]   ;;  %s1770_s8 = inlined_call_operand.vmem [shape: f32[1,32], index: 8, kind: input, shape index: {}]   ;;  %s1771_s9 = inlined_call_operand.vmem [shape: bf16[32,128], index: 9, kind: input, shape index: {}]   ;;  %s1772_s10 = inlined_call_operand.vmem [shape: f32[1,128], index: 10, kind: input, shape index: {}]   ;;  %s1773_s11 = inlined_call_operand.vmem [shape: bf16[128,32], index: 11, kind: input, shape index: {}]   ;;  %s1774_s12 = inlined_call_operand.vmem [shape: f32[1,32], index: 12, kind: input, shape index: {}]   ;;  %s1775_s13 = inlined_call_operand.vmem [shape: f32[1,32], index: 13, kind: input, shape index: {}]   ;;  %s1776_s14 = inlined_call_operand.vmem [shape: f32[1,32], index: 14, kind: input, shape index: {}]   ;;  %s1777_s15 = inlined_call_operand.vmem [shape: f32[2,8,32], index: 15, kind: output, shape index: {}]  }
   0x1 LB: > { %s1287_s19 = sadd.s32 4294967295, %s1499_s18   ;;  %p1291_p0 = scmp.ge.s32.totalorder %s1499_s18, 1  ;;  %s1499_s18 = sphi %s1585_s18, %s25_s18  }
   0x2   : > { %p436_p1 = scmp.lt.s32.totalorder %s1499_s18, 3 }
   0x4   : > { %p437_p2 = pnand %p1291_p0, %p436_p1 }
   0x5   : > { %p482_p3 = scmp.lt.s32.totalorder (!%p437_p2), %s1287_s19, 1  ;;  %vm492_vm0 = vcmask (!%p437_p2), 261120   ;;  %v1459_v7 = vld [vmem:[%s1765_s3] sm:$0xff] (!%p437_p2)   ;;  %v1501_v8 = vmov (!%p437_p2), 0.0   ;;  %vm1502_vm1 = vmmov (!%p437_p2), 0   ;;  %v1460_v9 = vld [vmem:[%s1765_s3 + $0x8] sm:$0xff] (!%p437_p2)  }
   0x6   : > { %440 = sbr.rel (%p437_p2) target bundleno = 2839 (0xb17), region = 80  ;;  %1363 = vmatprep.subr.bf16.mxu0 (!%p437_p2), %v1501_v8  ;;  %1367 = vmatprep.mubr.msk.bf16.mxu0 (!%p437_p2), %vm1502_vm1, %v1501_v8  ;;  %v1294_v14 = vld [vmem:[%s1763_s1] ss:$0 sm:$0xff] (!%p437_p2)  ;;  %v1462_v21 = vld [vmem:[%s1766_s4 + $0x8] sm:$0xff] (!%p437_p2)   ;;  %vm698_vm2 = vcmask (!%p437_p2), 130048   ;;  %s1503_s28 = smov (!%p437_p2), 112  }
   0x7   : > { %1364 = vmatpush3.bf16.msra.mxu0 (!%p437_p2), %v1459_v7  ;;  %1387 = vmatprep.subr.bf16.mxu1 (!%p437_p2), %v1501_v8  ;;  %v1295_v16 = vld [vmem:[%s1764_s2] ss:$0 sm:$0xff] (!%p437_p2)  ;;  %v1464_v23 = vld [vmem:[%s1767_s5 + $0x8] sm:$0xff] (!%p437_p2)   ;;  %vm762_vm3 = vcmask (!%p437_p2), 1043456   ;;  %vm746_vm4 = vcmask (!%p437_p2), 64512   ;;  %s1504_s21 = smov (!%p437_p2), 16  }
   0x8   : > { %1365 = vmatprep.subr.bf16.mxu0 (!%p437_p2), %v1501_v8  ;;  %1389 = vmatprep.mubr.msk.bf16.mxu1 (!%p437_p2), %vm1502_vm1, %v1501_v8  ;;  %v1461_v19 = vld [vmem:[%s1766_s4] sm:$0xff] (!%p437_p2)  }
   0x9   : > { %v1463_v22 = vld [vmem:[%s1767_s5] sm:$0xff] (!%p437_p2)  }
   0xb   : > { %1366 = vmatpush3.bf16.msra.mxu0 (!%p437_p2), %v1460_v9 }
   0xc   : > { %1371 = vmatprep.subr.bf16.mxu0 (!%p437_p2), %v1501_v8 }
   0xd   : > { %s1779_s19 = smov (!%p482_p3, %s1287_s19), 1 }
   0xe   : > { %s1292_s20 = sshll.u32 %s1779_s19, 3 }
   0xf   : > { %s485_s23 = scalar_lea.vmem %s1762_s0, %s1292_s20  ;;  %s489_s17 = scalar_lea.vmem %s1777_s15, %s1292_s20 }
  0x10   : > { %v1601_v0 = vld [vmem:[%s485_s23] sm:$0xff] }
  0x11   : > { %v493_v1 = vsel %vm492_vm0, %v1601_v0, 0.0 }
  0x12   : > { %494 = vadd.xlane.f32.xlu0 %v493_v1 }
  0x9f   : > { %v495_v2 = vpop.xlane.xlu0 %494 }
  0xa0   : > { %v497_v3 = vmul.f32 0.03125, %v495_v2 }
  0xa2   : > { %v498_v4 = vsub.f32 %v1601_v0, %v497_v3 }
  0xa4   : > { %v499_v5 = vmul.f32 %v498_v4, %v498_v4 }
  0xa6   : > { %v500_v6 = vsel %vm492_vm0, %v499_v5, 0.0 }
  0xa7   : > { %501 = vadd.xlane.f32.xlu0 %v500_v6 }
 0x134   : > { %v502_v10 = vpop.xlane.xlu0 %501 }
 0x135   : > { %v503_v11 = vmul.f32 0.03125, %v502_v10 }
 0x137   : > { %v504_v12 = vadd.f32 1e-05, %v503_v11 }
 0x139   : > { %1477 = vrsqrt.f32 %v504_v12 }
 0x143   : > { %v1478_v13 = vpop.eup %1477 }
 0x144   : > { %v506_v15 = vmul.f32 %v1478_v13, %v498_v4 }
 0x146   : > { %v514_v17 = vmul.f32 %v1294_v14, %v506_v15  ;;  %v1465_v14 = vld [vmem:[%s1768_s6] sm:$0xff]  }
 0x148   : > { %v522_v18 = vadd.f32 %v1295_v16, %v514_v17 }
 0x14a   : > { %v523_v20 = vpack.c.bf16 %v522_v18, %v522_v18 }
 0x14c   : > { %1368 = vmatmul.mubr.msk.bf16.vlgmr.msra.gmra.mrb[0].mxu0 %vm492_vm0, %v523_v20 }
 0x14d   : > { %1372 = vmatpush3.bf16.msra.mxu0 %v1461_v19  ;;  %1375 = vmatprep.mubr.msk.bf16.mxu0 %vm1502_vm1, %v1501_v8  ;;  %v1466_v19 = vld [vmem:[%s1768_s6 + $0x8] sm:$0xff]  }
 0x14e   : > { %1373 = vmatprep.subr.bf16.mxu0 %v1501_v8 }
 0x151   : > { %1374 = vmatpush3.bf16.msra.mxu0 %v1462_v21 }
 0x152   : > { %1379 = vmatprep.subr.bf16.mxu0 %v1501_v8 }
 0x154   : > { %1376 = vmatmul.mubr.msk.bf16.vlgmr.msra.gmra.mrb[4].mxu0 %vm492_vm0, %v523_v20 }
 0x155   : > { %1380 = vmatpush3.bf16.msra.mxu0 %v1463_v22  ;;  %1383 = vmatprep.mubr.msk.bf16.mxu0 %vm1502_vm1, %v1501_v8 }
 0x156   : > { %1381 = vmatprep.subr.bf16.mxu0 %v1501_v8 }
 0x159   : > { %1382 = vmatpush3.bf16.msra.mxu0 %v1464_v23 }
 0x15a   : > { %1393 = vmatprep.subr.bf16.mxu0 %v1501_v8 }
 0x15c   : > { %1384 = vmatmul.mubr.msk.bf16.vlgmr.msra.gmra.mrb[8].mxu0 %vm492_vm0, %v523_v20 }
 0x15d   : > { %1395 = vmatprep.mubr.msk.bf16.mxu0 %vm1502_vm1, %v1501_v8 }
 0x21f   : > { %v577_v24 = vpop.f32.mrb[0].mxu0 }
 0x220   : > { %v1369_v25 = vpop.f32.mrb[1].mxu0  ;;  %v695_v34 = vpack.c.bf16 %v577_v24, %v577_v24 }
 0x221   : > { %v580_v26 = vpop.f32.mrb[2].mxu0 }
 0x222   : > { %v1370_v27 = vpop.f32.mrb[3].mxu0 }
 0x227   : > { %v633_v28 = vpop.f32.mrb[4].mxu0 }
 0x228   : > { %v696_v29 = vpack.c.bf16 %v633_v28, %v633_v28  ;;  %v1377_v30 = vpop.f32.mrb[5].mxu0 }
 0x229   : > { %v636_v31 = vpop.f32.mrb[6].mxu0 }
 0x22a   : > { %810 = vrot.lane.b32.xlu1 %v696_v29, %s1503_s28  ;;  %v1378_v32 = vpop.f32.mrb[7].mxu0  ;;  %v703_v33 = vsel %vm698_vm2, %v696_v29, 0 }
 0x22b   : > { %1388 = vmatpush3.bf16.xpose.msra.mxu1 %v703_v33 }
 0x22c   : > { %1399 = vmatprep.subr.bf16.mxu1 %v1501_v8 }
 0x22e   : > { %807 = vrot.lane.b32.xlu1 %v695_v34, %s1503_s28 }
 0x22f   : > { %v689_v35 = vpop.f32.mrb[8].mxu0 }
 0x230   : > { %v697_v36 = vpack.c.bf16 %v689_v35, %v689_v35  ;;  %v1385_v37 = vpop.f32.mrb[9].mxu0 }
 0x231   : > { %v692_v38 = vpop.f32.mrb[10].mxu0 }
 0x232   : > { %v764_v39 = vsel %vm762_vm3, %v697_v36, 0  ;;  %v1386_v40 = vpop.f32.mrb[11].mxu0  ;;  %1390 = vmatmul.mubr.msk.bf16.vlgmr.msra.gmra.mrb[0].mxu1 %vm698_vm2, %v695_v34  ;;  %v1467_v38 = vld [vmem:[%s1771_s9] sm:$0xff]  }
 0x233   : > { %1394 = vmatpush3.bf16.msra.mxu0 %v764_v39  ;;  %1401 = vmatprep.mubr.msk.bf16.mxu1 %vm1502_vm1, %v1501_v8 }
 0x234   : > { %1405 = vmatprep.subr.bf16.mxu0 %v1501_v8 }
 0x29c   : > { %v811_v41 = vpop.permute.xlu1 %810 }
 0x29d   : > { %v816_v42 = vsel %vm698_vm2, %v811_v41, 0 }
 0x29e   : > { %1400 = vmatpush3.bf16.xpose.msra.mxu1 %v816_v42 }
 0x29f   : > { %1411 = vmatprep.subr.bf16.mxu1 %v1501_v8 }
 0x2a0   : > { %v808_v43 = vpop.permute.xlu1 %807 }
 0x2a5   : > { %1402 = vmatmul.mubr.msk.bf16.vlgmr.msra.gmra.mrb[4].mxu1 %vm698_vm2, %v808_v43  ;;  %v1312_v43 = vld [vmem:[%s1769_s7] ss:$0 sm:$0xff] }
 0x2a6   : > { %1415 = vmatprep.mubr.msk.bf16.mxu1 %vm1502_vm1, %v1501_v8  ;;  %1412 = vmatpush3.bf16.msra.mxu1 %v1465_v14 }
 0x2a7   : > { %1413 = vmatprep.subr.bf16.mxu1 %v1501_v8 }
 0x2aa   : > { %1414 = vmatpush3.bf16.msra.mxu1 %v1466_v19 }
 0x2ab   : > { %1427 = vmatprep.subr.bf16.mxu1 %v1501_v8 }
 0x305   : > { %v739_v44 = vpop.f32.mrb[0].mxu1 }
 0x306   : > { %v745_v45 = vmul.f32 0.25, %v739_v44  ;;  %v1391_v46 = vpop.f32.mrb[1].mxu1 }
 0x307   : > { %v742_v47 = vpop.f32.mrb[2].mxu1 }
 0x308   : > { %v1392_v48 = vpop.f32.mrb[3].mxu1  ;;  %v747_v49 = vsel %vm746_vm4, %v745_v45, -inf }
 0x309   : > { %748 = vmax.xlane.f32.xlu0 %v747_v49  ;;  %v1469_v49 = vld [vmem:[%s1773_s11] sm:$0xff]  }
 0x378   : > { %v852_v50 = vpop.f32.mrb[4].mxu1 }
 0x379   : > { %v858_v51 = vmul.f32 0.25, %v852_v50  ;;  %v1403_v52 = vpop.f32.mrb[5].mxu1  ;;  %v1470_v50 = vld [vmem:[%s1773_s11 + $0x8] sm:$0xff]  }
 0x37a   : > { %v855_v53 = vpop.f32.mrb[6].mxu1  ;;  %v1472_v52 = vld [vmem:[%s1773_s11 + $0x18] sm:$0xff]  }
 0x37b   : > { %v1404_v54 = vpop.f32.mrb[7].mxu1  ;;  %v859_v55 = vsel %vm746_vm4, %v858_v51, -inf  ;;  %v1473_v53 = vld [vmem:[%s1773_s11 + $0x20] sm:$0xff]  }
 0x37c   : > { %860 = vmax.xlane.f32.xlu1 %v859_v55  ;;  %v1474_v54 = vld [vmem:[%s1773_s11 + $0x28] sm:$0xff]   ;;  %v1475_v55 = vld [vmem:[%s1773_s11 + $0x30] sm:$0xff]  }
 0x396   : > { %v749_v56 = vpop.xlane.xlu0 %748 }
 0x397   : > { %v750_v57 = vsub.f32 %v745_v45, %v749_v56  ;;  %v1313_v45 = vld [vmem:[%s1770_s8] ss:$0 sm:$0xff]  ;;  %v1476_v56 = vld [vmem:[%s1773_s11 + $0x38] sm:$0xff]  }
 0x399   : > { %v751_v58 = vmul.f32 1.442695, %v750_v57  ;;  %v1314_v57 = vld [vmem:[%s1772_s10] ss:$0 sm:$0xff] }
 0x39b   : > { %1479 = vpow2.f32 %v751_v58 }
 0x3a5   : > { %v1480_v59 = vpop.eup %1479 }
 0x3a6   : > { %v753_v60 = vsel %vm746_vm4, %v1480_v59, 0.0 }
 0x3a7   : > { %754 = vadd.xlane.f32.xlu0 %v753_v60 }
 0x409   : > { %v861_v61 = vpop.xlane.xlu1 %860 }
 0x40a   : > { %v862_v62 = vsub.f32 %v858_v51, %v861_v61  ;;  %v1471_v51 = vld [vmem:[%s1773_s11 + $0x10] sm:$0xff]  }
 0x40c   : > { %v863_v63 = vmul.f32 1.442695, %v862_v62 }
 0x40e   : > { %1481 = vpow2.f32 %v863_v63 }
 0x418   : > { %v1482_v1 = vpop.eup %1481 }
 0x419   : > { %v865_v2 = vsel %vm746_vm4, %v1482_v1, 0.0 }
 0x41a   : > { %866 = vadd.xlane.f32.xlu0 %v865_v2 }
 0x430   : > { %872 = vrot.lane.b32.xlu0 %v697_v36, %s1503_s28 }
 0x434   : > { %v755_v3 = vpop.xlane.xlu0 %754 }
 0x435   : > { %1483 = vrcp.f32 %v755_v3 }
 0x43f   : > { %v1484_v4 = vpop.eup %1483 }
 0x440   : > { %v757_v5 = vmul.f32 %v1484_v4, %v1480_v59 }
 0x442   : > { %v758_v6 = vpack.c.bf16 %v757_v5, %v757_v5 }
 0x444   : > { %1396 = vmatmul.mubr.msk.bf16.vlgmr.msra.gmra.mrb[12].mxu0 %vm746_vm4, %v758_v6 }
 0x445   : > { %1407 = vmatprep.mubr.msk.bf16.mxu0 %vm1502_vm1, %v1501_v8 }
 0x4a7   : > { %v867_v7 = vpop.xlane.xlu0 %866 }
 0x4a8   : > { %1485 = vrcp.f32 %v867_v7 }
 0x4ab   : > { %v873_v9 = vpop.permute.xlu0 %872 }
 0x4ac   : > { %v878_v10 = vsel %vm762_vm3, %v873_v9, 0 }
 0x4ad   : > { %1406 = vmatpush3.bf16.msra.mxu0 %v878_v10  ;;  %v1318_v10 = vld [vmem:[%s1774_s12] ss:$0 sm:$0xff] }
 0x4ae   : > { %1419 = vmatprep.subr.bf16.mxu0 %v1501_v8 }
 0x4b2   : > { %v1486_v11 = vpop.eup %1485 }
 0x4b3   : > { %v869_v12 = vmul.f32 %v1486_v11, %v1482_v1 }
 0x4b5   : > { %v870_v13 = vpack.c.bf16 %v869_v12, %v869_v12 }
 0x4b7   : > { %1408 = vmatmul.mubr.msk.bf16.vlgmr.msra.gmra.mrb[16].mxu0 %vm746_vm4, %v870_v13 }
 0x4b8   : > { %1423 = vmatprep.mubr.msk.bf16.mxu0 %vm1502_vm1, %v1501_v8  ;;  %1420 = vmatpush3.bf16.msra.mxu0 %v1467_v38 }
 0x4b9   : > { %1421 = vmatprep.subr.bf16.mxu0 %v1501_v8 }
 0x517   : > { %v800_v15 = vpop.f32.mrb[12].mxu0 }
 0x518   : > { %v1397_v16 = vpop.f32.mrb[13].mxu0 }
 0x519   : > { %v803_v17 = vpop.f32.mrb[14].mxu0 }
 0x51a   : > { %v1398_v18 = vpop.f32.mrb[15].mxu0 }
 0x58a   : > { %v914_v20 = vpop.f32.mrb[16].mxu0 }
 0x58b   : > { %921 = vrot.lane.b32.xlu0 %v914_v20, %s1504_s21  ;;  %v1409_v21 = vpop.f32.mrb[17].mxu0 }
 0x58c   : > { %v917_v22 = vpop.f32.mrb[18].mxu0 }
 0x58d   : > { %v1410_v23 = vpop.f32.mrb[19].mxu0 }
 0x5fd   : > { %v922_v24 = vpop.permute.xlu0 %921 }
 0x5fe   : > { %v924_v25 = vsel %vm698_vm2, %v800_v15, %v922_v24 }
 0x5ff   : > { %v925_v26 = vpack.c.bf16 %v924_v25, %v924_v25 }
 0x601   : > { %1416 = vmatmul.mubr.msk.bf16.vlgmr.msra.gmra.mrb[8].mxu1 %vm492_vm0, %v925_v26 }
 0x602   : > { %1443 = vmatprep.mubr.msk.bf16.mxu1 %vm1502_vm1, %v1501_v8  ;;  %1428 = vmatpush3.bf16.msra.mxu1 %v1469_v49 }
 0x603   : > { %1429 = vmatprep.subr.bf16.mxu1 %v1501_v8 }
 0x606   : > { %1430 = vmatpush3.bf16.msra.mxu1 %v1470_v50 }
 0x607   : > { %1431 = vmatprep.subr.bf16.mxu1 %v1501_v8 }
 0x60a   : > { %1432 = vmatpush3.bf16.msra.mxu1 %v1471_v51 }
 0x60b   : > { %1433 = vmatprep.subr.bf16.mxu1 %v1501_v8 }
 0x60e   : > { %1434 = vmatpush3.bf16.msra.mxu1 %v1472_v52 }
 0x60f   : > { %1435 = vmatprep.subr.bf16.mxu1 %v1501_v8 }
 0x612   : > { %1436 = vmatpush3.bf16.msra.mxu1 %v1473_v53 }
 0x613   : > { %1437 = vmatprep.subr.bf16.mxu1 %v1501_v8 }
 0x616   : > { %1438 = vmatpush3.bf16.msra.mxu1 %v1474_v54 }
 0x617   : > { %1439 = vmatprep.subr.bf16.mxu1 %v1501_v8 }
 0x61a   : > { %1440 = vmatpush3.bf16.msra.mxu1 %v1475_v55 }
 0x61b   : > { %1441 = vmatprep.subr.bf16.mxu1 %v1501_v8 }
 0x61e   : > { %1442 = vmatpush3.bf16.msra.mxu1 %v1476_v56 }
 0x6d4   : > { %v979_v27 = vpop.f32.mrb[8].mxu1 }
 0x6d5   : > { %v985_v28 = vadd.f32 %v979_v27, %v1601_v0  ;;  %v1417_v29 = vpop.f32.mrb[9].mxu1  ;;  %v1468_v0 = vld [vmem:[%s1771_s9 + $0x8] sm:$0xff]   ;;  %v1327_v27 = vld [vmem:[%s1775_s13] ss:$0 sm:$0xff] }
 0x6d6   : > { %v982_v30 = vpop.f32.mrb[10].mxu1  ;;  %1422 = vmatpush3.bf16.msra.mxu0 %v1468_v0  ;;  %v1328_v29 = vld [vmem:[%s1776_s14] ss:$0 sm:$0xff] }
 0x6d7   : > { %v1418_v31 = vpop.f32.mrb[11].mxu1  ;;  %v986_v32 = vsel %vm492_vm0, %v985_v28, 0.0 }
 0x6d8   : > { %987 = vadd.xlane.f32.xlu1 %v986_v32 }
 0x765   : > { %v988_v33 = vpop.xlane.xlu1 %987 }
 0x766   : > { %v989_v34 = vmul.f32 0.03125, %v988_v33 }
 0x768   : > { %v990_v35 = vsub.f32 %v985_v28, %v989_v34 }
 0x76a   : > { %v991_v36 = vmul.f32 %v990_v35, %v990_v35 }
 0x76c   : > { %v992_v37 = vsel %vm492_vm0, %v991_v36, 0.0 }
 0x76d   : > { %993 = vadd.xlane.f32.xlu0 %v992_v37 }
 0x7fa   : > { %v994_v39 = vpop.xlane.xlu0 %993 }
 0x7fb   : > { %v995_v40 = vmul.f32 0.03125, %v994_v39 }
 0x7fd   : > { %v996_v41 = vadd.f32 1e-05, %v995_v40 }
 0x7ff   : > { %1487 = vrsqrt.f32 %v996_v41 }
 0x809   : > { %v1488_v42 = vpop.eup %1487 }
 0x80a   : > { %v998_v44 = vmul.f32 %v1488_v42, %v990_v35 }
 0x80c   : > { %v1006_v46 = vmul.f32 %v1312_v43, %v998_v44 }
 0x80e   : > { %v1014_v47 = vadd.f32 %v1313_v45, %v1006_v46 }
 0x810   : > { %v1015_v48 = vpack.c.bf16 %v1014_v47, %v1014_v47 }
 0x812   : > { %1424 = vmatmul.mubr.msk.bf16.vlgmr.msra.gmra.mrb[20].mxu0 %vm492_vm0, %v1015_v48 }
 0x8e5   : > { %v1076_v58 = vpop.f32.mrb[20].mxu0 }
 0x8e6   : > { %v1077_v59 = vadd.f32 %v1314_v57, %v1076_v58  ;;  %v1425_v60 = vpop.f32.mrb[21].mxu0 }
 0x8e7   : > { %v1079_v61 = vpop.f32.mrb[22].mxu0 }
 0x8e8   : > { %v1082_v62 = vmul.f32 %v1077_v59, %v1077_v59  ;;  %v1426_v63 = vpop.f32.mrb[23].mxu0 }
 0x8ea   : > { %v1083_v1 = vmul.f32 %v1082_v62, %v1077_v59 }
 0x8ec   : > { %v1084_v2 = vmul.f32 0.044715, %v1083_v1 }
 0x8ee   : > { %v1085_v3 = vadd.f32 %v1084_v2, %v1077_v59 }
 0x8f0   : > { %v1086_v4 = vmul.f32 0.7978846, %v1085_v3 }
 0x8f2   : > { %1489 = vtanh.f32 %v1086_v4 }
 0x8fc   : > { %v1490_v5 = vpop.eup %1489 }
 0x8fd   : > { %v1088_v6 = vadd.f32 1.0, %v1490_v5 }
 0x8ff   : > { %v1089_v7 = vmul.f32 0.5, %v1088_v6 }
 0x901   : > { %v1090_v8 = vmul.f32 %v1089_v7, %v1077_v59 }
 0x903   : > { %v1091_v9 = vpack.c.bf16 %v1090_v8, %v1090_v8 }
 0x905   : > { %1444 = vmatmul.mubr.bf16.vlgmr.msra.gmra.mrb[12].mxu1 %v1091_v9 }
 0x9d8   : > { %v1197_v11 = vpop.f32.mrb[12].mxu1 }
 0x9d9   : > { %v1198_v12 = vadd.f32 %v1318_v10, %v1197_v11  ;;  %v1445_v13 = vpop.f32.mrb[13].mxu1 }
 0x9da   : > { %v1200_v14 = vpop.f32.mrb[14].mxu1 }
 0x9db   : > { %v1446_v15 = vpop.f32.mrb[15].mxu1  ;;  %v1203_v16 = vadd.f32 %v1198_v12, %v1014_v47 }
 0x9dd   : > { %v1204_v17 = vsel %vm492_vm0, %v1203_v16, 0.0 }
 0x9de   : > { %1205 = vadd.xlane.f32.xlu1 %v1204_v17 }
 0xa6b   : > { %v1206_v18 = vpop.xlane.xlu1 %1205 }
 0xa6c   : > { %v1207_v19 = vmul.f32 0.03125, %v1206_v18 }
 0xa6e   : > { %v1208_v20 = vsub.f32 %v1203_v16, %v1207_v19 }
 0xa70   : > { %v1209_v21 = vmul.f32 %v1208_v20, %v1208_v20 }
 0xa72   : > { %v1210_v22 = vsel %vm492_vm0, %v1209_v21, 0.0 }
 0xa73   : > { %1211 = vadd.xlane.f32.xlu1 %v1210_v22 }
 0xb00   : > { %v1212_v23 = vpop.xlane.xlu1 %1211 }
 0xb01   : > { %v1213_v24 = vmul.f32 0.03125, %v1212_v23 }
 0xb03   : > { %v1214_v25 = vadd.f32 1e-05, %v1213_v24 }
 0xb05   : > { %1491 = vrsqrt.f32 %v1214_v25 }
 0xb0f   : > { %v1492_v26 = vpop.eup %1491 }
 0xb10   : > { %v1216_v28 = vmul.f32 %v1492_v26, %v1208_v20 }
 0xb12   : > { %v1224_v30 = vmul.f32 %v1327_v27, %v1216_v28 }
 0xb14   : > { %v1232_v31 = vadd.f32 %v1328_v29, %v1224_v30 }
 0xb16   : > { %1233 = vst.msk [vmem:[%s489_s17] sm:$0xff] %vm492_vm0, %v1232_v31 }
 0xb17 PF: > { %s25_s18 = sadd.s32 1, %s1499_s18  }
 0xb18   : > { %p22_p4 = scmp.ge.s32.totalorder %s25_s18, 4  }
 0xb1a   :  { %24 = sbr.rel (!%p22_p4) target bundleno = 1 (0x1), region = 110 }

// kernel: _lambda_.7
= control target key start
LH: loop header
LB: loop body
LE: loop exit
PB: predicated region body
PF: predicated region fallthrough
CT: control target
= control target key end

     0   :  { %s3933_s6 = smov 1   ;;  %s3934_s10 = smov 2   ;;  %s4932_s0 = inlined_call_operand.smem [shape: u32[36], index: -1, kind: input, shape index: {}] }
   0x1   :  { %s3984_s5 = sld [smem:[%s4932_s0]]   ;;  %s3935_s14 = smov 3  }
   0x2   :  { %s3989_s9 = sld [smem:[%s4932_s0 + %s3933_s6]]   ;;  %s3936_s18 = smov 4  }
   0x3   :  { %s3994_s13 = sld [smem:[%s4932_s0 + %s3934_s10]]   ;;  %s3937_s22 = smov 5  }
   0x4   :  { %s3999_s17 = sld [smem:[%s4932_s0 + %s3935_s14]]   ;;  %s3938_s26 = smov 6  }
   0x5   :  { %s4004_s21 = sld [smem:[%s4932_s0 + %s3936_s18]]   ;;  %s3939_s30 = smov 7  }
   0x6   :  { %s4009_s25 = sld [smem:[%s4932_s0 + %s3937_s22]]   ;;  %s3940_s4 = smov 8  }
   0x7   :  { %4939 = sst [smem:[#allocation5_spill]] %s3984_s5  ;;  %s3941_s10 = smov 9  }
   0x8   :  { %s4014_s29 = sld [smem:[%s4932_s0 + %s3938_s26]]   ;;  %s3942_s15 = smov 10  }
   0x9   :  { %s4019_s3 = sld [smem:[%s4932_s0 + %s3939_s30]]   ;;  %s3943_s20 = smov 11  }
   0xa   :  { %s4024_s8 = sld [smem:[%s4932_s0 + %s3940_s4]]   ;;  %s3944_s26 = smov 12  }
   0xb   :  { %s4029_s14 = sld [smem:[%s4932_s0 + %s3941_s10]]   ;;  %s3945_s1 = smov 13  }
   0xc   :  { %s4034_s19 = sld [smem:[%s4932_s0 + %s3942_s15]]   ;;  %s3946_s7 = smov 14  }
   0xd   :  { %s4039_s24 = sld [smem:[%s4932_s0 + %s3943_s20]]   ;;  %s3947_s15 = smov 15  }
   0xe   :  { %s4044_s30 = sld [smem:[%s4932_s0 + %s3944_s26]]   ;;  %s3948_s22 = smov 16  }
   0xf   :  { %4940 = sst [smem:[#allocation6_spill]] %s4019_s3  ;;  %s3949_s28 = smov 17  }
  0x10   :  { %4941 = sst [smem:[#allocation7_spill]] %s4024_s8 }
  0x11   :  { %s4049_s6 = sld [smem:[%s4932_s0 + %s3945_s1]]  }
  0x12   :  { %4942 = sst [smem:[#allocation8_spill]] %s4034_s19 }
  0x13   :  { %s4054_s12 = sld [smem:[%s4932_s0 + %s3946_s7]]   ;;  %s3950_s7 = smov 18  }
  0x14   :  { %s4059_s20 = sld [smem:[%s4932_s0 + %s3947_s15]]   ;;  %s3951_s15 = smov 19  }
  0x15   :  { %s4064_s27 = sld [smem:[%s4932_s0 + %s3948_s22]]   ;;  %s3952_s22 = smov 20  }
  0x16   :  { %s4069_s4 = sld [smem:[%s4932_s0 + %s3949_s28]]   ;;  %s3953_s28 = smov 21  }
  0x17   :  { %4943 = sst [smem:[#allocation9_spill]] %s4049_s6 }
  0x19   :  { %4944 = sst [smem:[#allocation10_spill]] %s4054_s12 }
  0x1a   :  { %4945 = sst [smem:[#allocation11_spill]] %s4059_s20 }
  0x1b   :  { %4946 = sst [smem:[#allocation12_spill]] %s4064_s27 }
  0x1c   :  { %4947 = sst [smem:[#allocation13_spill]] %s4069_s4 }
  0x1d   :  { %s4074_s12 = sld [smem:[%s4932_s0 + %s3950_s7]]   ;;  %s3954_s7 = smov 22  }
  0x1e   :  { %s4079_s20 = sld [smem:[%s4932_s0 + %s3951_s15]]   ;;  %s3955_s15 = smov 23  }
  0x1f   :  { %s4084_s27 = sld [smem:[%s4932_s0 + %s3952_s22]]   ;;  %s3956_s22 = smov 24  }
  0x20   :  { %s4089_s4 = sld [smem:[%s4932_s0 + %s3953_s28]]   ;;  %s3957_s28 = smov 25  }
  0x23   :  { %4948 = sst [smem:[#allocation14_spill]] %s4074_s12 }
  0x24   :  { %4949 = sst [smem:[#allocation15_spill]] %s4079_s20 }
  0x25   :  { %4950 = sst [smem:[#allocation16_spill]] %s4084_s27 }
  0x26   :  { %4951 = sst [smem:[#allocation17_spill]] %s4089_s4 }
  0x27   :  { %s4094_s12 = sld [smem:[%s4932_s0 + %s3954_s7]]   ;;  %s3958_s7 = smov 26  }
  0x28   :  { %s4099_s20 = sld [smem:[%s4932_s0 + %s3955_s15]]   ;;  %s3959_s15 = smov 27  }
  0x29   :  { %s4104_s27 = sld [smem:[%s4932_s0 + %s3956_s22]]   ;;  %s3960_s22 = smov 28  }
  0x2a   :  { %s4109_s4 = sld [smem:[%s4932_s0 + %s3957_s28]]   ;;  %s3961_s28 = smov 29  }
  0x2d   :  { %4952 = sst [smem:[#allocation18_spill]] %s4094_s12 }
  0x2e   :  { %4953 = sst [smem:[#allocation19_spill]] %s4099_s20 }
  0x2f   :  { %4954 = sst [smem:[#allocation20_spill]] %s4104_s27 }
  0x30   :  { %4955 = sst [smem:[#allocation21_spill]] %s4109_s4 }
  0x31   :  { %s4114_s12 = sld [smem:[%s4932_s0 + %s3958_s7]]   ;;  %s3962_s7 = smov 30  }
  0x32   :  { %s4119_s20 = sld [smem:[%s4932_s0 + %s3959_s15]]   ;;  %s3963_s15 = smov 31  }
  0x33   :  { %s4124_s27 = sld [smem:[%s4932_s0 + %s3960_s22]]   ;;  %s3964_s22 = smov 32  }
  0x34   :  { %s4129_s4 = sld [smem:[%s4932_s0 + %s3961_s28]]   ;;  %s3965_s28 = smov 33  }
  0x37   :  { %4956 = sst [smem:[#allocation22_spill]] %s4114_s12 }
  0x38   :  { %4957 = sst [smem:[#allocation23_spill]] %s4119_s20 }
  0x39   :  { %4958 = sst [smem:[#allocation24_spill]] %s4124_s27 }
  0x3a   :  { %4959 = sst [smem:[#allocation25_spill]] %s4129_s4 }
  0x3b   :  { %s4134_s12 = sld [smem:[%s4932_s0 + %s3962_s7]]   ;;  %s3966_s7 = smov 34  }
  0x3c   :  { %s4139_s20 = sld [smem:[%s4932_s0 + %s3963_s15]]   ;;  %s3967_s15 = smov 35  }
  0x3d   :  { %s4144_s27 = sld [smem:[%s4932_s0 + %s3964_s22]]  }
  0x3e   :  { %s4149_s4 = sld [smem:[%s4932_s0 + %s3965_s28]]  }
  0x41   :  { %4960 = sst [smem:[#allocation26_spill]] %s4134_s12 }
  0x42   :  { %4961 = sst [smem:[#allocation27_spill]] %s4139_s20 }
  0x43   :  { %s4154_s12 = sld [smem:[%s4932_s0 + %s3966_s7]]  }
  0x44   :  { %4962 = sst [smem:[#allocation28_spill]] %s4149_s4 }
  0x45   :  { %s4159_s20 = sld [smem:[%s4932_s0 + %s3967_s15]]  }
  0x46   :  { %77 = vsyncpa [#allocation3], 0 }
  0x47   :  { %79 = vsyncpa [#allocation3 + $0x1], 0  ;;  %s4161_s22 = smov 0   ;;  %s4163_s23 = smov 0  }
  0x48   :  { %s4165_s26 = smov 0   ;;  %s4167_s28 = smov 0  }
  0x49 LB: > { %s4182_s0 = sadd.s32 4294967295, %s3931_s28   ;;  %s3436_s1 = sadd.s32 4294967294, %s3931_s28   ;;  %s3931_s28 = sphi %s4167_s28, %s4995_s28   ;;  %s3927_s26 = sphi %s4165_s26, %s4994_s26   ;;  %s3923_s23 = sphi %s4163_s23, %s4993_s23   ;;  %s3919_s22 = sphi %s4161_s22, %s4992_s22  }
  0x4a   : > { %s4186_s2 = sadd.s32 1, %s3931_s28   ;;  %s847_s7 = sadd.s32 1, %s3927_s26 }
  0x4b   : > { %s844_s10 = ssub.s32 %s3931_s28, %s4186_s2  ;;  %p857_p0 = scmp.ne.s32.totalorder %s3927_s26, %s3923_s23 }
  0x4c   : > { %p845_p1 = scmp.eq.s32.totalorder %s844_s10, 0  ;;  %p858_p2 = scmp.eq.s32.totalorder %s4182_s0, 1 }
  0x4d   : > { %p863_p3 = scmp.ne.s32.totalorder %s3923_s23, %s3919_s22  ;;  %p864_p4 = scmp.eq.s32.totalorder %s3436_s1, 1 }
  0x4e   : > { %s4197_s11 = scalar_select %p845_p1, %s3927_s26, %s847_s7  }
  0x4f   : > { %p4199_p5 = por %p858_p2, %p857_p0  ;;  %p4203_p6 = por %p864_p4, %p863_p3 }
  0x50   : > { %p3439_p7 = scmp.ge.s32.totalorder %s3931_s28, 1  ;;  %p998_p8 = scmp.lt.s32.totalorder %s3931_s28, 3 }
  0x52   : > { %p999_p9 = pnand %p3439_p7, %p998_p8 }
  0x53   : > { %s4965_s19 = sld [smem:[#allocation8_spill]] (!%p999_p9)  ;;  %v3775_v0 = vld [vmem:[%s4004_s21] sm:$0xff] (!%p999_p9)   ;;  %v1503_v1 = vlaneseq (!%p999_p9)  ;;  %v3968_v2 = vmov (!%p999_p9), 0.0   ;;  %s4966_s8 = sld [smem:[#allocation7_spill]] (!%p999_p9)  ;;  %vm3969_vm0 = vmmov (!%p999_p9), 0   ;;  %vm1152_vm1 = vcmask (!%p999_p9), 130048  }
  0x54   : > { %1002 = sbr.rel (%p999_p9) target bundleno = 2470 (0x9a6), region = 156  ;;  %3590 = vmatprep.subr.bf16.mxu0 (!%p999_p9), %v3968_v2  ;;  %3596 = vmatprep.subr.bf16.mxu1 (!%p999_p9), %v3968_v2  ;;  %v3776_v3 = vld [vmem:[%s4014_s29] sm:$0xff] (!%p999_p9)   ;;  %s4967_s5 = sld [smem:[#allocation5_spill]] (!%p999_p9)  ;;  %v3970_v47 = vmov (!%p999_p9), 1966171168   ;;  %vm1975_vm2 = vcmask (!%p999_p9), 1043456  }
  0x55   : > { %3591 = vmatpush3.bf16.msra.mxu0 (!%p999_p9), %v3775_v0  ;;  %3592 = vmatprep.mubr.msk.bf16.mxu0 (!%p999_p9), %vm3969_vm0, %v3968_v2  ;;  %p1099_p10 = scmp.lt.s32.totalorder (!%p999_p9), %s4182_s0, 1  ;;  %v4220_v5 = vshrl.u32 (!%p999_p9), %v1503_v1, 7  ;;  %v4227_v6 = vld [vmem:[%s3999_s17] sm:$0xff] (!%p999_p9)  ;;  %v1501_v48 = vunpack.c.l.s4 (!%p999_p9), %v3970_v47  ;;  %s4968_s3 = sld [smem:[#allocation6_spill]] (!%p999_p9)  ;;  %vm1612_vm3 = vcmask (!%p999_p9), 64512   ;;  %vm1864_vm4 = vcmask (!%p999_p9), 1041409  }
  0x56   : > { %3597 = vmatpush3.bf16.msra.mxu1 (!%p999_p9), %v3776_v3  ;;  %3598 = vmatprep.mubr.msk.bf16.mxu1 (!%p999_p9), %vm3969_vm0, %v3968_v2  ;;  %v3779_v15 = vld [vmem:[%s4044_s30] sm:$0xff] (!%p999_p9)   ;;  %s4969_s6 = sld [smem:[#allocation9_spill]] (!%p999_p9)  ;;  %vm1866_vm5 = vcmask (!%p999_p9), 1042434   ;;  %vm1868_vm6 = vcmask (!%p999_p9), 1043459   ;;  %vm1870_vm7 = vcmask (!%p999_p9), 1044484   ;;  %vm1872_vm8 = vcmask (!%p999_p9), 1045509  }
  0x57   : > { %3602 = vmatprep.subr.bf16.mxu0 (!%p999_p9), %v3968_v2  ;;  %v4230_v7 = vsub.s32 (!%p999_p9), 0, %v4220_v5  ;;  %v1726_v37 = vsub.s32 (!%p999_p9), 2, %v4220_v5  ;;  %v1733_v39 = vsub.s32 (!%p999_p9), 3, %v4220_v5  ;;  %v1719_v41 = vsub.s32 (!%p999_p9), 1, %v4220_v5  ;;  %v3447_v50 = vld [vmem:[%s4009_s25] ss:$0 sm:$0xff] (!%p999_p9) }
  0x58   : > { %v1747_v43 = vsub.s32 (!%p999_p9), 5, %v4220_v5  ;;  %v1740_v45 = vsub.s32 (!%p999_p9), 4, %v4220_v5  ;;  %v1502_v49 = vunpack.c.0.s8 (!%p999_p9), %v1501_v48  ;;  %vm1874_vm9 = vcmask (!%p999_p9), 1046534   ;;  %s4986_s4 = sld [smem:[#allocation28_spill]] (!%p999_p9) }
  0x59   : > { %v3777_v4 = vld [vmem:[%s4965_s19] sm:$0xff] (!%p999_p9)   ;;  %v1713_v9 = vrot.slane (!%p999_p9), %v4227_v6, %v4230_v7  ;;  %v1727_v38 = vrot.slane (!%p999_p9), %v4227_v6, %v1726_v37  ;;  %v1734_v40 = vrot.slane (!%p999_p9), %v4227_v6, %v1733_v39  ;;  %v1720_v42 = vrot.slane (!%p999_p9), %v4227_v6, %v1719_v41 }
  0x5a   : > { %3608 = vmatprep.subr.bf16.mxu1 (!%p999_p9), %v3777_v4  ;;  %v3778_v8 = vld [vmem:[%s4966_s8] sm:$0xff] (!%p999_p9)   ;;  %v1748_v44 = vrot.slane (!%p999_p9), %v4227_v6, %v1747_v43  ;;  %v1741_v46 = vrot.slane (!%p999_p9), %v4227_v6, %v1740_v45  ;;  %v1505_v51 = vsub.s32 (!%p999_p9), %v1502_v49, %v4220_v5  ;;  %vm1876_vm10 = vcmask (!%p999_p9), 1047559  }
  0x5b   : > { %s4223_s18 = scalar_select %p1099_p10, %s4182_s0, 1  ;;  %1715 = vbcast.lane.b32.xlu1 %v1713_v9, 256  ;;  %1722 = vbcast.lane.b32.xlu0 %v1720_v42, 256  ;;  %vm2837_vm11 = vcmask 261120  }
  0x5d   : > { %s4935_s1 = sshll.u32 %s4223_s18, 3  ;;  %s3544_s7 = sshll.u32 %s4223_s18, 6 }
  0x5e   : > { %s4238_s10 = scalar_lea.vmem %s4967_s5, %s4935_s1  ;;  %s4241_s19 = scalar_lea.vmem %s3989_s9, %s3544_s7 }
  0x5f   : > { %v1118_v10 = vld [vmem:[%s4238_s10] sm:$0xff]  ;;  %v1120_v12 = vld [vmem:[%s4241_s19 + $0x8] sm:$0xff]  ;;  %s4249_s1 = scalar_lea.vmem %s3994_s13, %s3544_s7  ;;  %v1121_v16 = vld [vmem:[%s4241_s19 + $0x10] sm:$0xff]  ;;  %1729 = vbcast.lane.b32.xlu1 %v1727_v38, 256  ;;  %1743 = vbcast.lane.b32.xlu0 %v1741_v46, 256  ;;  %s4970_s7 = sld [smem:[#allocation12_spill]] }
  0x60   : > { %v1119_v11 = vld [vmem:[%s4241_s19] sm:$0xff]  ;;  %v1136_v13 = vpack.c.bf16 %v1118_v10, %v1118_v10  ;;  %v1122_v17 = vld [vmem:[%s4241_s19 + $0x18] sm:$0xff]  ;;  %v1124_v19 = vld [vmem:[%s4241_s19 + $0x28] sm:$0xff] }
  0x61   : > { %v1306_v14 = vpack.c.bf16 %v1120_v12, %v1119_v11  ;;  %v1123_v18 = vld [vmem:[%s4241_s19 + $0x20] sm:$0xff]  ;;  %v1128_v21 = vld [vmem:[%s4249_s1 + $0x8] sm:$0xff]  ;;  %v1307_v22 = vpack.c.bf16 %v1122_v17, %v1121_v16  ;;  %v1125_v25 = vld [vmem:[%s4241_s19 + $0x30] sm:$0xff] }
  0x62   : > { %3593 = vmatmul.mubr.msk.bf16.vlgmr.msra.gmra.mrb[0].mxu0 %vm1152_vm1, %v1136_v13  ;;  %3599 = vmatmul.mubr.msk.bf16.vlgmr.msra.gmra.mrb[0].mxu1 %vm1152_vm1, %v1136_v13  ;;  %v1127_v20 = vld [vmem:[%s4249_s1] sm:$0xff]  ;;  %v1308_v23 = vpack.c.bf16 %v1124_v19, %v1123_v18  ;;  %v1126_v26 = vld [vmem:[%s4241_s19 + $0x38] sm:$0xff]  ;;  %v1129_v27 = vld [vmem:[%s4249_s1 + $0x10] sm:$0xff] }
  0x63   : > { %3609 = vmatpush3.bf16.msra.mxu1 %v3777_v4  ;;  %3603 = vmatpush3.bf16.msra.mxu0 %v3778_v8  ;;  %v1402_v24 = vpack.c.bf16 %v1128_v21, %v1127_v20  ;;  %v1130_v28 = vld [vmem:[%s4249_s1 + $0x18] sm:$0xff]  ;;  %v1131_v29 = vld [vmem:[%s4249_s1 + $0x20] sm:$0xff]  ;;  %v1132_v30 = vld [vmem:[%s4249_s1 + $0x28] sm:$0xff]  ;;  %v1309_v31 = vpack.c.bf16 %v1126_v26, %v1125_v25 }
  0x64   : > { %3604 = vmatprep.mubr.msk.bf16.mxu0 %vm3969_vm0, %v3968_v2  ;;  %3610 = vmatprep.mubr.msk.bf16.mxu1 %vm1152_vm1, %v1306_v14  ;;  %v1403_v32 = vpack.c.bf16 %v1130_v28, %v1129_v27  ;;  %v1404_v33 = vpack.c.bf16 %v1132_v30, %v1131_v29  ;;  %v1133_v34 = vld [vmem:[%s4249_s1 + $0x30] sm:$0xff]  ;;  %v1134_v35 = vld [vmem:[%s4249_s1 + $0x38] sm:$0xff]  ;;  %v3450_v4 = vld [vmem:[%s4968_s3] ss:$0 sm:$0xff]  ;;  %s3971_s1 = smov 120   ;;  %s4988_s3 = sld [smem:[#allocation27_spill]] }
  0x65   : > { %3618 = vmatprep.subr.bf16.mxu0 %v3779_v15  ;;  %3628 = vmatprep.subr.bf16.mxu1 %v3968_v2  ;;  %v1405_v36 = vpack.c.bf16 %v1134_v35, %v1133_v34  ;;  %v4299_v12 = vld [vmem:[%s4039_s24] ss:$0 sm:$0xff] }
  0x66   : > { %1736 = vbcast.lane.b32.xlu1 %v1734_v40, 256  ;;  %v4318_v46 = vld [vmem:[%s4969_s6] ss:$0 sm:$0xff]  ;;  %s4989_s6 = sshll.u32 %s4223_s18, 3 }
  0x6a   : > { %3605 = vmatmul.mubr.msk.bf16.vlgmr.msra.gmra.mrb[4].mxu0 %vm1152_vm1, %v1136_v13  ;;  %3611 = vmatmul.mubr.msk.bf16.vlgmr.msra.gmra.mrb[4].mxu1 %vm1152_vm1, %v1307_v22  ;;  %v3453_v13 = vld [vmem:[%s4029_s14] ss:$0 sm:$0xff] }
  0x6b   : > { %3619 = vmatpush3.bf16.msra.mxu0 %v3779_v15  ;;  %3614 = vmatprep.mubr.msk.bf16.mxu1 %vm1152_vm1, %v1308_v23 }
  0x6c   : > { %3620 = vmatprep.mubr.msk.bf16.mxu0 %vm1152_vm1, %v1402_v24  ;;  %3634 = vmatprep.subr.bf16.mxu0 %v3968_v2 }
  0x6d   : > { %1750 = vbcast.lane.b32.xlu1 %v1748_v44, 256 }
  0x72   : > { %3615 = vmatmul.mubr.msk.bf16.gmra.mrb[8].mxu1 %vm1152_vm1, %v1309_v31  ;;  %3621 = vmatmul.mubr.msk.bf16.vlgmr.msra.gmra.mrb[8].mxu0 %vm1152_vm1, %v1403_v32 }
  0x73   : > { %3624 = vmatprep.mubr.msk.bf16.mxu0 %vm1152_vm1, %v1404_v33  ;;  %3630 = vmatprep.mubr.msk.bf16.mxu1 %vm3969_vm0, %v3968_v2 }
  0x7a   : > { %3625 = vmatmul.mubr.msk.bf16.gmra.mrb[12].mxu0 %vm1152_vm1, %v1405_v36 }
  0x7b   : > { %3636 = vmatprep.mubr.msk.bf16.mxu0 %vm3969_vm0, %v3968_v2 }
 0x135   : > { %v1190_v52 = vpop.f32.mrb[0].mxu0  ;;  %v1245_v53 = vpop.f32.mrb[0].mxu1 }
 0x136   : > { %v1191_v54 = vadd.f32 %v3447_v50, %v1190_v52  ;;  %v3594_v55 = vpop.f32.mrb[1].mxu0  ;;  %v3600_v56 = vpop.f32.mrb[1].mxu1  ;;  %v1246_v15 = vadd.f32 %v3450_v4, %v1245_v53 }
 0x137   : > { %v1193_v57 = vpop.f32.mrb[2].mxu0  ;;  %v1248_v58 = vpop.f32.mrb[2].mxu1 }
 0x138   : > { %v1499_v59 = vcombine.high %v1191_v54, %v1191_v54  ;;  %v1506_v60 = vrot.slane %v1191_v54, %v1505_v51  ;;  %v3595_v61 = vpop.f32.mrb[3].mxu0  ;;  %v3601_v62 = vpop.f32.mrb[3].mxu1 }
 0x13a   : > { %v1513_v63 = vrot.slane %v1499_v59, %v1505_v51  ;;  %v1514_v0 = vcombine.high %v1506_v60, %v1506_v60  ;;  %v1522_v3 = vrot.slane %v1506_v60, %v1505_v51 }
 0x13c   : > { %v1515_v8 = vcombine.high %v1513_v63, %v1513_v63  ;;  %v1529_v9 = vrot.slane %v1513_v63, %v1505_v51  ;;  %v1536_v10 = vrot.slane %v1514_v0, %v1505_v51  ;;  %v1544_v11 = vcombine.high %v1522_v3, %v1522_v3 }
 0x13d   : > { %v1551_v14 = vrot.slane %v1522_v3, %v4230_v7  ;;  %v3612_v16 = vpop.f32.mrb[4].mxu1  ;;  %v1300_v17 = vpop.f32.mrb[4].mxu0 }
 0x13e   : > { %v1543_v18 = vrot.slane %v1515_v8, %v1505_v51  ;;  %v1545_v19 = vcombine.high %v1529_v9, %v1529_v9  ;;  %v1546_v20 = vcombine.high %v1536_v10, %v1536_v10  ;;  %v1371_v21 = vpop.f32.mrb[5].mxu1  ;;  %v3606_v22 = vpop.f32.mrb[5].mxu0  ;;  %v1559_v23 = vrot.slane %v1544_v11, %v4230_v7 }
 0x13f   : > { %v1372_v24 = vadd.f32 %v4299_v12, %v1371_v21  ;;  %v1588_v25 = vmul.f32 %v1551_v14, %v1246_v15  ;;  %v3613_v26 = vpop.f32.mrb[6].mxu1  ;;  %v1301_v27 = vadd.f32 %v3453_v13, %v1300_v17  ;;  %v1303_v28 = vpop.f32.mrb[6].mxu0  ;;  %v1380_v29 = vadd.f32 %v3612_v16, %v4299_v12 }
 0x140   : > { %v1563_v30 = vrot.slane %v1546_v20, %v4230_v7  ;;  %v1374_v31 = vpop.f32.mrb[7].mxu1  ;;  %v1555_v32 = vrot.slane %v1536_v10, %v4230_v7  ;;  %v3607_v33 = vpop.f32.mrb[7].mxu0  ;;  %v1575_v34 = vrot.slane %v1545_v19, %v4230_v7  ;;  %v1590_v35 = vmul.f32 %v1559_v23, %v1246_v15 }
 0x141   : > { %v1596_v36 = vmul.f32 0.35355338, %v1588_v25  ;;  %v4309_v37 = vpack.c.bf16 %v1301_v27, %v1301_v27  ;;  %v1375_v38 = vadd.f32 %v4299_v12, %v1374_v31  ;;  %v1567_v42 = vrot.slane %v1529_v9, %v4230_v7 }
 0x142   : > { %v1591_v39 = vmul.f32 %v1563_v30, %v1246_v15  ;;  %v1589_v40 = vmul.f32 %v1555_v32, %v1246_v15  ;;  %v1594_v41 = vmul.f32 %v1575_v34, %v1246_v15  ;;  %v1598_v43 = vmul.f32 0.35355338, %v1590_v35  ;;  %v4406_v35 = vpop.permute.xlu1 %1715 }
 0x143   : > { %v4313_v44 = vmul.f32 %v1596_v36, %v1372_v24  ;;  %v1977_v45 = vsel %vm1975_vm2, %v4309_v37, 0  ;;  %v1547_v47 = vcombine.high %v1543_v18, %v1543_v18  ;;  %v1383_v48 = vadd.f32 %v3613_v26, %v4299_v12 }
 0x144   : > { %v1599_v49 = vmul.f32 0.35355338, %v1591_v39  ;;  %v1597_v50 = vmul.f32 0.35355338, %v1589_v40  ;;  %v1592_v51 = vmul.f32 %v1567_v42, %v1246_v15  ;;  %3629 = vmatpush3.bf16.msra.mxu1 %v1977_v45  ;;  %v4321_v52 = vmul.f32 %v1598_v43, %v1380_v29  ;;  %v4412_v39 = vpop.permute.xlu0 %1722 }
 0x145   : > { %2029 = vrot.lane.b32.xlu1 %v4313_v44, %s3971_s1  ;;  %v3616_v53 = vpop.f32.mrb[8].mxu1  ;;  %v1602_v54 = vmul.f32 0.35355338, %v1594_v41  ;;  %v3622_v55 = vpop.f32.mrb[8].mxu0  ;;  %v1579_v56 = vrot.slane %v1547_v47, %v4230_v7  ;;  %v1571_v57 = vrot.slane %v1543_v18, %v4230_v7  ;;  %3640 = vmatprep.subr.bf16.mxu1 %v3968_v2 }
 0x146   : > { %v4328_v58 = vmul.f32 %v1599_v49, %v1383_v48  ;;  %v4330_v59 = vmul.f32 %v1597_v50, %v1375_v38  ;;  %v1396_v60 = vadd.f32 %v3616_v53, %v4299_v12  ;;  %v4334_v61 = vadd.f32 %v3622_v55, %v4318_v46  ;;  %v1387_v62 = vpop.f32.mrb[9].mxu1  ;;  %v1467_v63 = vpop.f32.mrb[9].mxu0 }
 0x147   : > { %v1388_v0 = vadd.f32 %v4299_v12, %v1387_v62  ;;  %v1600_v3 = vmul.f32 0.35355338, %v1592_v51  ;;  %v3617_v4 = vpop.f32.mrb[10].mxu1  ;;  %v1595_v8 = vmul.f32 %v1579_v56, %v1246_v15  ;;  %v1593_v9 = vmul.f32 %v1571_v57, %v1246_v15  ;;  %v3623_v7 = vpop.f32.mrb[10].mxu0 }
 0x148   : > { %v2485_v10 = vpack.c.bf16 %v4328_v58, %v4321_v52  ;;  %v2484_v11 = vpack.c.bf16 %v4330_v59, %v4313_v44  ;;  %v4341_v13 = vmul.f32 %v1602_v54, %v1396_v60  ;;  %2031 = vrot.lane.b32.xlu0 %v4330_v59, %s3971_s1  ;;  %v1399_v14 = vadd.f32 %v3617_v4, %v4299_v12  ;;  %v1390_v16 = vpop.f32.mrb[11].mxu1  ;;  %v1470_v17 = vpop.f32.mrb[11].mxu0 }
 0x149   : > { %v4346_v18 = vmul.f32 %v1600_v3, %v1388_v0  ;;  %v1603_v19 = vmul.f32 0.35355338, %v1595_v8  ;;  %v1391_v15 = vadd.f32 %v4299_v12, %v1390_v16  ;;  %v1601_v20 = vmul.f32 0.35355338, %v1593_v9  ;;  %2105 = vrot.lane.b32.xlu1 %v4334_v61, %s3971_s1  ;;  %v4408_v36 = vpop.permute.xlu1 %1729  ;;  %v4416_v41 = vpop.permute.xlu0 %1743 }
 0x14a   : > { %v4352_v21 = vadd.f32 %v3623_v7, %v4318_v46  ;;  %v4374_v30 = vadd.f32 %v4318_v46, %v1467_v63  ;;  %v4391_v33 = vadd.f32 %v4318_v46, %v1470_v17 }
 0x14b   : > { %v4354_v22 = vmul.f32 %v1603_v19, %v1399_v14  ;;  %v4356_v23 = vmul.f32 %v1601_v20, %v1391_v15 }
 0x14c   : > { %2033 = vrot.lane.b32.xlu0 %v4321_v52, %s3971_s1 }
 0x14d   : > { %v2487_v24 = vpack.c.bf16 %v4354_v22, %v4341_v13  ;;  %v2486_v12 = vpack.c.bf16 %v4356_v23, %v4346_v18  ;;  %2107 = vrot.lane.b32.xlu1 %v4352_v21, %s3971_s1  ;;  %v3626_v25 = vpop.f32.mrb[12].mxu0  ;;  %v4410_v38 = vpop.permute.xlu1 %1736 }
 0x14e   : > { %v1483_v26 = vpop.f32.mrb[13].mxu0  ;;  %v4371_v29 = vadd.f32 %v3626_v25, %v4318_v46 }
 0x14f   : > { %v3627_v27 = vpop.f32.mrb[14].mxu0  ;;  %v4381_v31 = vadd.f32 %v4318_v46, %v1483_v26 }
 0x150   : > { %2035 = vrot.lane.b32.xlu0 %v4328_v58, %s3971_s1  ;;  %v1486_v28 = vpop.f32.mrb[15].mxu0  ;;  %v4388_v32 = vadd.f32 %v3627_v27, %v4318_v46 }
 0x151   : > { %2043 = vrot.lane.b32.xlu1 %v4354_v22, %s3971_s1  ;;  %v4398_v34 = vadd.f32 %v4318_v46, %v1486_v28  ;;  %v4414_v40 = vpop.permute.xlu1 %1750  ;;  %v1761_v28 = vsub.s32 7, %v4220_v5 }
 0x154   : > { %2101 = vrot.lane.b32.xlu0 %v4374_v30, %s3971_s1 }
 0x155   : > { %2113 = vrot.lane.b32.xlu1 %v4371_v29, %s3971_s1 }
 0x158   : > { %2041 = vrot.lane.b32.xlu0 %v4341_v13, %s3971_s1 }
 0x159   : > { %2109 = vrot.lane.b32.xlu1 %v4381_v31, %s3971_s1 }
 0x15c   : > { %2103 = vrot.lane.b32.xlu0 %v4391_v33, %s3971_s1 }
 0x15d   : > { %2115 = vrot.lane.b32.xlu1 %v4388_v32, %s3971_s1 }
 0x160   : > { %2037 = vrot.lane.b32.xlu0 %v4346_v18, %s3971_s1 }
 0x161   : > { %2111 = vrot.lane.b32.xlu1 %v4398_v34, %s3971_s1 }
 0x164   : > { %2039 = vrot.lane.b32.xlu0 %v4356_v23, %s3971_s1 }
 0x1b7   : > { %v2030_v42 = vpop.permute.xlu1 %2029 }
 0x1b8   : > { %v2053_v43 = vsel %vm1612_vm3, %v2030_v42, 0.0  ;;  %v1762_v42 = vrot.slane %v4227_v6, %v1761_v28 }
 0x1b9   : > { %2054 = vadd.xlane.f32.xlu0 %v2053_v43  ;;  %v1754_v43 = vsub.s32 6, %v4220_v5 }
 0x1ba   : > { %v2032_v45 = vpop.permute.xlu0 %2031 }
 0x1bb   : > { %v2106_v46 = vpop.permute.xlu1 %2105  ;;  %v2056_v47 = vsel %vm1612_vm3, %v2032_v45, 0.0  ;;  %v3972_v45 = vmov 0  }
 0x1bc   : > { %2057 = vadd.xlane.f32.xlu1 %v2056_v47  ;;  %v2131_v48 = vsel %vm1612_vm3, %v2106_v46, 0.0  ;;  %3774 = vset.pattern.permute.xlu0 %v3972_v45  ;;  %v1755_v46 = vrot.slane %v4227_v6, %v1754_v43  ;;  %v1656_v47 = vsel %vm1612_vm3, %v4391_v33, 0.0  ;;  %v1622_v6 = vsel %vm1612_vm3, %v4328_v58, 0.0 }
 0x1bd   : > { %2132 = vadd.xlane.f32.xlu0 %v2131_v48  ;;  %3773 = vset.pattern.permute.xlu1 %v3972_v45  ;;  %v1616_v48 = vsel %vm1612_vm3, %v4330_v59, 0.0  ;;  %v1625_v33 = vsel %vm1612_vm3, %v4346_v18, 0.0 }
 0x1be   : > { %v2034_v49 = vpop.permute.xlu0 %2033 }
 0x1bf   : > { %v2108_v50 = vpop.permute.xlu1 %2107  ;;  %v2059_v51 = vsel %vm1612_vm3, %v2034_v49, 0.0  ;;  %v1619_v49 = vsel %vm1612_vm3, %v4321_v52, 0.0 }
 0x1c0   : > { %2060 = vadd.xlane.f32.xlu1 %v2059_v51  ;;  %v2134_v63 = vsel %vm1612_vm3, %v2108_v50, 0.0  ;;  %v1653_v50 = vsel %vm1612_vm3, %v4374_v30, 0.0  ;;  %v1659_v51 = vsel %vm1612_vm3, %v4334_v61, 0.0  ;;  %v1628_v30 = vsel %vm1612_vm3, %v4356_v23, 0.0 }
 0x1c1   : > { %v1631_v61 = vsel %vm1612_vm3, %v4341_v13, 0.0 }
 0x1c2   : > { %v2036_v53 = vpop.permute.xlu0 %2035 }
 0x1c3   : > { %v2062_v54 = vsel %vm1612_vm3, %v2036_v53, 0.0  ;;  %v2044_v55 = vpop.permute.xlu1 %2043  ;;  %v1613_v53 = vsel %vm1612_vm3, %v4313_v44, 0.0 }
 0x1c4   : > { %2063 = vadd.xlane.f32.xlu1 %v2062_v54  ;;  %v2074_v4 = vsel %vm1612_vm3, %v2044_v55, 0.0  ;;  %v1662_v54 = vsel %vm1612_vm3, %v4352_v21, 0.0  ;;  %v1665_v55 = vsel %vm1612_vm3, %v4381_v31, 0.0  ;;  %v1674_v21 = vsel %vm1612_vm3, %v4388_v32, 0.0 }
 0x1c6   : > { %v2102_v56 = vpop.permute.xlu0 %2101 }
 0x1c7   : > { %v2125_v57 = vsel %vm1612_vm3, %v2102_v56, 0.0  ;;  %v2114_v60 = vpop.permute.xlu1 %2113  ;;  %v1668_v56 = vsel %vm1612_vm3, %v4398_v34, 0.0 }
 0x1c8   : > { %2126 = vadd.xlane.f32.xlu0 %v2125_v57  ;;  %v2143_v7 = vsel %vm1612_vm3, %v2114_v60, 0.0  ;;  %v1671_v57 = vsel %vm1612_vm3, %v4371_v29, 0.0  ;;  %v1634_v60 = vsel %vm1612_vm3, %v4354_v22, 0.0 }
 0x1ca   : > { %v2042_v62 = vpop.permute.xlu0 %2041 }
 0x1cb   : > { %v2071_v0 = vsel %vm1612_vm3, %v2042_v62, 0.0  ;;  %v2110_v9 = vpop.permute.xlu1 %2109 }
 0x1cc   : > { %2135 = vadd.xlane.f32.xlu0 %v2134_v63  ;;  %2072 = vadd.xlane.f32.xlu1 %v2071_v0  ;;  %v2137_v15 = vsel %vm1612_vm3, %v2110_v9, 0.0 }
 0x1ce   : > { %v2104_v3 = vpop.permute.xlu0 %2103 }
 0x1cf   : > { %v2128_v8 = vsel %vm1612_vm3, %v2104_v3, 0.0  ;;  %v2116_v17 = vpop.permute.xlu1 %2115 }
 0x1d0   : > { %2075 = vadd.xlane.f32.xlu0 %v2074_v4  ;;  %2129 = vadd.xlane.f32.xlu1 %v2128_v8  ;;  %v2146_v25 = vsel %vm1612_vm3, %v2116_v17, 0.0 }
 0x1d2   : > { %v2038_v14 = vpop.permute.xlu0 %2037 }
 0x1d3   : > { %v2065_v16 = vsel %vm1612_vm3, %v2038_v14, 0.0  ;;  %v2112_v26 = vpop.permute.xlu1 %2111 }
 0x1d4   : > { %2144 = vadd.xlane.f32.xlu0 %v2143_v7  ;;  %2066 = vadd.xlane.f32.xlu1 %v2065_v16  ;;  %v2140_v27 = vsel %vm1612_vm3, %v2112_v26, 0.0 }
 0x1d6   : > { %v2040_v19 = vpop.permute.xlu0 %2039 }
 0x1d7   : > { %v2068_v20 = vsel %vm1612_vm3, %v2040_v19, 0.0 }
 0x1d8   : > { %2138 = vadd.xlane.f32.xlu0 %v2137_v15  ;;  %2069 = vadd.xlane.f32.xlu1 %v2068_v20 }
 0x1dc   : > { %2147 = vadd.xlane.f32.xlu0 %v2146_v25 }
 0x1e0   : > { %2141 = vadd.xlane.f32.xlu0 %v2140_v27 }
 0x1e9   : > { %1764 = vbcast.lane.b32.xlu1 %v1762_v42, 256 }
 0x1f6   : > { %1757 = vbcast.lane.b32.xlu0 %v1755_v46, 256 }
 0x20d   : > { %1657 = vadd.xlane.f32.xlu1 %v1656_v47 }
 0x211   : > { %1617 = vadd.xlane.f32.xlu1 %v1616_v48 }
 0x215   : > { %1620 = vadd.xlane.f32.xlu1 %v1619_v49  ;;  %1654 = vadd.xlane.f32.xlu0 %v1653_v50 }
 0x219   : > { %1623 = vadd.xlane.f32.xlu1 %v1622_v6  ;;  %1660 = vadd.xlane.f32.xlu0 %v1659_v51 }
 0x21d   : > { %1626 = vadd.xlane.f32.xlu1 %v1625_v33  ;;  %1614 = vadd.xlane.f32.xlu0 %v1613_v53 }
 0x221   : > { %1629 = vadd.xlane.f32.xlu1 %v1628_v30  ;;  %1663 = vadd.xlane.f32.xlu0 %v1662_v54 }
 0x225   : > { %1632 = vadd.xlane.f32.xlu1 %v1631_v61  ;;  %1666 = vadd.xlane.f32.xlu0 %v1665_v55 }
 0x229   : > { %1669 = vadd.xlane.f32.xlu0 %v1668_v56 }
 0x22d   : > { %1672 = vadd.xlane.f32.xlu0 %v1671_v57 }
 0x231   : > { %1675 = vadd.xlane.f32.xlu0 %v1674_v21 }
 0x235   : > { %1635 = vadd.xlane.f32.xlu0 %v1634_v60 }
 0x246   : > { %v2055_v62 = vpop.xlane.xlu0 %2054 }
 0x247   : > { %v3485_v16 = vclamps-f32 %v2055_v62, 5.0 }
 0x249   : > { %v2058_v31 = vpop.xlane.xlu1 %2057 }
 0x24a   : > { %v2133_v63 = vpop.xlane.xlu0 %2132  ;;  %v3486_v48 = vclamps-f32 %v2058_v31, 5.0 }
 0x24b   : > { %v2151_v0 = vmul.f32 0.35355338, %v2133_v63 }
 0x24d   : > { %v2061_v3 = vpop.xlane.xlu1 %2060  ;;  %v3495_v4 = vclamps-f32 %v2151_v0, 5.0 }
 0x24e   : > { %v3487_v34 = vclamps-f32 %v2061_v3, 5.0 }
 0x250   : > { %v2175_v8 = vadd.f32 %v3495_v4, %v3487_v34 }
 0x251   : > { %v2064_v9 = vpop.xlane.xlu1 %2063 }
 0x252   : > { %v2183_v14 = vadd.f32 %v2175_v8, %v4408_v36  ;;  %v3488_v26 = vclamps-f32 %v2064_v9, 5.0 }
 0x254   : > { %v2193_v25 = vmul.f32 1.442695, %v2183_v14 }
 0x255   : > { %v2127_v7 = vpop.xlane.xlu0 %2126 }
 0x256   : > { %v2149_v29 = vmul.f32 0.35355338, %v2127_v7  ;;  %3788 = vpow2.f32 %v2193_v25 }
 0x258   : > { %v3493_v32 = vclamps-f32 %v2149_v29, 5.0 }
 0x259   : > { %v2073_v17 = vpop.xlane.xlu1 %2072  ;;  %v2136_v19 = vpop.xlane.xlu0 %2135 }
 0x25a   : > { %v2173_v15 = vadd.f32 %v3493_v32, %v3485_v16  ;;  %v2152_v20 = vmul.f32 0.35355338, %v2136_v19  ;;  %v3491_v16 = vclamps-f32 %v2073_v17, 5.0 }
 0x25c   : > { %v2181_v27 = vadd.f32 %v2173_v15, %v4406_v35  ;;  %v3496_v28 = vclamps-f32 %v2152_v20, 5.0 }
 0x25d   : > { %v2130_v42 = vpop.xlane.xlu1 %2129  ;;  %v2076_v43 = vpop.xlane.xlu0 %2075 }
 0x25e   : > { %v2189_v45 = vmul.f32 1.442695, %v2181_v27  ;;  %v2176_v46 = vadd.f32 %v3496_v28, %v3488_v26  ;;  %v2150_v47 = vmul.f32 0.35355338, %v2130_v42  ;;  %v3492_v15 = vclamps-f32 %v2076_v43, 5.0 }
 0x260   : > { %3790 = vpow2.f32 %v2189_v45  ;;  %v2184_v49 = vadd.f32 %v2176_v46, %v4410_v38  ;;  %v3494_v50 = vclamps-f32 %v2150_v47, 5.0  ;;  %v4474_v60 = vpop.eup %3788 }
 0x261   : > { %v2145_v6 = vpop.xlane.xlu0 %2144  ;;  %v2067_v30 = vpop.xlane.xlu1 %2066  ;;  %v2283_v29 = vpack.c.bf16 %v4474_v60, %v4474_v60 }
 0x262   : > { %v2195_v51 = vmul.f32 1.442695, %v2184_v49  ;;  %v2174_v33 = vadd.f32 %v3494_v50, %v3486_v48  ;;  %v3489_v56 = vclamps-f32 %v2067_v30, 5.0  ;;  %v2155_v57 = vmul.f32 0.35355338, %v2145_v6 }
 0x263   : > { %v2299_v42 = vunpack.c.l.b16 %v2283_v29 }
 0x264   : > { %3792 = vpow2.f32 %v2195_v51  ;;  %v2182_v53 = vadd.f32 %v2174_v33, %v4412_v39  ;;  %v3499_v4 = vclamps-f32 %v2155_v57, 5.0 }
 0x265   : > { %v2139_v54 = vpop.xlane.xlu0 %2138  ;;  %v2070_v34 = vpop.xlane.xlu1 %2069 }
 0x266   : > { %v2191_v61 = vmul.f32 1.442695, %v2182_v53  ;;  %v2153_v55 = vmul.f32 0.35355338, %v2139_v54  ;;  %v2179_v20 = vadd.f32 %v3499_v4, %v3491_v16  ;;  %v3490_v25 = vclamps-f32 %v2070_v34, 5.0 }
 0x268   : > { %3794 = vpow2.f32 %v2191_v61  ;;  %v3497_v21 = vclamps-f32 %v2153_v55, 5.0 }
 0x269   : > { %v2148_v62 = vpop.xlane.xlu0 %2147  ;;  %v4495_v6 = vpop.permute.xlu1 %1764 }
 0x26a   : > { %v4476_v31 = vpop.eup %3790  ;;  %v2177_v63 = vadd.f32 %v3497_v21, %v3489_v56  ;;  %v2156_v0 = vmul.f32 0.35355338, %v2148_v62 }
 0x26b   : > { %v2281_v3 = vpack.c.bf16 %v4476_v31, %v4476_v31 }
 0x26c   : > { %v2185_v8 = vadd.f32 %v2177_v63, %v4416_v41  ;;  %v3500_v32 = vclamps-f32 %v2156_v0, 5.0 }
 0x26d   : > { %v2142_v9 = vpop.xlane.xlu0 %2141  ;;  %v2297_v7 = vunpack.c.l.b16 %v2281_v3 }
 0x26e   : > { %v4483_v14 = vpop.eup %3792  ;;  %v2154_v19 = vmul.f32 0.35355338, %v2142_v9  ;;  %v2197_v27 = vmul.f32 1.442695, %v2185_v8  ;;  %v2180_v47 = vadd.f32 %v3500_v32, %v3492_v15 }
 0x26f   : > { %2306 = vperm.xlu1 %3773, %v2297_v7   ;;  %v2284_v45 = vpack.c.bf16 %v4483_v14, %v4483_v14 }
 0x270   : > { %v3498_v26 = vclamps-f32 %v2154_v19, 5.0  ;;  %3796 = vpow2.f32 %v2197_v27  ;;  %v2188_v53 = vadd.f32 %v2180_v47, %v4495_v6 }
 0x271   : > { %v4485_v28 = vpop.permute.xlu0 %1757  ;;  %v2300_v51 = vunpack.c.l.b16 %v2284_v45 }
 0x272   : > { %v4489_v46 = vpop.eup %3794  ;;  %v2178_v48 = vadd.f32 %v3498_v26, %v3490_v25  ;;  %v2187_v17 = vadd.f32 %v2179_v20, %v4485_v28  ;;  %v2203_v54 = vmul.f32 1.442695, %v2188_v53 }
 0x273   : > { %2312 = vperm.xlu1 %3773, %v2299_v42   ;;  %v2282_v43 = vpack.c.bf16 %v4489_v46, %v4489_v46 }
 0x274   : > { %v2186_v49 = vadd.f32 %v2178_v48, %v4414_v40  ;;  %v2201_v50 = vmul.f32 1.442695, %v2187_v17 }
 0x275   : > { %v2298_v33 = vunpack.c.l.b16 %v2282_v43 }
 0x276   : > { %v2199_v30 = vmul.f32 1.442695, %v2186_v49  ;;  %3798 = vpow2.f32 %v2201_v50 }
 0x277   : > { %2315 = vperm.xlu1 %3773, %v2300_v51   ;;  %2309 = vperm.xlu0 %3774, %v2298_v33  }
 0x278   : > { %3800 = vpow2.f32 %v2199_v30 }
 0x279   : > { %3802 = vpow2.f32 %v2203_v54 }
 0x27a   : > { %v4498_v61 = vpop.eup %3796 }
 0x27b   : > { %v2285_v21 = vpack.c.bf16 %v4498_v61, %v4498_v61 }
 0x27d   : > { %v2301_v63 = vunpack.c.l.b16 %v2285_v21 }
 0x280   : > { %v4500_v55 = vpop.eup %3798 }
 0x281   : > { %v2287_v56 = vpack.c.bf16 %v4500_v55, %v4500_v55 }
 0x282   : > { %v4506_v62 = vpop.eup %3800 }
 0x283   : > { %v2303_v57 = vunpack.c.l.b16 %v2287_v56  ;;  %v2286_v0 = vpack.c.bf16 %v4506_v62, %v4506_v62  ;;  %v4510_v3 = vpop.eup %3802 }
 0x284   : > { %v2288_v34 = vpack.c.bf16 %v4510_v3, %v4510_v3 }
 0x285   : > { %2324 = vperm.xlu1 %3773, %v2303_v57   ;;  %v2302_v4 = vunpack.c.l.b16 %v2286_v0 }
 0x286   : > { %v2304_v8 = vunpack.c.l.b16 %v2288_v34 }
 0x289   : > { %2318 = vperm.xlu1 %3773, %v2301_v63  }
 0x28d   : > { %2321 = vperm.xlu1 %3773, %v2302_v4  }
 0x291   : > { %2327 = vperm.xlu1 %3773, %v2304_v8  }
 0x295   : > { %2370 = vrot.lane.b32.xlu1 %v4309_v37, %s3971_s1  ;;  %s4971_s1 = sld [smem:[#allocation10_spill]] }
 0x29a   : > { %v1658_v9 = vpop.xlane.xlu1 %1657 }
 0x29b   : > { %v1678_v7 = vmul.f32 0.35355338, %v1658_v9 }
 0x29d   : > { %v3477_v16 = vclamps-f32 %v1678_v7, 5.0 }
 0x29e   : > { %v1618_v29 = vpop.xlane.xlu1 %1617 }
 0x29f   : > { %v3469_v32 = vclamps-f32 %v1618_v29, 5.0 }
 0x2a1   : > { %v1702_v19 = vadd.f32 %v3477_v16, %v3469_v32 }
 0x2a2   : > { %v1621_v15 = vpop.xlane.xlu1 %1620  ;;  %v1655_v20 = vpop.xlane.xlu0 %1654 }
 0x2a3   : > { %v1775_v25 = vadd.f32 %v4412_v39, %v1702_v19  ;;  %v1677_v42 = vmul.f32 0.35355338, %v1655_v20  ;;  %v3470_v48 = vclamps-f32 %v1621_v15, 5.0 }
 0x2a5   : > { %v1784_v26 = vmul.f32 1.442695, %v1775_v25  ;;  %v3476_v37 = vclamps-f32 %v1677_v42, 5.0 }
 0x2a6   : > { %v1661_v27 = vpop.xlane.xlu0 %1660  ;;  %v1624_v47 = vpop.xlane.xlu1 %1623 }
 0x2a7   : > { %3804 = vpow2.f32 %v1784_v26  ;;  %v1679_v45 = vmul.f32 0.35355338, %v1661_v27  ;;  %v3471_v21 = vclamps-f32 %v1624_v47, 5.0 }
 0x2a9   : > { %v3478_v17 = vclamps-f32 %v1679_v45, 5.0 }
 0x2aa   : > { %v1615_v43 = vpop.xlane.xlu0 %1614  ;;  %v1627_v53 = vpop.xlane.xlu1 %1626 }
 0x2ab   : > { %v1703_v49 = vadd.f32 %v3478_v17, %v3470_v48  ;;  %v3468_v50 = vclamps-f32 %v1615_v43, 5.0  ;;  %v3472_v29 = vclamps-f32 %v1627_v53, 5.0 }
 0x2ad   : > { %v1776_v51 = vadd.f32 %v4408_v36, %v1703_v49  ;;  %v1701_v33 = vadd.f32 %v3476_v37, %v3468_v50 }
 0x2ae   : > { %v1664_v30 = vpop.xlane.xlu0 %1663  ;;  %v1630_v9 = vpop.xlane.xlu1 %1629 }
 0x2af   : > { %v1786_v54 = vmul.f32 1.442695, %v1776_v51  ;;  %v1774_v39 = vadd.f32 %v4406_v35, %v1701_v33  ;;  %v1680_v56 = vmul.f32 0.35355338, %v1664_v30  ;;  %v3473_v25 = vclamps-f32 %v1630_v9, 5.0 }
 0x2b1   : > { %v4519_v57 = vpop.eup %3804  ;;  %v1782_v63 = vmul.f32 1.442695, %v1774_v39  ;;  %v3479_v0 = vclamps-f32 %v1680_v56, 5.0  ;;  %3806 = vpow2.f32 %v1786_v54 }
 0x2b2   : > { %v1667_v4 = vpop.xlane.xlu0 %1666  ;;  %v1884_v34 = vpack.c.bf16 %v4519_v57, %v4519_v57  ;;  %v1633_v42 = vpop.xlane.xlu1 %1632 }
 0x2b3   : > { %3808 = vpow2.f32 %v1782_v63  ;;  %v1704_v8 = vadd.f32 %v3479_v0, %v3471_v21  ;;  %v1681_v36 = vmul.f32 0.35355338, %v1667_v4  ;;  %v3474_v49 = vclamps-f32 %v1633_v42, 5.0 }
 0x2b4   : > { %v1901_v7 = vunpack.c.l.b16 %v1884_v34 }
 0x2b5   : > { %v1777_v16 = vadd.f32 %v4410_v38, %v1704_v8  ;;  %v3480_v35 = vclamps-f32 %v1681_v36, 5.0 }
 0x2b6   : > { %1912 = vperm.xlu0 %3774, %v1901_v7   ;;  %v1670_v32 = vpop.xlane.xlu0 %1669 }
 0x2b7   : > { %v1788_v19 = vmul.f32 1.442695, %v1777_v16  ;;  %v1705_v15 = vadd.f32 %v3480_v35, %v3472_v29  ;;  %v1682_v20 = vmul.f32 0.35355338, %v1670_v32 }
 0x2b9   : > { %3810 = vpow2.f32 %v1788_v19  ;;  %v1778_v26 = vadd.f32 %v4416_v41, %v1705_v15  ;;  %v3481_v27 = vclamps-f32 %v1682_v20, 5.0 }
 0x2ba   : > { %v1673_v45 = vpop.xlane.xlu0 %1672 }
 0x2bb   : > { %v1790_v47 = vmul.f32 1.442695, %v1778_v26  ;;  %v1706_v48 = vadd.f32 %v3481_v27, %v3473_v25  ;;  %v1683_v17 = vmul.f32 0.35355338, %v1673_v45  ;;  %v3807_v43 = vpop.eup %3806 }
 0x2bc   : > { %v1885_v41 = vpack.c.bf16 %v3807_v43, %v3807_v43 }
 0x2bd   : > { %v3809_v37 = vpop.eup %3808  ;;  %3812 = vpow2.f32 %v1790_v47  ;;  %v1779_v38 = vadd.f32 %v4414_v40, %v1706_v48  ;;  %v3482_v50 = vclamps-f32 %v1683_v17, 5.0 }
 0x2be   : > { %v1676_v51 = vpop.xlane.xlu0 %1675  ;;  %v1883_v33 = vpack.c.bf16 %v3809_v37, %v3809_v37  ;;  %v1902_v8 = vunpack.c.l.b16 %v1885_v41 }
 0x2bf   : > { %v1792_v53 = vmul.f32 1.442695, %v1779_v38  ;;  %v1707_v30 = vadd.f32 %v3482_v50, %v3474_v49  ;;  %v1684_v54 = vmul.f32 0.35355338, %v1676_v51 }
 0x2c0   : > { %v1900_v39 = vunpack.c.l.b16 %v1883_v33 }
 0x2c1   : > { %3814 = vpow2.f32 %v1792_v53  ;;  %v1780_v56 = vadd.f32 %v4485_v28, %v1707_v30  ;;  %v3483_v4 = vclamps-f32 %v1684_v54, 5.0  ;;  %v3780_v54 = vld [vmem:[%s4970_s7] sm:$0xff]   ;;  %s4972_s7 = sld [smem:[#allocation13_spill]] }
 0x2c2   : > { %1909 = vperm.xlu1 %3773, %v1900_v39   ;;  %v1636_v21 = vpop.xlane.xlu0 %1635 }
 0x2c3   : > { %v3811_v63 = vpop.eup %3810  ;;  %v1794_v0 = vmul.f32 1.442695, %v1780_v56  ;;  %v3475_v34 = vclamps-f32 %v1636_v21, 5.0 }
 0x2c4   : > { %v1886_v36 = vpack.c.bf16 %v3811_v63, %v3811_v63 }
 0x2c5   : > { %3816 = vpow2.f32 %v1794_v0  ;;  %v1708_v40 = vadd.f32 %v3483_v4, %v3475_v34 }
 0x2c6   : > { %1915 = vperm.xlu1 %3773, %v1902_v8   ;;  %v1903_v9 = vunpack.c.l.b16 %v1886_v36 }
 0x2c7   : > { %v3813_v7 = vpop.eup %3812  ;;  %v1781_v29 = vadd.f32 %v4495_v6, %v1708_v40 }
 0x2c8   : > { %1918 = vperm.xlu0 %3774, %v1903_v9   ;;  %v1887_v16 = vpack.c.bf16 %v3813_v7, %v3813_v7 }
 0x2c9   : > { %v1796_v35 = vmul.f32 1.442695, %v1781_v29 }
 0x2ca   : > { %v1904_v32 = vunpack.c.l.b16 %v1887_v16 }
 0x2cb   : > { %v3815_v28 = vpop.eup %3814  ;;  %3818 = vpow2.f32 %v1796_v35 }
 0x2cc   : > { %1921 = vperm.xlu1 %3773, %v1904_v32   ;;  %v1888_v19 = vpack.c.bf16 %v3815_v28, %v3815_v28 }
 0x2ce   : > { %v1905_v15 = vunpack.c.l.b16 %v1888_v19 }
 0x2cf   : > { %v3817_v20 = vpop.eup %3816 }
 0x2d0   : > { %1924 = vperm.xlu0 %3774, %v1905_v15   ;;  %v1889_v25 = vpack.c.bf16 %v3817_v20, %v3817_v20 }
 0x2d2   : > { %v1906_v26 = vunpack.c.l.b16 %v1889_v25 }
 0x2d4   : > { %1927 = vperm.xlu1 %3773, %v1906_v26  }
 0x2d5   : > { %v3819_v27 = vpop.eup %3818 }
 0x2d6   : > { %v1890_v42 = vpack.c.bf16 %v3819_v27, %v3819_v27 }
 0x2d8   : > { %2214 = vperm.xlu1 %3773, %v4476_v31   ;;  %v1907_v45 = vunpack.c.l.b16 %v1890_v42 }
 0x2da   : > { %1930 = vperm.xlu0 %3774, %v1907_v45  }
 0x2dc   : > { %2220 = vperm.xlu1 %3773, %v4474_v60  }
 0x2de   : > { %2217 = vperm.xlu0 %3774, %v4489_v46   ;;  %v1831_v46 = vand.u32 127, %v1503_v1 }
 0x2e0   : > { %2226 = vperm.xlu1 %3773, %v4498_v61   ;;  %v4539_v61 = vsub.s32 %v1831_v46, %v4220_v5 }
 0x2e2   : > { %2223 = vperm.xlu0 %3774, %v4483_v14  }
 0x2e4   : > { %2232 = vperm.xlu1 %3773, %v4500_v55  }
 0x2e6   : > { %2229 = vperm.xlu0 %3774, %v4506_v62  }
 0x2e8   : > { %1807 = vperm.xlu1 %3773, %v3809_v37  }
 0x2ea   : > { %2235 = vperm.xlu0 %3774, %v4510_v3  }
 0x2ec   : > { %1813 = vperm.xlu1 %3773, %v3807_v43  }
 0x2ee   : > { %1810 = vperm.xlu0 %3774, %v4519_v57   ;;  %v2307_v31 = vpop.permute.xlu1 %2306 }
 0x2ef   : > { %v2332_v3 = vrot.slane %v2307_v31, %v4539_v61 }
 0x2f0   : > { %1819 = vperm.xlu1 %3773, %v3813_v7  }
 0x2f2   : > { %1816 = vperm.xlu0 %3774, %v3811_v63   ;;  %v2313_v60 = vpop.permute.xlu1 %2312 }
 0x2f3   : > { %v2340_v48 = vrot.slane %v2313_v60, %v4539_v61 }
 0x2f4   : > { %1825 = vperm.xlu1 %3773, %v3817_v20  }
 0x2f6   : > { %1822 = vperm.xlu0 %3774, %v3815_v28   ;;  %v2316_v14 = vpop.permute.xlu1 %2315  ;;  %v2310_v6 = vpop.permute.xlu0 %2309 }
 0x2f7   : > { %v2336_v55 = vrot.slane %v2310_v6, %v4539_v61  ;;  %v2344_v5 = vrot.slane %v2316_v14, %v4539_v61 }
 0x2f9   : > { %v2361_v57 = vsel %vm1864_vm4, %v2336_v55, %v2332_v3 }
 0x2fa   : > { %1828 = vperm.xlu0 %3774, %v3819_v27   ;;  %v2362_v17 = vsel %vm1866_vm5, %v2340_v48, %v2361_v57 }
 0x2fb   : > { %v2363_v49 = vsel %vm1868_vm6, %v2344_v5, %v2362_v17 }
 0x304   : > { %v2325_v62 = vpop.permute.xlu1 %2324 }
 0x305   : > { %v2356_v33 = vrot.slane %v2325_v62, %v4539_v61 }
 0x308   : > { %v2319_v47 = vpop.permute.xlu1 %2318 }
 0x309   : > { %v2348_v1 = vrot.slane %v2319_v47, %v4539_v61 }
 0x30b   : > { %v2364_v38 = vsel %vm1870_vm7, %v2348_v1, %v2363_v49 }
 0x30c   : > { %v2322_v43 = vpop.permute.xlu1 %2321 }
 0x30d   : > { %v2352_v37 = vrot.slane %v2322_v43, %v4539_v61 }
 0x30f   : > { %v2365_v50 = vsel %vm1872_vm8, %v2352_v37, %v2364_v38 }
 0x310   : > { %v2328_v51 = vpop.permute.xlu1 %2327  ;;  %v2366_v30 = vsel %vm1874_vm9, %v2356_v33, %v2365_v50 }
 0x311   : > { %v2360_v53 = vrot.slane %v2328_v51, %v4539_v61 }
 0x313   : > { %v2367_v39 = vsel %vm1876_vm10, %v2360_v53, %v2366_v30 }
 0x314   : > { %v2371_v41 = vpop.permute.xlu1 %2370  ;;  %v2368_v21 = vpack.c.b16 %v2367_v39, %v2367_v39 }
 0x315   : > { %v2376_v56 = vsel %vm1975_vm2, %v2371_v41, 0 }
 0x316   : > { %3635 = vmatpush3.bf16.msra.mxu0 %v2376_v56 }
 0x317   : > { %3646 = vmatprep.subr.bf16.mxu0 %v3780_v54 }
 0x319   : > { %3637 = vmatmul.mubr.msk.bf16.vlgmr.msra.gmra.mrb[16].mxu0 %vm1612_vm3, %v2368_v21 }
 0x31a   : > { %3648 = vmatprep.mubr.msk.bf16.mxu0 %vm1152_vm1, %v2484_v11  ;;  %3647 = vmatpush3.bf16.msra.mxu0 %v3780_v54 }
 0x321   : > { %3649 = vmatmul.mubr.msk.bf16.vlgmr.msra.gmra.mrb[20].mxu0 %vm1152_vm1, %v2485_v10 }
 0x322   : > { %3652 = vmatprep.mubr.msk.bf16.mxu0 %vm1152_vm1, %v2486_v12 }
 0x329   : > { %3653 = vmatmul.mubr.msk.bf16.gmra.mrb[24].mxu0 %vm1152_vm1, %v2487_v24 }
 0x335   : > { %v1913_v44 = vpop.permute.xlu0 %1912 }
 0x336   : > { %v1939_v58 = vrot.slane %v1913_v44, %v4539_v61 }
 0x341   : > { %v1910_v63 = vpop.permute.xlu1 %1909 }
 0x342   : > { %v1935_v4 = vrot.slane %v1910_v63, %v4539_v61 }
 0x344   : > { %v1964_v23 = vsel %vm1864_vm4, %v1939_v58, %v1935_v4 }
 0x345   : > { %v1916_v59 = vpop.permute.xlu1 %1915 }
 0x346   : > { %v1943_v52 = vrot.slane %v1916_v59, %v4539_v61 }
 0x347   : > { %v1919_v11 = vpop.permute.xlu0 %1918 }
 0x348   : > { %v1947_v12 = vrot.slane %v1919_v11, %v4539_v61  ;;  %v1965_v13 = vsel %vm1866_vm5, %v1943_v52, %v1964_v23  ;;  %v3781_v23 = vld [vmem:[%s4971_s1] sm:$0xff]   ;;  %s4936_s1 = smov 8  }
 0x34a   : > { %v1966_v36 = vsel %vm1868_vm6, %v1947_v12, %v1965_v13 }
 0x34b   : > { %v1922_v0 = vpop.permute.xlu1 %1921 }
 0x34c   : > { %v1951_v22 = vrot.slane %v1922_v0, %v4539_v61 }
 0x34e   : > { %v1967_v40 = vsel %vm1870_vm7, %v1951_v22, %v1966_v36 }
 0x34f   : > { %v1925_v10 = vpop.permute.xlu0 %1924 }
 0x350   : > { %v1955_v24 = vrot.slane %v1925_v10, %v4539_v61 }
 0x352   : > { %v1968_v7 = vsel %vm1872_vm8, %v1955_v24, %v1967_v40 }
 0x353   : > { %v1928_v18 = vpop.permute.xlu1 %1927 }
 0x354   : > { %v1959_v34 = vrot.slane %v1928_v18, %v4539_v61 }
 0x356   : > { %v1969_v16 = vsel %vm1874_vm9, %v1959_v34, %v1968_v7  ;;  %v3505_v34 = vld [vmem:[%s4972_s7] ss:$0 sm:$0xff]  ;;  %s4973_s7 = sld [smem:[#allocation11_spill]] }
 0x357   : > { %v2215_v8 = vpop.permute.xlu1 %2214 }
 0x358   : > { %v2240_v15 = vrot.slane %v2215_v8, %v4539_v61 }
 0x359   : > { %v1931_v9 = vpop.permute.xlu0 %1930 }
 0x35a   : > { %v1963_v29 = vrot.slane %v1931_v9, %v4539_v61 }
 0x35b   : > { %v2221_v35 = vpop.permute.xlu1 %2220 }
 0x35c   : > { %v1970_v32 = vsel %vm1876_vm10, %v1963_v29, %v1969_v16  ;;  %v2248_v27 = vrot.slane %v2221_v35, %v4539_v61  ;;  %v3860_v29 = vld [vmem:[%s4241_s19 + $0x10] sm:$0xff]  ;;  %v3861_v35 = vld [vmem:[%s4241_s19] sm:$0xff] }
 0x35d   : > { %v1971_v28 = vpack.c.b16 %v1970_v32, %v1970_v32  ;;  %v2218_v19 = vpop.permute.xlu0 %2217 }
 0x35e   : > { %v2244_v20 = vrot.slane %v2218_v19, %v4539_v61 }
 0x35f   : > { %v2227_v25 = vpop.permute.xlu1 %2226  ;;  %3631 = vmatmul.mubr.msk.bf16.vlgmr.msra.gmra.mrb[12].mxu1 %vm1612_vm3, %v1971_v28 }
 0x360   : > { %v2269_v26 = vsel %vm1864_vm4, %v2244_v20, %v2240_v15  ;;  %3642 = vmatprep.mubr.msk.bf16.mxu1 %vm3969_vm0, %v3968_v2  ;;  %v2256_v14 = vrot.slane %v2227_v25, %v4539_v61  ;;  %3641 = vmatpush3.bf16.msra.mxu1 %v3781_v23 }
 0x361   : > { %v2224_v42 = vpop.permute.xlu0 %2223  ;;  %v2270_v31 = vsel %vm1866_vm5, %v2248_v27, %v2269_v26  ;;  %3656 = vmatprep.subr.bf16.mxu1 %v3968_v2  ;;  %v3862_v26 = vld [vmem:[%s4241_s19 + $0x18] sm:$0xff] }
 0x362   : > { %v2252_v45 = vrot.slane %v2224_v42, %v4539_v61 }
 0x363   : > { %v2233_v60 = vpop.permute.xlu1 %2232 }
 0x364   : > { %v2271_v46 = vsel %vm1868_vm6, %v2252_v45, %v2270_v31  ;;  %v2264_v47 = vrot.slane %v2233_v60, %v4539_v61 }
 0x365   : > { %v2230_v6 = vpop.permute.xlu0 %2229  ;;  %v2272_v62 = vsel %vm1870_vm7, %v2256_v14, %v2271_v46 }
 0x366   : > { %v2260_v55 = vrot.slane %v2230_v6, %v4539_v61 }
 0x367   : > { %v1808_v3 = vpop.permute.xlu1 %1807 }
 0x368   : > { %v2273_v57 = vsel %vm1872_vm8, %v2260_v55, %v2272_v62  ;;  %v1835_v38 = vrot.slane %v1808_v3, %v4539_v61  ;;  %v3863_v62 = vld [vmem:[%s4241_s19 + $0x8] sm:$0xff] }
 0x369   : > { %v2236_v48 = vpop.permute.xlu0 %2235  ;;  %v2274_v5 = vsel %vm1874_vm9, %v2264_v47, %v2273_v57 }
 0x36a   : > { %v2268_v17 = vrot.slane %v2236_v48, %v4539_v61 }
 0x36b   : > { %v1814_v1 = vpop.permute.xlu1 %1813 }
 0x36c   : > { %v2275_v43 = vsel %vm1876_vm10, %v2268_v17, %v2274_v5  ;;  %v1843_v53 = vrot.slane %v1814_v1, %v4539_v61  ;;  %v3864_v5 = vld [vmem:[%s4241_s19 + $0x20] sm:$0xff] }
 0x36d   : > { %v1811_v37 = vpop.permute.xlu0 %1810  ;;  %v2277_v49 = vsel %vm1612_vm3, %v2275_v43, 0.0 }
 0x36e   : > { %v1839_v50 = vrot.slane %v1811_v37, %v4539_v61  ;;  %2278 = vadd.xlane.f32.xlu1 %v2277_v49 }
 0x36f   : > { %v1820_v33 = vpop.permute.xlu1 %1819 }
 0x370   : > { %v1865_v51 = vsel %vm1864_vm4, %v1839_v50, %v1835_v38  ;;  %v1851_v56 = vrot.slane %v1820_v33, %v4539_v61 }
 0x371   : > { %v1817_v30 = vpop.permute.xlu0 %1816  ;;  %v1867_v39 = vsel %vm1866_vm5, %v1843_v53, %v1865_v51 }
 0x372   : > { %v1847_v54 = vrot.slane %v1817_v30, %v4539_v61 }
 0x373   : > { %v1826_v63 = vpop.permute.xlu1 %1825 }
 0x374   : > { %v1869_v41 = vsel %vm1868_vm6, %v1847_v54, %v1867_v39  ;;  %v1859_v0 = vrot.slane %v1826_v63, %v4539_v61 }
 0x375   : > { %v1823_v21 = vpop.permute.xlu0 %1822  ;;  %v1871_v59 = vsel %vm1870_vm7, %v1851_v56, %v1869_v41 }
 0x376   : > { %v1855_v44 = vrot.slane %v1823_v21, %v4539_v61 }
 0x378   : > { %v1873_v11 = vsel %vm1872_vm8, %v1855_v44, %v1871_v59 }
 0x379   : > { %v1829_v4 = vpop.permute.xlu0 %1828  ;;  %v1875_v58 = vsel %vm1874_vm9, %v1859_v0, %v1873_v11 }
 0x37a   : > { %v1863_v52 = vrot.slane %v1829_v4, %v4539_v61 }
 0x37c   : > { %v1877_v10 = vsel %vm1876_vm10, %v1863_v52, %v1875_v58  ;;  %v3502_v52 = vld [vmem:[%s4973_s7] ss:$0 sm:$0xff]  ;;  %s4976_s7 = sld [smem:[#allocation18_spill]] }
 0x37d   : > { %v1879_v18 = vsel %vm1612_vm3, %v1877_v10, 0.0 }
 0x37e   : > { %1880 = vadd.xlane.f32.xlu0 %v1879_v18 }
 0x3ec   : > { %v2412_v12 = vpop.f32.mrb[16].mxu0 }
 0x3ed   : > { %v3638_v13 = vpop.f32.mrb[17].mxu0 }
 0x3ee   : > { %v2415_v22 = vpop.f32.mrb[18].mxu0 }
 0x3ef   : > { %v3639_v24 = vpop.f32.mrb[19].mxu0 }
 0x3f4   : > { %v3650_v8 = vpop.f32.mrb[20].mxu0 }
 0x3f5   : > { %v2558_v61 = vadd.f32 %v3650_v8, %v3505_v34  ;;  %v2549_v36 = vpop.f32.mrb[21].mxu0 }
 0x3f6   : > { %v2550_v40 = vadd.f32 %v3505_v34, %v2549_v36  ;;  %v3651_v9 = vpop.f32.mrb[22].mxu0  ;;  %v3867_v36 = vld [vmem:[%s4241_s19 + $0x30] sm:$0xff] }
 0x3f7   : > { %v2552_v7 = vpop.f32.mrb[23].mxu0  ;;  %v4629_v16 = vadd.f32 %v3860_v29, %v2558_v61  ;;  %v2561_v28 = vadd.f32 %v3651_v9, %v3505_v34 }
 0x3f8   : > { %v4632_v32 = vadd.f32 %v3861_v35, %v2550_v40  ;;  %v2553_v42 = vadd.f32 %v3505_v34, %v2552_v7  ;;  %v3868_v35 = vld [vmem:[%s4241_s19 + $0x38] sm:$0xff] }
 0x3f9   : > { %v2625_v19 = vsel %vm1152_vm1, %v4629_v16, 0.0  ;;  %v4637_v27 = vadd.f32 %v3862_v26, %v2561_v28 }
 0x3fa   : > { %2626 = vadd.xlane.f32.xlu1 %v2625_v19  ;;  %v2619_v60 = vsel %vm1152_vm1, %v4632_v32, 0.0  ;;  %v2612_v3 = vadd.f32 %v3863_v62, %v2553_v42 }
 0x3fb   : > { %v2279_v15 = vpop.xlane.xlu1 %2278  ;;  %v2628_v57 = vsel %vm1152_vm1, %v4637_v27, 0.0 }
 0x3fc   : > { %v2280_v20 = vadd.f32 1e-06, %v2279_v15  ;;  %v3654_v25 = vpop.f32.mrb[24].mxu0  ;;  %v2622_v47 = vsel %vm1152_vm1, %v2612_v3, 0.0 }
 0x3fd   : > { %v2574_v45 = vadd.f32 %v3654_v25, %v3505_v34  ;;  %v2565_v31 = vpop.f32.mrb[25].mxu0 }
 0x3fe   : > { %3820 = vrcp.f32 %v2280_v20  ;;  %v3655_v46 = vpop.f32.mrb[26].mxu0  ;;  %2620 = vadd.xlane.f32.xlu1 %v2619_v60  ;;  %v2566_v1 = vadd.f32 %v3505_v34, %v2565_v31 }
 0x3ff   : > { %v2577_v14 = vadd.f32 %v3655_v46, %v3505_v34  ;;  %v2568_v6 = vpop.f32.mrb[27].mxu0  ;;  %v2617_v40 = vadd.f32 %v3867_v36, %v2574_v45 }
 0x400   : > { %v2569_v55 = vadd.f32 %v3505_v34, %v2568_v6  ;;  %v2615_v43 = vadd.f32 %v3864_v5, %v2566_v1  ;;  %v3866_v34 = vld [vmem:[%s4241_s19 + $0x28] sm:$0xff]  ;;  %s4974_s19 = sld [smem:[#allocation16_spill]] }
 0x401   : > { %v2618_v28 = vadd.f32 %v3868_v35, %v2577_v14  ;;  %v2637_v20 = vsel %vm1152_vm1, %v2617_v40, 0.0 }
 0x402   : > { %2629 = vadd.xlane.f32.xlu1 %v2628_v57  ;;  %v2631_v37 = vsel %vm1152_vm1, %v2615_v43, 0.0  ;;  %v2616_v8 = vadd.f32 %v3866_v34, %v2569_v55 }
 0x403   : > { %v2640_v42 = vsel %vm1152_vm1, %v2618_v28, 0.0 }
 0x404   : > { %v2634_v7 = vsel %vm1152_vm1, %v2616_v8, 0.0 }
 0x406   : > { %2623 = vadd.xlane.f32.xlu1 %v2622_v47 }
 0x408   : > { %v3821_v48 = vpop.eup %3820 }
 0x409   : > { %v2419_v17 = vmul.f32 %v3821_v48, %v2412_v12  ;;  %v3865_v12 = vld [vmem:[%s4238_s10] sm:$0xff]  ;;  %s4975_s10 = sld [smem:[#allocation17_spill]] }
 0x40b   : > { %2421 = vrot.lane.b32.xlu0 %v2419_v17, %s4936_s1  ;;  %v1881_v33 = vpop.xlane.xlu0 %1880  ;;  %s4977_s1 = sld [smem:[#allocation22_spill]] }
 0x40c   : > { %v1882_v53 = vadd.f32 1e-06, %v1881_v33 }
 0x40e   : > { %3822 = vrcp.f32 %v1882_v53 }
 0x411   : > { %v3782_v36 = vld [vmem:[%s4977_s1] sm:$0xff]   ;;  %s4979_s1 = sld [smem:[#allocation15_spill]] }
 0x412   : > { %3670 = vmatprep.subr.bf16.mxu0 %v3782_v36 }
 0x413   : > { %3671 = vmatpush3.bf16.msra.mxu0 %v3782_v36 }
 0x418   : > { %v3823_v30 = vpop.eup %3822 }
 0x42a   : > { %2632 = vadd.xlane.f32.xlu0 %v2631_v37 }
 0x432   : > { %v2013_v49 = vpop.f32.mrb[12].mxu1 }
 0x433   : > { %v3632_v38 = vpop.f32.mrb[13].mxu1  ;;  %v2020_v54 = vmul.f32 %v3823_v30, %v2013_v49 }
 0x434   : > { %v2016_v50 = vpop.f32.mrb[14].mxu1 }
 0x435   : > { %v3633_v51 = vpop.f32.mrb[15].mxu1 }
 0x47d   : > { %v2422_v39 = vpop.permute.xlu0 %2421 }
 0x47e   : > { %v2424_v41 = vsel %vm1612_vm3, %v2020_v54, %v2422_v39 }
 0x47f   : > { %v2425_v56 = vpack.c.bf16 %v2424_v41, %v2424_v41 }
 0x481   : > { %3643 = vmatmul.mubr.msk.bf16.vlgmr.msra.gmra.mrb[16].mxu1 %vm1152_vm1, %v2425_v56 }
 0x482   : > { %3658 = vmatprep.mubr.msk.bf16.mxu1 %vm3969_vm0, %v3968_v2 }
 0x487   : > { %v2627_v0 = vpop.xlane.xlu1 %2626 }
 0x488   : > { %v2645_v25 = vmul.f32 0.0625, %v2627_v0 }
 0x48a   : > { %v4668_v45 = vsub.f32 %v4629_v16, %v2645_v25 }
 0x48b   : > { %v2621_v4 = vpop.xlane.xlu1 %2620 }
 0x48c   : > { %v2643_v9 = vmul.f32 0.0625, %v2621_v4 }
 0x48e   : > { %v2651_v19 = vsub.f32 %v4632_v32, %v2643_v9  ;;  %v2661_v32 = vmul.f32 %v4668_v45, %v4668_v45 }
 0x48f   : > { %v2630_v24 = vpop.xlane.xlu1 %2629 }
 0x490   : > { %v2659_v31 = vmul.f32 %v2651_v19, %v2651_v19  ;;  %v2673_v6 = vsel %vm1152_vm1, %v2661_v32, 0.0  ;;  %v2646_v55 = vmul.f32 0.0625, %v2630_v24 }
 0x492   : > { %v2667_v60 = vsel %vm1152_vm1, %v2659_v31, 0.0  ;;  %v4676_v57 = vsub.f32 %v4637_v27, %v2646_v55 }
 0x493   : > { %v2624_v29 = vpop.xlane.xlu1 %2623 }
 0x494   : > { %v2644_v15 = vmul.f32 0.0625, %v2624_v29 }
 0x496   : > { %v2652_v26 = vsub.f32 %v2612_v3, %v2644_v15 }
 0x498   : > { %v2660_v46 = vmul.f32 %v2652_v26, %v2652_v26 }
 0x49a   : > { %v2670_v14 = vsel %vm1152_vm1, %v2660_v46, 0.0 }
 0x4b7   : > { %v2633_v21 = vpop.xlane.xlu0 %2632 }
 0x4b8   : > { %v2647_v63 = vmul.f32 0.0625, %v2633_v21 }
 0x4ba   : > { %v4652_v44 = vsub.f32 %v2615_v43, %v2647_v63  ;;  %v2662_v43 = vmul.f32 %v4676_v57, %v4676_v57 }
 0x4bc   : > { %v2663_v59 = vmul.f32 %v4652_v44, %v4652_v44  ;;  %v2676_v27 = vsel %vm1152_vm1, %v2662_v43, 0.0 }
 0x4be   : > { %v2679_v11 = vsel %vm1152_vm1, %v2663_v59, 0.0 }
 0x4bf   : > { %2680 = vadd.xlane.f32.xlu0 %v2679_v11 }
 0x554   : > { %v2478_v58 = vpop.f32.mrb[16].mxu1 }
 0x555   : > { %v2479_v10 = vadd.f32 %v3502_v52, %v2478_v58  ;;  %v3644_v18 = vpop.f32.mrb[17].mxu1 }
 0x556   : > { %v2481_v23 = vpop.f32.mrb[18].mxu1  ;;  %v4702_v18 = vld [vmem:[%s4974_s19] ss:$0 sm:$0xff]  ;;  %s4978_s19 = sld [smem:[#allocation14_spill]] }
 0x557   : > { %v2580_v13 = vadd.f32 %v3865_v12, %v2479_v10  ;;  %v3645_v22 = vpop.f32.mrb[19].mxu1 }
 0x558   : > { %v4707_v22 = vld [vmem:[%s4975_s10] ss:$0 sm:$0xff]  ;;  %s4980_s10 = sld [smem:[#allocation20_spill]] }
 0x559   : > { %v2581_v61 = vsel %vm1152_vm1, %v2580_v13, 0.0 }
 0x55a   : > { %2582 = vadd.xlane.f32.xlu1 %v2581_v61  ;;  %v3783_v61 = vld [vmem:[%s4976_s7] sm:$0xff]   ;;  %s4981_s7 = sld [smem:[#allocation24_spill]] }
 0x55b   : > { %3657 = vmatpush3.bf16.msra.mxu1 %v3783_v61 }
 0x55c   : > { %3662 = vmatprep.subr.bf16.mxu1 %v3968_v2 }
 0x55e   : > { %2635 = vadd.xlane.f32.xlu1 %v2634_v7  ;;  %v2681_v7 = vpop.xlane.xlu0 %2680 }
 0x55f   : > { %v2695_v29 = vmul.f32 0.0625, %v2681_v7 }
 0x561   : > { %v2703_v15 = vadd.f32 1e-05, %v2695_v29 }
 0x562   : > { %2638 = vadd.xlane.f32.xlu1 %v2637_v20 }
 0x566   : > { %2641 = vadd.xlane.f32.xlu1 %v2640_v42 }
 0x56a   : > { %2668 = vadd.xlane.f32.xlu1 %v2667_v60 }
 0x56e   : > { %2671 = vadd.xlane.f32.xlu1 %v2670_v14 }
 0x572   : > { %2674 = vadd.xlane.f32.xlu1 %v2673_v6 }
 0x5e7   : > { %v2583_v62 = vpop.xlane.xlu1 %2582 }
 0x5e8   : > { %v2585_v3 = vmul.f32 0.0625, %v2583_v62 }
 0x5ea   : > { %v4678_v16 = vsub.f32 %v2580_v13, %v2585_v3 }
 0x5eb   : > { %v2636_v47 = vpop.xlane.xlu1 %2635 }
 0x5ec   : > { %v2648_v48 = vmul.f32 0.0625, %v2636_v47  ;;  %v2587_v17 = vmul.f32 %v4678_v16, %v4678_v16 }
 0x5ee   : > { %v4682_v1 = vsub.f32 %v2616_v8, %v2648_v48  ;;  %v2588_v5 = vsel %vm1152_vm1, %v2587_v17, 0.0  ;;  %v3511_v48 = vld [vmem:[%s4978_s19] ss:$0 sm:$0xff]  ;;  %s4982_s19 = sld [smem:[#allocation19_spill]] }
 0x5ef   : > { %2589 = vadd.xlane.f32.xlu1 %v2588_v5  ;;  %v2639_v37 = vpop.xlane.xlu1 %2638 }
 0x5f0   : > { %v2649_v49 = vmul.f32 0.0625, %v2639_v37  ;;  %v2664_v50 = vmul.f32 %v4682_v1, %v4682_v1 }
 0x5f2   : > { %v4687_v38 = vsub.f32 %v2617_v40, %v2649_v49  ;;  %v2682_v54 = vsel %vm1152_vm1, %v2664_v50, 0.0  ;;  %v3512_v49 = vld [vmem:[%s4979_s1] ss:$0 sm:$0xff]  ;;  %s4983_s1 = sld [smem:[#allocation23_spill]] }
 0x5f3   : > { %2677 = vadd.xlane.f32.xlu1 %v2676_v27  ;;  %v2642_v51 = vpop.xlane.xlu1 %2641 }
 0x5f4   : > { %v2650_v33 = vmul.f32 0.0625, %v2642_v51  ;;  %v2665_v53 = vmul.f32 %v4687_v38, %v4687_v38  ;;  %v3515_v61 = vld [vmem:[%s4982_s19] ss:$0 sm:$0xff]  ;;  %s4984_s19 = sld [smem:[#allocation25_spill]] }
 0x5f6   : > { %v4694_v30 = vsub.f32 %v2618_v28, %v2650_v33  ;;  %v2685_v39 = vsel %vm1152_vm1, %v2665_v53, 0.0 }
 0x5f7   : > { %2683 = vadd.xlane.f32.xlu1 %v2682_v54  ;;  %v2669_v41 = vpop.xlane.xlu1 %2668  ;;  %2686 = vadd.xlane.f32.xlu0 %v2685_v39  ;;  %v3784_v39 = vld [vmem:[%s4980_s10] sm:$0xff]  }
 0x5f8   : > { %v2691_v56 = vmul.f32 0.0625, %v2669_v41  ;;  %v2666_v21 = vmul.f32 %v4694_v30, %v4694_v30  ;;  %v3522_v7 = vld [vmem:[%s4983_s1] ss:$0 sm:$0xff]  ;;  %s4985_s1 = sld [smem:[#allocation21_spill]] }
 0x5fa   : > { %v2699_v63 = vadd.f32 1e-05, %v2691_v56  ;;  %v2688_v59 = vsel %vm1152_vm1, %v2666_v21, 0.0 }
 0x5fb   : > { %2689 = vadd.xlane.f32.xlu1 %v2688_v59  ;;  %v2672_v11 = vpop.xlane.xlu1 %2671 }
 0x5fc   : > { %3824 = vrsqrt.f32 %v2699_v63  ;;  %v2692_v0 = vmul.f32 0.0625, %v2672_v11 }
 0x5fe   : > { %v2700_v4 = vadd.f32 1e-05, %v2692_v0 }
 0x5ff   : > { %v2675_v40 = vpop.xlane.xlu1 %2674 }
 0x600   : > { %3826 = vrsqrt.f32 %v2700_v4  ;;  %v2693_v9 = vmul.f32 0.0625, %v2675_v40 }
 0x602   : > { %v2701_v35 = vadd.f32 1e-05, %v2693_v9 }
 0x604   : > { %3828 = vrsqrt.f32 %v2701_v35 }
 0x606   : > { %v3825_v52 = vpop.eup %3824 }
 0x607   : > { %v2715_v58 = vmul.f32 %v3825_v52, %v2651_v19 }
 0x609   : > { %v2730_v12 = vmul.f32 %v4702_v18, %v2715_v58 }
 0x60a   : > { %v3827_v10 = vpop.eup %3826 }
 0x60b   : > { %v2716_v23 = vmul.f32 %v3827_v10, %v2652_v26  ;;  %v4710_v24 = vadd.f32 %v4707_v22, %v2730_v12 }
 0x60d   : > { %v2731_v13 = vmul.f32 %v4702_v18, %v2716_v23 }
 0x60e   : > { %v3829_v62 = vpop.eup %3828 }
 0x60f   : > { %v4713_v34 = vadd.f32 %v4707_v22, %v2731_v13  ;;  %v2717_v5 = vmul.f32 %v3829_v62, %v4668_v45  ;;  %v3785_v13 = vld [vmem:[%s4980_s10 + $0x8] sm:$0xff]  }
 0x611   : > { %v2881_v8 = vpack.c.bf16 %v4713_v34, %v4710_v24  ;;  %v2732_v33 = vmul.f32 %v4702_v18, %v2717_v5 }
 0x613   : > { %3672 = vmatprep.mubr.msk.bf16.mxu0 %vm1152_vm1, %v2881_v8  ;;  %v4735_v21 = vadd.f32 %v4707_v22, %v2732_v33  ;;  %v3786_v8 = vld [vmem:[%s4981_s7] sm:$0xff]  }
 0x67c   : > { %v2590_v28 = vpop.xlane.xlu1 %2589 }
 0x67d   : > { %v2591_v19 = vmul.f32 0.0625, %v2590_v28 }
 0x67f   : > { %v2592_v20 = vadd.f32 1e-05, %v2591_v19 }
 0x680   : > { %v2678_v25 = vpop.xlane.xlu1 %2677 }
 0x681   : > { %3830 = vrsqrt.f32 %v2592_v20  ;;  %v2694_v26 = vmul.f32 0.0625, %v2678_v25  ;;  %v3787_v20 = vld [vmem:[%s4981_s7 + $0x8] sm:$0xff]   ;;  %s1116_s7 = scalar_lea.vmem %s4154_s12, %s4989_s6  ;;  %s4990_s6 = sand.u32 1, %s3923_s23  }
 0x682   : > { %3832 = vrsqrt.f32 %v2703_v15 }
 0x683   : > { %v2702_v42 = vadd.f32 1e-05, %v2694_v26 }
 0x684   : > { %v2684_v31 = vpop.xlane.xlu1 %2683  ;;  %v2687_v60 = vpop.xlane.xlu0 %2686 }
 0x685   : > { %3834 = vrsqrt.f32 %v2702_v42  ;;  %v2696_v46 = vmul.f32 0.0625, %v2684_v31  ;;  %v2697_v14 = vmul.f32 0.0625, %v2687_v60 }
 0x687   : > { %v2704_v32 = vadd.f32 1e-05, %v2696_v46  ;;  %v2705_v6 = vadd.f32 1e-05, %v2697_v14 }
 0x688   : > { %v2690_v55 = vpop.xlane.xlu1 %2689 }
 0x689   : > { %3836 = vrsqrt.f32 %v2704_v32  ;;  %v2698_v3 = vmul.f32 0.0625, %v2690_v55 }
 0x68a   : > { %3838 = vrsqrt.f32 %v2705_v6 }
 0x68b   : > { %v3831_v47 = vpop.eup %3830  ;;  %v2706_v17 = vadd.f32 1e-05, %v2698_v3 }
 0x68c   : > { %v2594_v43 = vmul.f32 %v3831_v47, %v4678_v16  ;;  %v3833_v37 = vpop.eup %3832 }
 0x68d   : > { %3840 = vrsqrt.f32 %v2706_v17  ;;  %v2719_v51 = vmul.f32 %v3833_v37, %v4652_v44 }
 0x68e   : > { %v2602_v27 = vmul.f32 %v3511_v48, %v2594_v43 }
 0x68f   : > { %v3835_v50 = vpop.eup %3834 }
 0x690   : > { %v2718_v53 = vmul.f32 %v3835_v50, %v4676_v57  ;;  %v4728_v54 = vadd.f32 %v3512_v49, %v2602_v27  ;;  %v2734_v57 = vmul.f32 %v4702_v18, %v2719_v51 }
 0x692   : > { %v2733_v41 = vmul.f32 %v4702_v18, %v2718_v53  ;;  %v2753_v45 = vpack.c.bf16 %v4728_v54, %v4728_v54 }
 0x693   : > { %v3837_v16 = vpop.eup %3836 }
 0x694   : > { %v3839_v56 = vpop.eup %3838  ;;  %v4738_v63 = vadd.f32 %v4707_v22, %v2733_v41  ;;  %v2720_v44 = vmul.f32 %v3837_v16, %v4682_v1  ;;  %3659 = vmatmul.mubr.msk.bf16.vlgmr.msra.gmra.mrb[20].mxu1 %vm1152_vm1, %v2753_v45 }
 0x695   : > { %v2721_v59 = vmul.f32 %v3839_v56, %v4687_v38  ;;  %3663 = vmatpush3.bf16.msra.mxu1 %v3784_v39  ;;  %3666 = vmatprep.mubr.msk.bf16.mxu1 %vm3969_vm0, %v3968_v2  ;;  %v4753_v38 = vadd.f32 %v4707_v22, %v2734_v57 }
 0x696   : > { %v2882_v11 = vpack.c.bf16 %v4738_v63, %v4735_v21  ;;  %v2735_v0 = vmul.f32 %v4702_v18, %v2720_v44  ;;  %3664 = vmatprep.subr.bf16.mxu1 %v3968_v2  ;;  %v3528_v44 = vld [vmem:[%s4984_s19] ss:$0 sm:$0xff]  ;;  %s4937_s19 = sand.u32 1, %s3923_s23  }
 0x697   : > { %v3841_v1 = vpop.eup %3840  ;;  %v2736_v58 = vmul.f32 %v4702_v18, %v2721_v59 }
 0x698   : > { %v2722_v4 = vmul.f32 %v3841_v1, %v4694_v30  ;;  %3673 = vmatmul.mubr.msk.bf16.vlgmr.msra.gmra.mrb[28].mxu0 %vm1152_vm1, %v2882_v11  ;;  %v4756_v52 = vadd.f32 %v4707_v22, %v2735_v0 }
 0x699   : > { %v4764_v30 = vadd.f32 %v4707_v22, %v2736_v58  ;;  %3665 = vmatpush3.bf16.msra.mxu1 %v3785_v13 }
 0x69a   : > { %v2883_v10 = vpack.c.bf16 %v4756_v52, %v4753_v38  ;;  %v2737_v2 = vmul.f32 %v4702_v18, %v2722_v4  ;;  %3680 = vmatprep.subr.bf16.mxu1 %v3786_v8 }
 0x69c   : > { %3676 = vmatprep.mubr.msk.bf16.mxu0 %vm1152_vm1, %v2883_v10  ;;  %v4767_v23 = vadd.f32 %v4707_v22, %v2737_v2 }
 0x69e   : > { %v2884_v12 = vpack.c.bf16 %v4767_v23, %v4764_v30 }
 0x6a0   : > { %3677 = vmatmul.mubr.msk.bf16.gmra.mrb[32].mxu0 %vm1152_vm1, %v2884_v12 }
 0x767   : > { %v2806_v18 = vpop.f32.mrb[20].mxu1 }
 0x768   : > { %v2807_v36 = vadd.f32 %v3515_v61, %v2806_v18  ;;  %v3660_v40 = vpop.f32.mrb[21].mxu1 }
 0x769   : > { %v2809_v9 = vpop.f32.mrb[22].mxu1 }
 0x76a   : > { %v2812_v29 = vmax.f32 %v2807_v36, 0.0  ;;  %v3661_v35 = vpop.f32.mrb[23].mxu1 }
 0x76b   : > { %v3674_v22 = vpop.f32.mrb[28].mxu0 }
 0x76c   : > { %v2813_v28 = vpack.c.bf16 %v2812_v29, %v2812_v29  ;;  %v2955_v19 = vadd.f32 %v3674_v22, %v3522_v7  ;;  %v2946_v15 = vpop.f32.mrb[29].mxu0  ;;  %v3518_v29 = vld [vmem:[%s4985_s1] ss:$0 sm:$0xff]  ;;  %s3440_s1 = sshll.u32 %s4937_s19, 6 }
 0x76d   : > { %v2947_v25 = vadd.f32 %v3522_v7, %v2946_v15  ;;  %v3675_v26 = vpop.f32.mrb[30].mxu0  ;;  %s4855_s19 = scalar_lea.vmem [#allocation2], %s3440_s1  ;;  %s4987_s1 = sld [smem:[#allocation26_spill]] }
 0x76e   : > { %v2958_v42 = vadd.f32 %v3675_v26, %v3522_v7  ;;  %3667 = vmatmul.mubr.msk.bf16.vlgmr.msra.gmra.mrb[24].mxu1 %vm2837_vm11, %v2813_v28  ;;  %v2949_v31 = vpop.f32.mrb[31].mxu0  ;;  %v2979_v46 = vmax.f32 %v2955_v19, 0.0  ;;  %s3291_s5 = sshll.u32 %s4855_s19, 4  ;;  %s4887_s5 = int_to_ptr.vmem [resolvable:$true] %s3291_s5 }
 0x76f   : > { %v2950_v60 = vadd.f32 %v3522_v7, %v2949_v31  ;;  %3681 = vmatpush3.bf16.msra.mxu1 %v3786_v8  ;;  %v2977_v32 = vmax.f32 %v2947_v25, 0.0 }
 0x770   : > { %v2980_v14 = vmax.f32 %v2958_v42, 0.0  ;;  %3682 = vmatprep.subr.bf16.mxu1 %v3787_v20 }
 0x771   : > { %v2978_v6 = vmax.f32 %v2950_v60, 0.0 }
 0x772   : > { %v2986_v55 = vpack.c.bf16 %v2980_v14, %v2979_v46 }
 0x773   : > { %v2985_v62 = vpack.c.bf16 %v2978_v6, %v2977_v32  ;;  %3683 = vmatpush3.bf16.msra.mxu1 %v3787_v20  ;;  %v3678_v3 = vpop.f32.mrb[32].mxu0 }
 0x774   : > { %v2971_v47 = vadd.f32 %v3678_v3, %v3522_v7  ;;  %v2962_v48 = vpop.f32.mrb[33].mxu0 }
 0x775   : > { %v2963_v17 = vadd.f32 %v3522_v7, %v2962_v48  ;;  %v3679_v5 = vpop.f32.mrb[34].mxu0  ;;  %3684 = vmatprep.mubr.msk.bf16.mxu1 %vm2837_vm11, %v2985_v62 }
 0x776   : > { %v2974_v43 = vadd.f32 %v3679_v5, %v3522_v7  ;;  %v2965_v37 = vpop.f32.mrb[35].mxu0  ;;  %3685 = vmatmul.mubr.msk.bf16.vlgmr.msra.gmra.mrb[28].mxu1 %vm2837_vm11, %v2986_v55  ;;  %v2983_v27 = vmax.f32 %v2971_v47, 0.0 }
 0x777   : > { %v2966_v49 = vadd.f32 %v3522_v7, %v2965_v37  ;;  %v2981_v51 = vmax.f32 %v2963_v17, 0.0 }
 0x778   : > { %v2984_v50 = vmax.f32 %v2974_v43, 0.0 }
 0x779   : > { %v2982_v33 = vmax.f32 %v2966_v49, 0.0 }
 0x77a   : > { %v2988_v53 = vpack.c.bf16 %v2984_v50, %v2983_v27 }
 0x77b   : > { %v2987_v39 = vpack.c.bf16 %v2982_v33, %v2981_v51 }
 0x77d   : > { %3688 = vmatprep.mubr.msk.bf16.mxu1 %vm2837_vm11, %v2987_v39 }
 0x77e   : > { %3689 = vmatmul.mubr.msk.bf16.gmra.mrb[32].mxu1 %vm2837_vm11, %v2988_v53 }
 0x841   : > { %v2875_v41 = vpop.f32.mrb[24].mxu1 }
 0x842   : > { %v3668_v45 = vpop.f32.mrb[25].mxu1 }
 0x843   : > { %v2878_v16 = vpop.f32.mrb[26].mxu1 }
 0x844   : > { %v3669_v56 = vpop.f32.mrb[27].mxu1 }
 0x849   : > { %v3686_v57 = vpop.f32.mrb[28].mxu1 }
 0x84a   : > { %v3067_v59 = vadd.f32 %v3686_v57, %v3528_v44  ;;  %v3058_v11 = vpop.f32.mrb[29].mxu1 }
 0x84b   : > { %v3059_v0 = vadd.f32 %v3528_v44, %v3058_v11  ;;  %v3687_v1 = vpop.f32.mrb[30].mxu1 }
 0x84c   : > { %v3070_v4 = vadd.f32 %v3687_v1, %v3528_v44  ;;  %v3061_v58 = vpop.f32.mrb[31].mxu1  ;;  %v3121_v10 = vadd.f32 %v3067_v59, %v4735_v21 }
 0x84d   : > { %v3062_v2 = vadd.f32 %v3528_v44, %v3061_v58  ;;  %v3119_v8 = vadd.f32 %v3059_v0, %v4710_v24 }
 0x84e   : > { %v3122_v12 = vadd.f32 %v3070_v4, %v4738_v63  ;;  %v3133_v13 = vsel %vm1152_vm1, %v3121_v10, 0.0 }
 0x84f   : > { %3134 = vadd.xlane.f32.xlu0 %v3133_v13  ;;  %v3120_v61 = vadd.f32 %v3062_v2, %v4713_v34  ;;  %v3127_v7 = vsel %vm1152_vm1, %v3119_v8, 0.0  ;;  %v2876_v34 = vadd.f32 %v3518_v29, %v2875_v41 }
 0x850   : > { %v3136_v18 = vsel %vm1152_vm1, %v3122_v12, 0.0 }
 0x851   : > { %3137 = vadd.xlane.f32.xlu1 %v3136_v18  ;;  %v3690_v36 = vpop.f32.mrb[32].mxu1  ;;  %v3130_v24 = vsel %vm1152_vm1, %v3120_v61, 0.0 }
 0x852   : > { %v3083_v40 = vadd.f32 %v3690_v36, %v3528_v44  ;;  %v3074_v9 = vpop.f32.mrb[33].mxu1 }
 0x853   : > { %v3075_v21 = vadd.f32 %v3528_v44, %v3074_v9  ;;  %3128 = vadd.xlane.f32.xlu0 %v3127_v7  ;;  %v3691_v35 = vpop.f32.mrb[34].mxu1 }
 0x854   : > { %v3125_v63 = vadd.f32 %v3083_v40, %v4764_v30  ;;  %v3077_v22 = vpop.f32.mrb[35].mxu1  ;;  %v3086_v28 = vadd.f32 %v3691_v35, %v3528_v44  ;;  %v3089_v30 = vadd.f32 %v2876_v34, %v4728_v54 }
 0x855   : > { %v3078_v19 = vadd.f32 %v3528_v44, %v3077_v22  ;;  %3131 = vadd.xlane.f32.xlu1 %v3130_v24  ;;  %v3123_v15 = vadd.f32 %v3075_v21, %v4753_v38 }
 0x856   : > { %v3145_v20 = vsel %vm1152_vm1, %v3125_v63, 0.0  ;;  %v3126_v26 = vadd.f32 %v3086_v28, %v4767_v23  ;;  %v3090_v38 = vsel %vm1152_vm1, %v3089_v30, 0.0 }
 0x857   : > { %v3124_v25 = vadd.f32 %v3078_v19, %v4756_v52  ;;  %3146 = vadd.xlane.f32.xlu0 %v3145_v20  ;;  %v3139_v31 = vsel %vm1152_vm1, %v3123_v15, 0.0 }
 0x858   : > { %v3148_v60 = vsel %vm1152_vm1, %v3126_v26, 0.0 }
 0x859   : > { %v3142_v42 = vsel %vm1152_vm1, %v3124_v25, 0.0 }
 0x85a   : > { %3143 = vadd.xlane.f32.xlu1 %v3142_v42 }
 0x85b   : > { %3140 = vadd.xlane.f32.xlu0 %v3139_v31 }
 0x85e   : > { %3149 = vadd.xlane.f32.xlu1 %v3148_v60 }
 0x85f   : > { %3091 = vadd.xlane.f32.xlu0 %v3090_v38 }
 0x8dc   : > { %v3135_v46 = vpop.xlane.xlu0 %3134 }
 0x8dd   : > { %v3153_v14 = vmul.f32 0.0625, %v3135_v46 }
 0x8de   : > { %v3138_v52 = vpop.xlane.xlu1 %3137 }
 0x8df   : > { %v4802_v32 = vsub.f32 %v3121_v10, %v3153_v14  ;;  %v3154_v23 = vmul.f32 0.0625, %v3138_v52  ;;  %v3537_v52 = vld [vmem:[%s4144_s27] ss:$0 sm:$0xff] }
 0x8e0   : > { %v3129_v6 = vpop.xlane.xlu0 %3128 }
 0x8e1   : > { %v4804_v55 = vsub.f32 %v3122_v12, %v3154_v23  ;;  %v3151_v54 = vmul.f32 0.0625, %v3129_v6  ;;  %v3169_v62 = vmul.f32 %v4802_v32, %v4802_v32 }
 0x8e2   : > { %v3132_v3 = vpop.xlane.xlu1 %3131 }
 0x8e3   : > { %v4808_v47 = vsub.f32 %v3119_v8, %v3151_v54  ;;  %v3152_v48 = vmul.f32 0.0625, %v3132_v3  ;;  %v3181_v17 = vsel %vm1152_vm1, %v3169_v62, 0.0  ;;  %v3170_v5 = vmul.f32 %v4804_v55, %v4804_v55 }
 0x8e4   : > { %3182 = vadd.xlane.f32.xlu1 %v3181_v17  ;;  %v3147_v43 = vpop.xlane.xlu0 %3146  ;;  %v3538_v17 = vld [vmem:[%s4986_s4] ss:$0 sm:$0xff]  ;;  %s3546_s4 = sshll.u32 %s4182_s0, 10  ;;  %s4894_s0 = scalar_lea.sflag [#allocation3], %s4990_s6 }
 0x8e5   : > { %v4813_v37 = vsub.f32 %v3120_v61, %v3152_v48  ;;  %v3157_v49 = vmul.f32 0.0625, %v3147_v43  ;;  %v3184_v27 = vsel %vm1152_vm1, %v3170_v5, 0.0  ;;  %v3167_v50 = vmul.f32 %v4808_v47, %v4808_v47  ;;  %s4885_s8 = scalar_lea.hbm %s4159_s20, %s3546_s4  ;;  %s3974_s4 = smov [#allocation2]  }
 0x8e6   : > { %3185 = vadd.xlane.f32.xlu0 %v3184_v27  ;;  %s3873_s18 = sshll.u32 %s3974_s4, 4  ;;  %s3874_s18 = int_to_ptr.vmem [resolvable:$false] %s3873_s18 }
 0x8e7   : > { %v4818_v51 = vsub.f32 %v3125_v63, %v3157_v49  ;;  %v3144_v33 = vpop.xlane.xlu1 %3143  ;;  %v3175_v53 = vsel %vm1152_vm1, %v3167_v50, 0.0  ;;  %v3168_v39 = vmul.f32 %v4813_v37, %v4813_v37  ;;  %p3876_p0 = scmp.lt.s32.totalorder %s4887_s5, %s3874_s18 }
 0x8e8   : > { %v3156_v41 = vmul.f32 0.0625, %v3144_v33  ;;  %3176 = vadd.xlane.f32.xlu1 %v3175_v53  ;;  %v3141_v45 = vpop.xlane.xlu0 %3140 }
 0x8e9   : > { %v3155_v16 = vmul.f32 0.0625, %v3141_v45  ;;  %v3178_v56 = vsel %vm1152_vm1, %v3168_v39, 0.0  ;;  %v3173_v44 = vmul.f32 %v4818_v51, %v4818_v51 }
 0x8ea   : > { %v4826_v57 = vsub.f32 %v3124_v25, %v3156_v41  ;;  %3179 = vadd.xlane.f32.xlu0 %v3178_v56 }
 0x8eb   : > { %v4828_v59 = vsub.f32 %v3123_v15, %v3155_v16  ;;  %v3150_v11 = vpop.xlane.xlu1 %3149  ;;  %v3193_v0 = vsel %vm1152_vm1, %v3173_v44, 0.0 }
 0x8ec   : > { %v3158_v1 = vmul.f32 0.0625, %v3150_v11  ;;  %3194 = vadd.xlane.f32.xlu1 %v3193_v0  ;;  %v3092_v4 = vpop.xlane.xlu0 %3091  ;;  %v3172_v58 = vmul.f32 %v4826_v57, %v4826_v57 }
 0x8ed   : > { %v3093_v10 = vmul.f32 0.0625, %v3092_v4  ;;  %v3171_v2 = vmul.f32 %v4828_v59, %v4828_v59 }
 0x8ee   : > { %v4835_v12 = vsub.f32 %v3126_v26, %v3158_v1  ;;  %v3190_v13 = vsel %vm1152_vm1, %v3172_v58, 0.0 }
 0x8ef   : > { %v4838_v8 = vsub.f32 %v3089_v30, %v3093_v10  ;;  %3191 = vadd.xlane.f32.xlu0 %v3190_v13  ;;  %v3187_v61 = vsel %vm1152_vm1, %v3171_v2, 0.0 }
 0x8f0   : > { %3188 = vadd.xlane.f32.xlu1 %v3187_v61  ;;  %v3174_v18 = vmul.f32 %v4835_v12, %v4835_v12 }
 0x8f1   : > { %v3095_v36 = vmul.f32 %v4838_v8, %v4838_v8 }
 0x8f2   : > { %v3196_v40 = vsel %vm1152_vm1, %v3174_v18, 0.0 }
 0x8f3   : > { %3197 = vadd.xlane.f32.xlu0 %v3196_v40  ;;  %v3096_v9 = vsel %vm1152_vm1, %v3095_v36, 0.0  ;;  %v3535_v40 = vld [vmem:[%s4987_s1] ss:$0 sm:$0xff]  ;;  %s3875_s1 = scalar_lea.vmem %s3874_s18, 2048 }
 0x8f4   : > { %3097 = vadd.xlane.f32.xlu1 %v3096_v9 }
 0x971   : > { %v3183_v7 = vpop.xlane.xlu1 %3182 }
 0x972   : > { %v3201_v29 = vmul.f32 0.0625, %v3183_v7 }
 0x973   : > { %v3186_v21 = vpop.xlane.xlu0 %3185 }
 0x974   : > { %v3209_v35 = vadd.f32 1e-05, %v3201_v29  ;;  %v3202_v63 = vmul.f32 0.0625, %v3186_v21  ;;  %v3536_v29 = vld [vmem:[%s4988_s3] ss:$0 sm:$0xff]  ;;  %s3869_s3 = scalar_lea.vmem %s4887_s5, 1024 }
 0x975   : > { %v3177_v22 = vpop.xlane.xlu1 %3176  ;;  %p3870_p11 = scmp.ne.s32.totalorder %s4887_s5, %s3869_s3  ;;  %p3877_p1 = scmp.lt.s32.totalorder %s3875_s1, %s3869_s3 }
 0x976   : > { %3842 = vrsqrt.f32 %v3209_v35  ;;  %v3210_v24 = vadd.f32 1e-05, %v3202_v63  ;;  %v3199_v28 = vmul.f32 0.0625, %v3177_v22 }
 0x977   : > { %v3180_v19 = vpop.xlane.xlu0 %3179  ;;  %p3871_p12 = pnand %p3870_p11, %p4199_p5  ;;  %p3878_p2 = por %p3877_p1, %p3876_p0 }
 0x978   : > { %3844 = vrsqrt.f32 %v3210_v24  ;;  %v3207_v34 = vadd.f32 1e-05, %v3199_v28  ;;  %v3200_v15 = vmul.f32 0.0625, %v3180_v19 }
 0x979   : > { %v3195_v20 = vpop.xlane.xlu1 %3194  ;;  %p3872_p13 = pneg %p3871_p12 }
 0x97a   : > { %3846 = vrsqrt.f32 %v3207_v34  ;;  %v3208_v25 = vadd.f32 1e-05, %v3200_v15  ;;  %v3205_v26 = vmul.f32 0.0625, %v3195_v20 }
 0x97b   : > { %p3879_p3 = pnand %p3878_p2, %p3872_p13 }
 0x97c   : > { %3848 = vrsqrt.f32 %v3208_v25  ;;  %v3213_v42 = vadd.f32 1e-05, %v3205_v26  ;;  %v3192_v30 = vpop.xlane.xlu0 %3191 }
 0x97d   : > { %v3204_v31 = vmul.f32 0.0625, %v3192_v30  ;;  %v3189_v60 = vpop.xlane.xlu1 %3188 }
 0x97e   : > { %3850 = vrsqrt.f32 %v3213_v42  ;;  %v3203_v38 = vmul.f32 0.0625, %v3189_v60 }
 0x97f   : > { %v3212_v46 = vadd.f32 1e-05, %v3204_v31 }
 0x980   : > { %v3843_v14 = vpop.eup %3842  ;;  %v3211_v23 = vadd.f32 1e-05, %v3203_v38  ;;  %v3198_v6 = vpop.xlane.xlu0 %3197 }
 0x981   : > { %v3225_v54 = vmul.f32 %v3843_v14, %v4802_v32  ;;  %3852 = vrsqrt.f32 %v3212_v46  ;;  %v3206_v62 = vmul.f32 0.0625, %v3198_v6  ;;  %v3098_v3 = vpop.xlane.xlu1 %3097 }
 0x982   : > { %v3845_v48 = vpop.eup %3844  ;;  %3854 = vrsqrt.f32 %v3211_v23  ;;  %v3099_v5 = vmul.f32 0.0625, %v3098_v3 }
 0x983   : > { %v3240_v43 = vmul.f32 %v3537_v52, %v3225_v54  ;;  %v3226_v49 = vmul.f32 %v3845_v48, %v4804_v55  ;;  %v3214_v27 = vadd.f32 1e-05, %v3206_v62 }
 0x984   : > { %v3847_v50 = vpop.eup %3846  ;;  %v3100_v33 = vadd.f32 1e-05, %v3099_v5 }
 0x985   : > { %v3255_v53 = vadd.f32 %v3538_v17, %v3240_v43  ;;  %v3241_v39 = vmul.f32 %v3537_v52, %v3226_v49  ;;  %v3223_v41 = vmul.f32 %v3847_v50, %v4808_v47  ;;  %3856 = vrsqrt.f32 %v3214_v27 }
 0x986   : > { %v3849_v45 = vpop.eup %3848  ;;  %3858 = vrsqrt.f32 %v3100_v33 }
 0x987   : > { %3264 = vst.msk [vmem:[%s4855_s19 + $0x10] sm:$0xff] %vm1152_vm1, %v3255_v53  ;;  %v3256_v32 = vadd.f32 %v3538_v17, %v3241_v39  ;;  %v3238_v55 = vmul.f32 %v3537_v52, %v3223_v41  ;;  %v3224_v16 = vmul.f32 %v3849_v45, %v4813_v37 }
 0x988   : > { %v3851_v56 = vpop.eup %3850 }
 0x989   : > { %3265 = vst.msk [vmem:[%s4855_s19 + $0x18] sm:$0xff] %vm1152_vm1, %v3256_v32  ;;  %v3253_v47 = vadd.f32 %v3538_v17, %v3238_v55  ;;  %v3239_v44 = vmul.f32 %v3537_v52, %v3224_v16  ;;  %v3229_v11 = vmul.f32 %v3851_v56, %v4818_v51 }
 0x98b   : > { %v3853_v0 = vpop.eup %3852  ;;  %3262 = vst.msk [vmem:[%s4855_s19] sm:$0xff] %vm1152_vm1, %v3253_v47  ;;  %v3254_v1 = vadd.f32 %v3538_v17, %v3239_v44  ;;  %v3244_v4 = vmul.f32 %v3537_v52, %v3229_v11 }
 0x98c   : > { %v3855_v58 = vpop.eup %3854  ;;  %v3228_v10 = vmul.f32 %v3853_v0, %v4826_v57 }
 0x98d   : > { %3263 = vst.msk [vmem:[%s4855_s19 + $0x8] sm:$0xff] %vm1152_vm1, %v3254_v1  ;;  %v3259_v37 = vadd.f32 %v3538_v17, %v3244_v4  ;;  %v3227_v2 = vmul.f32 %v3855_v58, %v4828_v59 }
 0x98e   : > { %v3243_v51 = vmul.f32 %v3537_v52, %v3228_v10 }
 0x98f   : > { %v3857_v13 = vpop.eup %3856  ;;  %3268 = vst.msk [vmem:[%s4855_s19 + $0x30] sm:$0xff] %vm1152_vm1, %v3259_v37  ;;  %v3242_v61 = vmul.f32 %v3537_v52, %v3227_v2 }
 0x990   : > { %v3859_v18 = vpop.eup %3858  ;;  %v3258_v36 = vadd.f32 %v3538_v17, %v3243_v51  ;;  %v3230_v57 = vmul.f32 %v3857_v13, %v4835_v12 }
 0x991   : > { %v3257_v9 = vadd.f32 %v3538_v17, %v3242_v61  ;;  %v3102_v7 = vmul.f32 %v3859_v18, %v4838_v8 }
 0x992   : > { %3267 = vst.msk [vmem:[%s4855_s19 + $0x28] sm:$0xff] %vm1152_vm1, %v3258_v36  ;;  %v3245_v59 = vmul.f32 %v3537_v52, %v3230_v57 }
 0x993   : > { %3266 = vst.msk [vmem:[%s4855_s19 + $0x20] sm:$0xff] %vm1152_vm1, %v3257_v9  ;;  %v3110_v21 = vmul.f32 %v3535_v40, %v3102_v7 }
 0x994   : > { %v3260_v12 = vadd.f32 %v3538_v17, %v3245_v59 }
 0x995   : > { %v3118_v8 = vadd.f32 %v3536_v29, %v3110_v21 }
 0x996   : > { %3269 = vst.msk [vmem:[%s4855_s19 + $0x38] sm:$0xff] %vm1152_vm1, %v3260_v12 }
 0x997   : > { %3261 = vst.msk [vmem:[%s1116_s7] sm:$0xff] %vm1152_vm1, %v3118_v8 }
 0x998   : > { %3882 = shalt.err (!%p3879_p3)
}
 0x999   : > { %s3883_s7 = scalar_lea.hbm %s4885_s8, 1024  ;;  %s3887_s19 = scalar_lea.hbm %s4159_s20, 2048 }
 0x99a   : > { %p3884_p4 = scmp.ne.s32.totalorder %s4885_s8, %s3883_s7  ;;  %p3888_p9 = scmp.lt.u32.totalorder %s4885_s8, %s4159_s20 }
 0x99b   : > { %p3889_p10 = scmp.lt.u32.totalorder %s3887_s19, %s3883_s7  ;;  %p3891_p12 = scmp.lt.u32.totalorder %s3883_s7, %s4885_s8 }
 0x99c   : > { %p3885_p7 = pnand %p3884_p4, %p4199_p5 }
 0x99d   : > { %p3890_p11 = por %p3889_p10, %p3888_p9 }
 0x99e   : > { %p3886_p8 = pneg %p3885_p7 }
 0x99f   : > { %p3892_p0 = por %p3891_p12, %p3890_p11 }
 0x9a1   : > { %p3893_p13 = pnand %p3892_p0, %p3886_p8 }
 0x9a3   : > { %3896 = shalt.err (!%p3893_p13)
}
 0x9a4   : > { %s3975_s6 = smov 128   ;;  %s4991_s3 = smov 8  }
 0x9a5   : > { %3692 = dma.vmem_to_hbm [thread:$0]  (%p4199_p5), %s4887_s5, 1024, %s4885_s8, %s4894_s0, %s3975_s6, %s3975_s6, %s4991_s3  }
 0x9a6 PF: > { %p3698_p1 = scmp.ge.s32.totalorder %s3931_s28, 2  ;;  %s3313_s4 = sand.u32 1, %s3919_s22  }
 0x9a7   : > { %s3314_s18 = scalar_lea.sflag [#allocation3], %s3313_s4 }
 0x9a8   : > { %p3695_p2 = pnand %p3698_p1, %p4203_p6 }
 0x9aa   : > { %3914 = dma.done.wait (!%p3695_p2), %s3314_s18, 1024  }
 0x9ab   : > { %3916 = vsyncadd (!%p3695_p2), %s3314_s18, 4294966272  ;;  %p82_p3 = scmp.ge.s32.totalorder %s4186_s2, 4   ;;  %s4992_s22 = smov %s3923_s23 }
 0x9ac   : > { %s4993_s23 = smov %s3927_s26  ;;  %s4994_s26 = smov %s4197_s11 }
 0x9ad   : > { %s4995_s28 = smov %s4186_s2  ;;  %84 = sbr.rel (!%p82_p3) target bundleno = 73 (0x49), region = 244 }
 0x9b4   :  { %3319 = vsyncpa [#allocation3], 1 }
 0x9b5   :  { %3321 = vsyncpa [#allocation3 + $0x1], 1 }

</bundles_post_ra>
